<compile_context>
chip_gen: v5e
topology: v5e:2x2
jax: 0.10.0
libtpu: 0.0.40
codegen_flags: <defaults>
</compile_context>

<pallas_src>
import jax
import jax.numpy as jnp
from jax import lax
from jax.experimental import pallas as pl
from jax.experimental.pallas import tpu as pltpu


def mapping_kernel(x_ref, w1_ref, b1_ref, w2_ref, b2_ref, o_ref):
    # --- pre-processing: F.normalize(x, p=2, dim=1, eps=1e-12) ---
    # x / max(||x||, 1e-12)  ==  x * rsqrt(max(sum(x^2), 1e-24))   (EUP rsqrt)
    x = x_ref[...]
    sumsq = jnp.sum(x * x, axis=-1, keepdims=True)
    x = x * lax.rsqrt(jnp.maximum(sumsq, 1e-24))

    # --- Linear(D_IN, HID) + ReLU  (f32 MXU inputs, f32 accumulate) ---
    h = jnp.dot(x, w1_ref[...], preferred_element_type=jnp.float32) + b1_ref[...]
    h = jnp.maximum(h, 0.0)

    # --- Linear(HID, N_CLS) ---
    logits = (jnp.dot(h, w2_ref[...], preferred_element_type=jnp.float32)
              + b2_ref[...])

    # --- Softmax(dim=1) ---
    m = jnp.max(logits, axis=-1, keepdims=True)
    e = jnp.exp(logits - m)
    denom = jnp.sum(e, axis=-1, keepdims=True)
    o_ref[...] = (e / denom).astype(o_ref.dtype)


def _pick_batch_tile(B, tb_max=512):
    """Batch tile: multiple of 8, <= tb_max, >=2 grid steps when possible,
    and dividing B exactly whenever B allows (so no wrapper pad/slice)."""
    if B <= 8:
        return B
    target = min(tb_max, max(8, ((B // 2) // 8) * 8))
    tb = target
    while tb > 8 and B % tb != 0:
        tb -= 8
    return tb if B % tb == 0 else target


def mapping_forward(x, w1, b1, w2, b2, *, tb_max=512):
    B, d_in = x.shape
    hid = w1.shape[1]
    n_cls = w2.shape[1]
    b1 = b1.reshape(1, hid)
    b2 = b2.reshape(1, n_cls)

    tb = _pick_batch_tile(B, tb_max)
    n_tiles = pl.cdiv(B, tb)
    b_pad = n_tiles * tb
    x_in = x if b_pad == B else jnp.pad(x, ((0, b_pad - B), (0, 0)))  # rare path

    cost = pl.CostEstimate(
        flops=2 * b_pad * (d_in * hid + hid * n_cls),
        transcendentals=b_pad * (n_cls + 1),          # exp per class + rsqrt per row
        bytes_accessed=4 * (b_pad * d_in + d_in * hid + hid
                            + hid * n_cls + n_cls + b_pad * n_cls),
    )

    out = pl.pallas_call(
        mapping_kernel,
        out_shape=jax.ShapeDtypeStruct((b_pad, n_cls), jnp.float32),
        grid_spec=pltpu.PrefetchScalarGridSpec(
            num_scalar_prefetch=0,
            grid=(n_tiles,),
            in_specs=[
                pl.BlockSpec((tb, d_in), lambda i: (i, 0)),     # streamed x tiles
                pl.BlockSpec((d_in, hid), lambda i: (0, 0)),    # resident W1
                pl.BlockSpec((1, hid), lambda i: (0, 0)),       # resident b1 (f32)
                pl.BlockSpec((hid, n_cls), lambda i: (0, 0)),   # resident W2
                pl.BlockSpec((1, n_cls), lambda i: (0, 0)),     # resident b2 (f32)
            ],
            out_specs=pl.BlockSpec((tb, n_cls), lambda i: (i, 0)),  # true-width out
        ),
        compiler_params=pltpu.CompilerParams(
            dimension_semantics=("parallel",),
        ),
        cost_estimate=cost,
    )(x_in, w1, b1, w2, b2)
    return out if b_pad == B else out[:B]


def reference_forward(x, w1, b1, w2, b2):
    x = x / jnp.maximum(jnp.sqrt(jnp.sum(x * x, axis=1, keepdims=True)), 1e-12)
    h = jnp.maximum(x @ w1 + b1.reshape(1, -1), 0.0)
    logits = h @ w2 + b2.reshape(1, -1)
    return jax.nn.softmax(logits, axis=1)


if __name__ == "__main__":
    # Representative instantiated mapping: 32 -> 64 -> 16 classifier.
    # Batch 1024 -> tile 512, exactly 2 pipelined grid steps (both v7x cores
    # usable), no batch padding, no output slicing.
    B, D_IN, HID, N_CLS = 1024, 32, 64, 16

    key = jax.random.PRNGKey(0)
    kx, k1, kb1, k2, kb2 = jax.random.split(key, 5)

    x = jax.random.normal(kx, (B, D_IN), dtype=jnp.float32)
    # Deterministic "layer_initialization": normal weights, uniform biases.
    w1 = jax.random.normal(k1, (D_IN, HID), dtype=jnp.float32) * 0.1
    b1 = jax.random.uniform(kb1, (1, HID), dtype=jnp.float32, minval=-0.05, maxval=0.05)
    w2 = jax.random.normal(k2, (HID, N_CLS), dtype=jnp.float32) * 0.1
    b2 = jax.random.uniform(kb2, (1, N_CLS), dtype=jnp.float32, minval=-0.05, maxval=0.05)

    out = jax.jit(mapping_forward)(x, w1, b1, w2, b2)
    jax.block_until_ready(out)

    ref = reference_forward(x, w1, b1, w2, b2)
    assert out.shape == (B, N_CLS)
    # Full f32 pipeline -> tight tolerance vs. the pure-JAX reference.
    assert jnp.allclose(out, ref, atol=1e-5, rtol=1e-5), float(jnp.max(jnp.abs(out - ref)))
    assert jnp.allclose(jnp.sum(out, axis=1), 1.0, atol=1e-5)

    print("KERNEL_OK")
</pallas_src>

<mosaic_0001>
module attributes {stable_mosaic.version = 11 : i64} {
  func.func @mapping_kernel(%arg0: i32, %arg1: memref<512x32xf32, #tpu.memory_space<vmem>>, %arg2: memref<32x64xf32, #tpu.memory_space<vmem>>, %arg3: memref<1x64xf32, #tpu.memory_space<vmem>>, %arg4: memref<64x16xf32, #tpu.memory_space<vmem>>, %arg5: memref<1x16xf32, #tpu.memory_space<vmem>>, %arg6: memref<512x16xf32, #tpu.memory_space<vmem>>) attributes {dimension_semantics = [#tpu.dimension_semantics<parallel>], iteration_bounds = array<i64: 2>, scalar_prefetch = 0 : i64, scratch_operands = 0 : i64, tpu.core_type = #tpu.core_type<tc>, window_params = [{transform_indices = @transform_0, window_bounds = array<i64: 512, 32>}, {pipeline_mode = #tpu.pipeline_mode<synchronous>, transform_indices = @transform_1, window_bounds = array<i64: 32, 64>}, {pipeline_mode = #tpu.pipeline_mode<synchronous>, transform_indices = @transform_2, window_bounds = array<i64: 1, 64>}, {pipeline_mode = #tpu.pipeline_mode<synchronous>, transform_indices = @transform_3, window_bounds = array<i64: 64, 16>}, {pipeline_mode = #tpu.pipeline_mode<synchronous>, transform_indices = @transform_4, window_bounds = array<i64: 1, 16>}, {transform_indices = @transform_5, window_bounds = array<i64: 512, 16>}]} {
    %c0 = arith.constant 0 : index
    %c0_0 = arith.constant 0 : index
    %0 = vector.load %arg1[%c0, %c0_0] : memref<512x32xf32, #tpu.memory_space<vmem>>, vector<512x32xf32>
    %1 = arith.mulf %0, %0 : vector<512x32xf32>
    %cst = arith.constant dense<0.000000e+00> : vector<512xf32>
    %2 = vector.multi_reduction <add>, %1, %cst [1] : vector<512x32xf32> to vector<512xf32>
    %3 = vector.shape_cast %2 : vector<512xf32> to vector<512x1xf32>
    %cst_1 = arith.constant 1.000000e-24 : f32
    %4 = vector.broadcast %cst_1 : f32 to vector<512x1xf32>
    %5 = arith.maximumf %3, %4 : vector<512x1xf32>
    %6 = math.rsqrt %5 : vector<512x1xf32>
    %7 = vector.broadcast %6 : vector<512x1xf32> to vector<512x32xf32>
    %8 = arith.mulf %0, %7 : vector<512x32xf32>
    %c0_2 = arith.constant 0 : index
    %c0_3 = arith.constant 0 : index
    %9 = vector.load %arg2[%c0_2, %c0_3] : memref<32x64xf32, #tpu.memory_space<vmem>>, vector<32x64xf32>
    %cst_4 = arith.constant dense<0.000000e+00> : vector<512x64xf32>
    %10 = tpu.matmul %8, %9, %cst_4 {dimension_numbers = #tpu.dot_dimension_numbers<[1], [0], [0], [1], [0, 0, 1, 1], [], []>} : vector<512x32xf32>, vector<32x64xf32>, vector<512x64xf32> -> vector<512x64xf32>
    %c0_5 = arith.constant 0 : index
    %c0_6 = arith.constant 0 : index
    %11 = vector.load %arg3[%c0_5, %c0_6] : memref<1x64xf32, #tpu.memory_space<vmem>>, vector<1x64xf32>
    %12 = vector.broadcast %11 : vector<1x64xf32> to vector<512x64xf32>
    %13 = arith.addf %10, %12 : vector<512x64xf32>
    %cst_7 = arith.constant 0.000000e+00 : f32
    %14 = vector.broadcast %cst_7 : f32 to vector<512x64xf32>
    %15 = arith.maximumf %13, %14 : vector<512x64xf32>
    %c0_8 = arith.constant 0 : index
    %c0_9 = arith.constant 0 : index
    %16 = vector.load %arg4[%c0_8, %c0_9] : memref<64x16xf32, #tpu.memory_space<vmem>>, vector<64x16xf32>
    %cst_10 = arith.constant dense<0.000000e+00> : vector<512x16xf32>
    %17 = tpu.matmul %15, %16, %cst_10 {dimension_numbers = #tpu.dot_dimension_numbers<[1], [0], [0], [1], [0, 0, 1, 1], [], []>} : vector<512x64xf32>, vector<64x16xf32>, vector<512x16xf32> -> vector<512x16xf32>
    %c0_11 = arith.constant 0 : index
    %c0_12 = arith.constant 0 : index
    %18 = vector.load %arg5[%c0_11, %c0_12] : memref<1x16xf32, #tpu.memory_space<vmem>>, vector<1x16xf32>
    %19 = vector.broadcast %18 : vector<1x16xf32> to vector<512x16xf32>
    %20 = arith.addf %17, %19 : vector<512x16xf32>
    %cst_13 = arith.constant dense<0xFF800000> : vector<512xf32>
    %21 = vector.multi_reduction <maximumf>, %20, %cst_13 [1] : vector<512x16xf32> to vector<512xf32>
    %22 = vector.shape_cast %21 : vector<512xf32> to vector<512x1xf32>
    %23 = vector.broadcast %22 : vector<512x1xf32> to vector<512x16xf32>
    %24 = arith.subf %20, %23 : vector<512x16xf32>
    %25 = math.exp %24 : vector<512x16xf32>
    %cst_14 = arith.constant dense<0.000000e+00> : vector<512xf32>
    %26 = vector.multi_reduction <add>, %25, %cst_14 [1] : vector<512x16xf32> to vector<512xf32>
    %27 = vector.shape_cast %26 : vector<512xf32> to vector<512x1xf32>
    %28 = vector.broadcast %27 : vector<512x1xf32> to vector<512x16xf32>
    %29 = arith.divf %25, %28 : vector<512x16xf32>
    %c0_15 = arith.constant 0 : index
    %c0_16 = arith.constant 0 : index
    %30 = vector.load %arg6[%c0_15, %c0_16] : memref<512x16xf32, #tpu.memory_space<vmem>>, vector<512x16xf32>
    tpu.vector_store %arg6[%c0_15, %c0_16], %29 {strides = array<i32>} : memref<512x16xf32, #tpu.memory_space<vmem>>, vector<512x16xf32>,
    return
  }
  func.func @transform_0(%arg0: i32) -> (i32, i32) {
    %c0_i32 = arith.constant 0 : i32
    %c0_i32_0 = arith.constant 0 : i32
    return %arg0, %c0_i32 : i32, i32
  }
  func.func @transform_1(%arg0: i32) -> (i32, i32) {
    %c0_i32 = arith.constant 0 : i32
    %c0_i32_0 = arith.constant 0 : i32
    %c0_i32_1 = arith.constant 0 : i32
    return %c0_i32, %c0_i32_0 : i32, i32
  }
  func.func @transform_2(%arg0: i32) -> (i32, i32) {
    %c0_i32 = arith.constant 0 : i32
    %c0_i32_0 = arith.constant 0 : i32
    %c0_i32_1 = arith.constant 0 : i32
    return %c0_i32, %c0_i32_0 : i32, i32
  }
  func.func @transform_3(%arg0: i32) -> (i32, i32) {
    %c0_i32 = arith.constant 0 : i32
    %c0_i32_0 = arith.constant 0 : i32
    %c0_i32_1 = arith.constant 0 : i32
    return %c0_i32, %c0_i32_0 : i32, i32
  }
  func.func @transform_4(%arg0: i32) -> (i32, i32) {
    %c0_i32 = arith.constant 0 : i32
    %c0_i32_0 = arith.constant 0 : i32
    %c0_i32_1 = arith.constant 0 : i32
    return %c0_i32, %c0_i32_0 : i32, i32
  }
  func.func @transform_5(%arg0: i32) -> (i32, i32) {
    %c0_i32 = arith.constant 0 : i32
    %c0_i32_0 = arith.constant 0 : i32
    return %arg0, %c0_i32 : i32, i32
  }
}

</mosaic_0001>

<bundles_post_ra>
// kernel: mapping_forward.1
= control target key start
LH: loop header
LB: loop body
LE: loop exit
PB: predicated region body
PF: predicated region fallthrough
CT: control target
= control target key end

     0   :  { %s4487_s18 = smov 0   ;;  %s6989_s0 = inlined_call_operand.vmem [shape: f32[1024,32], index: 0, kind: input, shape index: {}]   ;;  %s6990_s1 = inlined_call_operand.vmem [shape: f32[32,64], index: 1, kind: input, shape index: {}]   ;;  %s6991_s2 = inlined_call_operand.vmem [shape: f32[1,64], index: 2, kind: input, shape index: {}]   ;;  %s6992_s3 = inlined_call_operand.vmem [shape: f32[64,16], index: 3, kind: input, shape index: {}]   ;;  %s6993_s4 = inlined_call_operand.vmem [shape: f32[1,16], index: 4, kind: input, shape index: {}]   ;;  %s6994_s5 = inlined_call_operand.vmem [shape: f32[1024,16], index: 5, kind: output, shape index: {}]  }
   0x1 LB: > { %s3861_s19 = sadd.s32 4294967295, %s4455_s18   ;;  %p3865_p0 = scmp.ge.s32.totalorder %s4455_s18, 1  ;;  %s4455_s18 = sphi %s4487_s18, %s15_s18  }
   0x2   : > { %p188_p1 = scmp.lt.s32.totalorder %s4455_s18, 3 }
   0x4   : > { %p189_p2 = pnand %p3865_p0, %p188_p1 }
   0x5   : > { %s3866_s20 = sshll.u32 (!%p189_p2), %s3861_s19, 6 }
   0x6   : > { %192 = sbr.rel (%p189_p2) target bundleno = 1189 (0x4a5), region = 40  ;;  %p217_p3 = scmp.lt.s32.totalorder (!%p189_p2), %s3866_s20, 127 }
   0xb   : > { %s7074_s20 = smov (!%p217_p3, %s3866_s20), 127  ;;  %vm356_vm0 = vcmask 261120   ;;  %v1320_v57 = vld [vmem:[%s6990_s1 + $0x18] sm:$0xff]  ;;  %v1319_v58 = vld [vmem:[%s6990_s1 + $0x10] sm:$0xff]  ;;  %v1318_v60 = vld [vmem:[%s6990_s1 + $0x8] sm:$0xff] }
   0xc   : > { %s3867_s21 = sshll.u32 %s7074_s20, 3  ;;  %1529 = vmatpush.msra.mxu0 %v1320_v57  ;;  %4000 = vmatpush.msra.mxu3 %v1320_v57  ;;  %v1317_v62 = vld [vmem:[%s6990_s1] sm:$0xff] }
   0xd   : > { %s4503_s24 = scalar_lea.vmem %s6989_s0, %s3867_s21  ;;  %s6225_s14 = scalar_lea.vmem %s6994_s5, %s3867_s21 }
   0xe   : > { %v4506_v0 = vld [vmem:[%s4503_s24] sm:$0xff]  ;;  %v4509_v1 = vld [vmem:[%s4503_s24 + $0x10] sm:$0xff]  ;;  %v4519_v5 = vld [vmem:[%s4503_s24 + $0x8] sm:$0xff]  ;;  %1530 = vmatpush.msra.mxu0 %v1319_v58  ;;  %4001 = vmatpush.msra.mxu3 %v1319_v58 }
   0xf   : > { %v292_v2 = vmul.f32 %v4506_v0, %v4506_v0  ;;  %v294_v3 = vmul.f32 %v4509_v1, %v4509_v1  ;;  %v4516_v4 = vld [vmem:[%s4503_s24 + $0x20] sm:$0xff]  ;;  %v4522_v6 = vld [vmem:[%s4503_s24 + $0x18] sm:$0xff]  ;;  %v4529_v10 = vld [vmem:[%s4503_s24 + $0x28] sm:$0xff]  ;;  %v293_v12 = vmul.f32 %v4519_v5, %v4519_v5 }
  0x10   : > { %v296_v7 = vmul.f32 %v4516_v4, %v4516_v4  ;;  %v295_v13 = vmul.f32 %v4522_v6, %v4522_v6  ;;  %v297_v14 = vmul.f32 %v4529_v10, %v4529_v10  ;;  %v4542_v18 = vld [vmem:[%s4503_s24 + $0x30] sm:$0xff]  ;;  %v4545_v19 = vld [vmem:[%s4503_s24 + $0x38] sm:$0xff]  ;;  %v4548_v20 = vld [vmem:[%s4503_s24 + $0x40] sm:$0xff]  ;;  %1531 = vmatpush.msra.mxu0 %v1318_v60  ;;  %4002 = vmatpush.msra.mxu3 %v1318_v60 }
  0x11   : > { %v357_v8 = vsel %vm356_vm0, %v292_v2, 0.0  ;;  %v363_v9 = vsel %vm356_vm0, %v294_v3, 0.0  ;;  %v360_v15 = vsel %vm356_vm0, %v293_v12, 0.0  ;;  %v298_v21 = vmul.f32 %v4542_v18, %v4542_v18  ;;  %v4560_v27 = vld [vmem:[%s4503_s24 + $0x48] sm:$0xff]  ;;  %v4563_v28 = vld [vmem:[%s4503_s24 + $0x50] sm:$0xff]  ;;  %v4566_v29 = vld [vmem:[%s4503_s24 + $0x58] sm:$0xff] }
  0x12   : > { %358 = vadd.xlane.f32.xlu0 %v357_v8  ;;  %364 = vadd.xlane.f32.xlu1 %v363_v9  ;;  %v369_v11 = vsel %vm356_vm0, %v296_v7, 0.0  ;;  %v366_v16 = vsel %vm356_vm0, %v295_v13, 0.0  ;;  %v372_v17 = vsel %vm356_vm0, %v297_v14, 0.0  ;;  %v299_v22 = vmul.f32 %v4545_v19, %v4545_v19  ;;  %v4578_v36 = vld [vmem:[%s4503_s24 + $0x60] sm:$0xff]  ;;  %v4581_v37 = vld [vmem:[%s4503_s24 + $0x68] sm:$0xff]  ;;  %v4584_v38 = vld [vmem:[%s4503_s24 + $0x70] sm:$0xff] }
  0x13   : > { %370 = vadd.xlane.f32.xlu2 %v369_v11  ;;  %v300_v23 = vmul.f32 %v4548_v20, %v4548_v20  ;;  %v375_v24 = vsel %vm356_vm0, %v298_v21, 0.0  ;;  %v301_v30 = vmul.f32 %v4560_v27, %v4560_v27  ;;  %v302_v31 = vmul.f32 %v4563_v28, %v4563_v28  ;;  %v4596_v45 = vld [vmem:[%s4503_s24 + $0x78] sm:$0xff]  ;;  %v4599_v46 = vld [vmem:[%s4503_s24 + $0x80] sm:$0xff]  ;;  %v4608_v51 = vld [vmem:[%s4503_s24 + $0x88] sm:$0xff]  ;;  %1532 = vmatpush.msra.mxu0 %v1317_v62 }
  0x14   : > { %v378_v25 = vsel %vm356_vm0, %v299_v22, 0.0  ;;  %v303_v32 = vmul.f32 %v4566_v29, %v4566_v29  ;;  %v304_v39 = vmul.f32 %v4578_v36, %v4578_v36  ;;  %v305_v40 = vmul.f32 %v4581_v37, %v4581_v37  ;;  %v4614_v54 = vld [vmem:[%s4503_s24 + $0x90] sm:$0xff]  ;;  %v4626_v59 = vld [vmem:[%s4503_s24 + $0x98] sm:$0xff]  ;;  %4003 = vmatpush.msra.mxu3 %v1317_v62  ;;  %v4638_v2 = vld [vmem:[%s4503_s24 + $0xa0] sm:$0xff] }
  0x15   : > { %v381_v26 = vsel %vm356_vm0, %v300_v23, 0.0  ;;  %v384_v33 = vsel %vm356_vm0, %v301_v30, 0.0  ;;  %v387_v34 = vsel %vm356_vm0, %v302_v31, 0.0  ;;  %v306_v41 = vmul.f32 %v4584_v38, %v4584_v38  ;;  %v249_v11 = vld [vmem:[%s4503_s24 + $0xa8] sm:$0xff] }
  0x16   : > { %v390_v35 = vsel %vm356_vm0, %v303_v32, 0.0  ;;  %v393_v42 = vsel %vm356_vm0, %v304_v39, 0.0  ;;  %v396_v43 = vsel %vm356_vm0, %v305_v40, 0.0  ;;  %v307_v47 = vmul.f32 %v4596_v45, %v4596_v45  ;;  %v251_v40 = vld [vmem:[%s4503_s24 + $0xb8] sm:$0xff] }
  0x17   : > { %v399_v44 = vsel %vm356_vm0, %v306_v41, 0.0  ;;  %v308_v48 = vmul.f32 %v4599_v46, %v4599_v46  ;;  %v309_v52 = vmul.f32 %v4608_v51, %v4608_v51  ;;  %v310_v55 = vmul.f32 %v4614_v54, %v4614_v54 }
  0x18   : > { %v402_v49 = vsel %vm356_vm0, %v307_v47, 0.0  ;;  %v311_v61 = vmul.f32 %v4626_v59, %v4626_v59  ;;  %v312_v3 = vmul.f32 %v4638_v2, %v4638_v2  ;;  %v313_v14 = vmul.f32 %v249_v11, %v249_v11 }
  0x19   : > { %v405_v50 = vsel %vm356_vm0, %v308_v48, 0.0  ;;  %v408_v53 = vsel %vm356_vm0, %v309_v52, 0.0  ;;  %v411_v56 = vsel %vm356_vm0, %v310_v55, 0.0 }
  0x1a   : > { %361 = vadd.xlane.f32.xlu0 %v360_v15  ;;  %367 = vadd.xlane.f32.xlu1 %v366_v16  ;;  %v414_v63 = vsel %vm356_vm0, %v311_v61, 0.0  ;;  %v417_v7 = vsel %vm356_vm0, %v312_v3, 0.0  ;;  %v420_v15 = vsel %vm356_vm0, %v313_v14, 0.0  ;;  %v250_v16 = vld [vmem:[%s4503_s24 + $0xb0] sm:$0xff]  ;;  %v252_v61 = vld [vmem:[%s4503_s24 + $0xc0] sm:$0xff] }
  0x1b   : > { %373 = vadd.xlane.f32.xlu2 %v372_v17  ;;  %v314_v22 = vmul.f32 %v250_v16, %v250_v16 }
  0x1d   : > { %v423_v30 = vsel %vm356_vm0, %v314_v22, 0.0  ;;  %v253_v22 = vld [vmem:[%s4503_s24 + $0xc8] sm:$0xff] }
  0x22   : > { %376 = vadd.xlane.f32.xlu0 %v375_v24  ;;  %379 = vadd.xlane.f32.xlu1 %v378_v25 }
  0x23   : > { %382 = vadd.xlane.f32.xlu2 %v381_v26 }
  0x2a   : > { %385 = vadd.xlane.f32.xlu0 %v384_v33  ;;  %388 = vadd.xlane.f32.xlu1 %v387_v34 }
  0x2b   : > { %391 = vadd.xlane.f32.xlu2 %v390_v35 }
  0x32   : > { %394 = vadd.xlane.f32.xlu0 %v393_v42  ;;  %397 = vadd.xlane.f32.xlu1 %v396_v43 }
  0x33   : > { %400 = vadd.xlane.f32.xlu2 %v399_v44 }
  0x3a   : > { %403 = vadd.xlane.f32.xlu0 %v402_v49  ;;  %406 = vadd.xlane.f32.xlu1 %v405_v50  ;;  %v315_v49 = vmul.f32 %v251_v40, %v251_v40  ;;  %v254_v40 = vld [vmem:[%s4503_s24 + $0xd0] sm:$0xff] }
  0x3b   : > { %409 = vadd.xlane.f32.xlu2 %v408_v53 }
  0x3c   : > { %v426_v60 = vsel %vm356_vm0, %v315_v49, 0.0 }
  0x42   : > { %412 = vadd.xlane.f32.xlu0 %v411_v56  ;;  %415 = vadd.xlane.f32.xlu1 %v414_v63  ;;  %v316_v63 = vmul.f32 %v252_v61, %v252_v61 }
  0x43   : > { %418 = vadd.xlane.f32.xlu2 %v417_v7 }
  0x44   : > { %v429_v11 = vsel %vm356_vm0, %v316_v63, 0.0 }
  0x4a   : > { %421 = vadd.xlane.f32.xlu0 %v420_v15  ;;  %424 = vadd.xlane.f32.xlu1 %v423_v30 }
  0x4b   : > { %427 = vadd.xlane.f32.xlu2 %v426_v60 }
  0x52   : > { %430 = vadd.xlane.f32.xlu0 %v429_v11 }
  0x85   : > { %v359_v8 = vpop.xlane.xlu0 %358  ;;  %v365_v9 = vpop.xlane.xlu1 %364 }
  0x86   : > { %v549_v12 = vmax.f32 %v359_v8, 1e-24  ;;  %v4644_v13 = vmax.f32 %v365_v9, 1e-24  ;;  %v371_v33 = vpop.xlane.xlu2 %370 }
  0x87   : > { %v4658_v42 = vmax.f32 %v371_v33, 1e-24 }
  0x88   : > { %4022 = vrsqrt.f32 %v549_v12  ;;  %vm619_vm2 = vweird.f32 %v549_v12  ;;  %vm639_vm7 = vweird.f32 %v4644_v13 }
  0x89   : > { %4024 = vrsqrt.f32 %v4644_v13  ;;  %vm659_vm13 = vweird.f32 %v4658_v42 }
  0x8d   : > { %v362_v17 = vpop.xlane.xlu0 %361  ;;  %v368_v21 = vpop.xlane.xlu1 %367 }
  0x8e   : > { %v4023_v23 = vpop.eup %4022  ;;  %v550_v24 = vmax.f32 %v362_v17, 1e-24  ;;  %v4649_v25 = vmax.f32 %v368_v21, 1e-24  ;;  %v374_v58 = vpop.xlane.xlu2 %373 }
  0x8f   : > { %v614_v26 = vmul.f32 %v4023_v23, %v549_v12  ;;  %v4652_v31 = vpop.eup %4024  ;;  %vm620_vm1 = vweird.f32 %v4023_v23  ;;  %v4670_v3 = vmax.f32 %v374_v58, 1e-24 }
  0x90   : > { %4026 = vrsqrt.f32 %v550_v24  ;;  %v634_v35 = vmul.f32 %v4652_v31, %v4644_v13  ;;  %vm621_vm3 = vmor %vm619_vm2, %vm620_vm1  ;;  %vm629_vm5 = vweird.f32 %v550_v24  ;;  %vm640_vm8 = vweird.f32 %v4652_v31 }
  0x91   : > { %v615_v32 = vmul.f32 %v4023_v23, %v614_v26  ;;  %4028 = vrsqrt.f32 %v4649_v25  ;;  %vm641_vm9 = vmor %vm639_vm7, %vm640_vm8  ;;  %v317_v13 = vmul.f32 %v253_v22, %v253_v22  ;;  %vm649_vm10 = vweird.f32 %v4649_v25 }
  0x92   : > { %v635_v43 = vmul.f32 %v4652_v31, %v634_v35  ;;  %4030 = vrsqrt.f32 %v4658_v42  ;;  %vm669_vm1 = vweird.f32 %v4670_v3 }
  0x93   : > { %v616_v34 = vmul.f32 0.5, %v615_v32  ;;  %4032 = vrsqrt.f32 %v4670_v3  ;;  %v432_v30 = vsel %vm356_vm0, %v317_v13, 0.0 }
  0x94   : > { %v636_v55 = vmul.f32 0.5, %v635_v43  ;;  %433 = vadd.xlane.f32.xlu1 %v432_v30  ;;  %v257_v30 = vld [vmem:[%s4503_s24 + $0xe8] sm:$0xff] }
  0x95   : > { %v617_v39 = vsub.f32 1.5, %v616_v34  ;;  %v377_v17 = vpop.xlane.xlu0 %376  ;;  %v380_v34 = vpop.xlane.xlu1 %379 }
  0x96   : > { %v4027_v41 = vpop.eup %4026  ;;  %v637_v7 = vsub.f32 1.5, %v636_v55 }
  0x97   : > { %v624_v44 = vmul.f32 %v4027_v41, %v550_v24  ;;  %v618_v47 = vmul.f32 %v4023_v23, %v617_v39  ;;  %v4661_v48 = vpop.eup %4028  ;;  %vm630_vm4 = vweird.f32 %v4027_v41 }
  0x98   : > { %v644_v57 = vmul.f32 %v4661_v48, %v4649_v25  ;;  %v4673_v9 = vpop.eup %4030  ;;  %vm631_vm6 = vmor %vm629_vm5, %vm630_vm4  ;;  %v638_v21 = vmul.f32 %v4652_v31, %v637_v7  ;;  %vm650_vm11 = vweird.f32 %v4661_v48  ;;  %v318_v25 = vmul.f32 %v254_v40, %v254_v40 }
  0x99   : > { %v625_v50 = vmul.f32 %v4027_v41, %v624_v44  ;;  %v622_v52 = vsel %vm621_vm3, %v4023_v23, %v618_v47  ;;  %v654_v16 = vmul.f32 %v4673_v9, %v4658_v42  ;;  %v4685_v23 = vmax.f32 %v377_v17, 1e-24  ;;  %v4690_v32 = vpop.eup %4032  ;;  %vm651_vm12 = vmor %vm649_vm10, %vm650_vm11 }
  0x9a   : > { %v1253_v53 = vmul.f32 %v622_v52, %v4506_v0  ;;  %v645_v0 = vmul.f32 %v4661_v48, %v644_v57  ;;  %v664_v39 = vmul.f32 %v4690_v32, %v4670_v3  ;;  %v435_v47 = vsel %vm356_vm0, %v318_v25, 0.0  ;;  %v383_v52 = vpop.xlane.xlu2 %382 }
  0x9b   : > { %v626_v56 = vmul.f32 0.5, %v625_v50  ;;  %v655_v26 = vmul.f32 %v4673_v9, %v654_v16  ;;  %4034 = vrsqrt.f32 %v4685_v23  ;;  %436 = vadd.xlane.f32.xlu2 %v435_v47  ;;  %vm660_vm14 = vweird.f32 %v4673_v9 }
  0x9c   : > { %3870 = vmatmul.msk.f32.vlgmr.msra.gmra.mxu0 %vm356_vm0, %v1253_v53  ;;  %v646_v15 = vmul.f32 0.5, %v645_v0  ;;  %v665_v44 = vmul.f32 %v4690_v32, %v664_v39  ;;  %v255_v53 = vld [vmem:[%s4503_s24 + $0xd8] sm:$0xff]  ;;  %vm661_vm15 = vmor %vm659_vm13, %vm660_vm14  ;;  %v4717_v42 = vmax.f32 %v383_v52, 1e-24  ;;  %vm670_vm2 = vweird.f32 %v4690_v32  ;;  %v256_v0 = vld [vmem:[%s4503_s24 + $0xe0] sm:$0xff] }
  0x9d   : > { %v627_v62 = vsub.f32 1.5, %v626_v56  ;;  %v656_v35 = vmul.f32 0.5, %v655_v26  ;;  %v319_v57 = vmul.f32 %v255_v53, %v255_v53  ;;  %vm671_vm3 = vmor %vm669_vm1, %vm670_vm2  ;;  %vm679_vm4 = vweird.f32 %v4685_v23 }
  0x9e   : > { %v647_v24 = vsub.f32 1.5, %v646_v15  ;;  %v666_v55 = vmul.f32 0.5, %v665_v44  ;;  %v320_v15 = vmul.f32 %v256_v0, %v256_v0  ;;  %vm699_vm10 = vweird.f32 %v4717_v42 }
  0x9f   : > { %v628_v8 = vmul.f32 %v4027_v41, %v627_v62  ;;  %v657_v43 = vsub.f32 1.5, %v656_v35  ;;  %v438_v58 = vsel %vm356_vm0, %v319_v57, 0.0  ;;  %v389_v35 = vpop.xlane.xlu1 %388 }
  0xa0   : > { %439 = vadd.xlane.f32.xlu0 %v438_v58  ;;  %v667_v60 = vsub.f32 1.5, %v666_v55  ;;  %v441_v3 = vsel %vm356_vm0, %v320_v15, 0.0  ;;  %v260_v55 = vld [vmem:[%s4503_s24 + $0x100] sm:$0xff] }
  0xa1   : > { %v632_v12 = vsel %vm631_vm6, %v4027_v41, %v628_v8  ;;  %v4701_v41 = vmax.f32 %v380_v34, 1e-24  ;;  %v4706_v49 = vpop.eup %4034  ;;  %v258_v8 = vld [vmem:[%s4503_s24 + $0xf0] sm:$0xff]  ;;  %442 = vadd.xlane.f32.xlu1 %v441_v3  ;;  %v4751_v34 = vld [vmem:[%s4503_s24 + $0x108] sm:$0xff]  ;;  %v324_v58 = vmul.f32 %v260_v55, %v260_v55 }
  0xa2   : > { %v1254_v14 = vmul.f32 %v632_v12, %v4519_v5  ;;  %v642_v5 = vsel %vm641_vm9, %v4652_v31, %v638_v21  ;;  %v648_v31 = vmul.f32 %v4661_v48, %v647_v24  ;;  %v674_v56 = vmul.f32 %v4706_v49, %v4685_v23  ;;  %v386_v12 = vpop.xlane.xlu0 %385  ;;  %v392_v57 = vpop.xlane.xlu2 %391 }
  0xa3   : > { %v1255_v33 = vmul.f32 %v642_v5, %v4509_v1  ;;  %4036 = vrsqrt.f32 %v4701_v41  ;;  %v322_v16 = vmul.f32 %v258_v8, %v258_v8  ;;  %v4737_v17 = vmax.f32 %v386_v12, 1e-24 }
  0xa4   : > { %3871 = vmatmul.msk.f32.gmra.mxu0 %vm356_vm0, %v1254_v14  ;;  %v652_v1 = vsel %vm651_vm12, %v4661_v48, %v648_v31  ;;  %v658_v48 = vmul.f32 %v4673_v9, %v657_v43  ;;  %v675_v61 = vmul.f32 %v4706_v49, %v674_v56  ;;  %4038 = vrsqrt.f32 %v4717_v42  ;;  %v4775_v56 = vld [vmem:[%s4503_s24 + $0x110] sm:$0xff] }
  0xa5   : > { %v1256_v50 = vmul.f32 %v652_v1, %v4522_v6  ;;  %v668_v14 = vmul.f32 %v4690_v32, %v667_v60  ;;  %vm680_vm5 = vweird.f32 %v4706_v49  ;;  %4040 = vrsqrt.f32 %v4737_v17 }
  0xa6   : > { %v662_v62 = vsel %vm661_vm15, %v4673_v9, %v658_v48  ;;  %v676_v11 = vmul.f32 0.5, %v675_v61  ;;  %v447_v9 = vsel %vm356_vm0, %v322_v16, 0.0  ;;  %v325_v40 = vmul.f32 %v4751_v34, %v4751_v34  ;;  %vm681_vm6 = vmor %vm679_vm4, %vm680_vm5 }
  0xa7   : > { %v1257_v7 = vmul.f32 %v662_v62, %v4516_v4  ;;  %v672_v13 = vsel %vm671_vm3, %v4690_v32, %v668_v14  ;;  %v321_v32 = vmul.f32 %v257_v30, %v257_v30  ;;  %v4762_v1 = vmax.f32 %v389_v35, 1e-24  ;;  %v398_v30 = vpop.xlane.xlu1 %397 }
  0xa8   : > { %448 = vadd.xlane.f32.xlu0 %v447_v9  ;;  %v677_v22 = vsub.f32 1.5, %v676_v11  ;;  %v1258_v5 = vmul.f32 %v672_v13, %v4529_v10  ;;  %v456_v43 = vsel %vm356_vm0, %v325_v40, 0.0  ;;  %vm689_vm7 = vweird.f32 %v4701_v41  ;;  %v4793_v11 = vld [vmem:[%s4503_s24 + $0x118] sm:$0xff] }
  0xa9   : > { %v4720_v6 = vpop.eup %4036  ;;  %v444_v25 = vsel %vm356_vm0, %v321_v32, 0.0  ;;  %4042 = vrsqrt.f32 %v4762_v1  ;;  %v4784_v61 = vmax.f32 %v392_v57, 1e-24  ;;  %vm709_vm13 = vweird.f32 %v4737_v17 }
  0xaa   : > { %v684_v63 = vmul.f32 %v4720_v6, %v4701_v41  ;;  %v4739_v21 = vpop.eup %4038  ;;  %v678_v39 = vmul.f32 %v4706_v49, %v677_v22  ;;  %445 = vadd.xlane.f32.xlu2 %v444_v25  ;;  %vm690_vm8 = vweird.f32 %v4720_v6  ;;  %v326_v41 = vmul.f32 %v4775_v56, %v4775_v56  ;;  %v395_v15 = vpop.xlane.xlu0 %394  ;;  %v4830_v25 = vld [vmem:[%s4503_s24 + $0x128] sm:$0xff] }
  0xab   : > { %v694_v26 = vmul.f32 %v4739_v21, %v4717_v42  ;;  %v4766_v23 = vpop.eup %4040  ;;  %vm691_vm9 = vmor %vm689_vm7, %vm690_vm8  ;;  %vm700_vm11 = vweird.f32 %v4739_v21  ;;  %4044 = vrsqrt.f32 %v4784_v61  ;;  %v4801_v3 = vmax.f32 %v395_v15, 1e-24 }
  0xac   : > { %3872 = vmatmul.msk.f32.gmra.mxu0 %vm356_vm0, %v1255_v33  ;;  %v685_v4 = vmul.f32 %v4720_v6, %v684_v63  ;;  %v259_v33 = vld [vmem:[%s4503_s24 + $0xf8] sm:$0xff]  ;;  %v459_v60 = vsel %vm356_vm0, %v326_v41, 0.0  ;;  %vm701_vm12 = vmor %vm699_vm10, %vm700_vm11  ;;  %vm710_vm14 = vweird.f32 %v4766_v23  ;;  %v4820_v35 = vmax.f32 %v398_v30, 1e-24 }
  0xad   : > { %v323_v31 = vmul.f32 %v259_v33, %v259_v33  ;;  %v695_v47 = vmul.f32 %v4739_v21, %v694_v26  ;;  %4046 = vrsqrt.f32 %v4801_v3  ;;  %vm711_vm15 = vmor %vm709_vm13, %vm710_vm14  ;;  %vm719_vm1 = vweird.f32 %v4762_v1 }
  0xae   : > { %v686_v24 = vmul.f32 0.5, %v685_v4  ;;  %4048 = vrsqrt.f32 %v4820_v35  ;;  %vm729_vm4 = vweird.f32 %v4784_v61  ;;  %vm739_vm7 = vweird.f32 %v4801_v3 }
  0xaf   : > { %v450_v10 = vsel %vm356_vm0, %v323_v31, 0.0  ;;  %v696_v48 = vmul.f32 0.5, %v695_v47  ;;  %v4043_v0 = vpop.eup %4042  ;;  %vm749_vm10 = vweird.f32 %v4820_v35 }
  0xb0   : > { %v687_v44 = vsub.f32 1.5, %v686_v24  ;;  %451 = vadd.xlane.f32.xlu1 %v450_v10  ;;  %457 = vadd.xlane.f32.xlu0 %v456_v43  ;;  %v714_v14 = vmul.f32 %v4043_v0, %v4762_v1  ;;  %v4811_v24 = vld [vmem:[%s4503_s24 + $0x120] sm:$0xff]  ;;  %vm720_vm2 = vweird.f32 %v4043_v0 }
  0xb1   : > { %v697_v62 = vsub.f32 1.5, %v696_v48  ;;  %v4804_v22 = vpop.eup %4044  ;;  %v328_v33 = vmul.f32 %v4811_v24, %v4811_v24  ;;  %vm721_vm3 = vmor %vm719_vm1, %vm720_vm2 }
  0xb2   : > { %v688_v53 = vmul.f32 %v4720_v6, %v687_v44  ;;  %v715_v9 = vmul.f32 %v4043_v0, %v714_v14  ;;  %v401_v44 = vpop.xlane.xlu2 %400  ;;  %vm730_vm5 = vweird.f32 %v4804_v22  ;;  %v404_v41 = vpop.xlane.xlu0 %403 }
  0xb3   : > { %v698_v16 = vmul.f32 %v4739_v21, %v697_v62  ;;  %v4824_v31 = vpop.eup %4046 }
  0xb4   : > { %3873 = vmatmul.msk.f32.gmra.mxu0 %vm356_vm0, %v1256_v50  ;;  %v682_v50 = vsel %vm681_vm6, %v4706_v49, %v678_v39  ;;  %v704_v49 = vmul.f32 %v4766_v23, %v4737_v17  ;;  %v716_v26 = vmul.f32 0.5, %v715_v9  ;;  %v465_v17 = vsel %vm356_vm0, %v328_v33, 0.0  ;;  %v4841_v55 = vpop.eup %4048  ;;  %vm4852_vm6 = vmor %vm729_vm4, %vm730_vm5  ;;  %v407_v9 = vpop.xlane.xlu1 %406 }
  0xb5   : > { %v1259_v52 = vmul.f32 %v682_v50, %v4542_v18  ;;  %v453_v18 = vsel %vm356_vm0, %v324_v58, 0.0  ;;  %v702_v4 = vsel %vm701_vm12, %v4739_v21, %v698_v16  ;;  %v734_v43 = vmul.f32 %v4824_v31, %v4801_v3  ;;  %v271_v3 = vld [vmem:[%s4503_s24 + $0x158] sm:$0xff] }
  0xb6   : > { %454 = vadd.xlane.f32.xlu2 %v453_v18  ;;  %v705_v63 = vmul.f32 %v4766_v23, %v704_v49  ;;  %v1261_v13 = vmul.f32 %v702_v4, %v4548_v20  ;;  %v717_v20 = vsub.f32 1.5, %v716_v26  ;;  %v329_v50 = vmul.f32 %v4830_v25, %v4830_v25  ;;  %v266_v49 = vld [vmem:[%s4503_s24 + $0x130] sm:$0xff] }
  0xb7   : > { %v744_v58 = vmul.f32 %v4841_v55, %v4820_v35  ;;  %vm740_vm8 = vweird.f32 %v4824_v31  ;;  %vm750_vm11 = vweird.f32 %v4841_v55 }
  0xb8   : > { %460 = vadd.xlane.f32.xlu1 %v459_v60  ;;  %v706_v12 = vmul.f32 0.5, %v705_v63  ;;  %466 = vadd.xlane.f32.xlu0 %v465_v17  ;;  %v718_v47 = vmul.f32 %v4043_v0, %v717_v20  ;;  %v468_v1 = vsel %vm356_vm0, %v329_v50, 0.0  ;;  %v330_v60 = vmul.f32 %v266_v49, %v266_v49  ;;  %v1792_v20 = vld [vmem:[%s6992_s3 + $0x10] sm:$0xff]  ;;  %vm751_vm12 = vmor %vm749_vm10, %vm750_vm11  ;;  %v269_v49 = vld [vmem:[%s4503_s24 + $0x148] sm:$0xff] }
  0xba   : > { %v471_v63 = vsel %vm356_vm0, %v330_v60, 0.0 }
  0xbc   : > { %3874 = vmatmul.msk.f32.gmra.mxu0 %vm356_vm0, %v1257_v7  ;;  %v692_v7 = vsel %vm691_vm9, %v4720_v6, %v688_v53  ;;  %v327_v6 = vmul.f32 %v4793_v11, %v4793_v11  ;;  %v722_v53 = vsel %vm721_vm3, %v4043_v0, %v718_v47  ;;  %v1795_v0 = vld [vmem:[%s6992_s3 + $0x28] sm:$0xff]  ;;  %vm4883_vm9 = vmor %vm739_vm7, %vm740_vm8 }
  0xbd   : > { %v1260_v8 = vmul.f32 %v692_v7, %v4545_v19  ;;  %v707_v19 = vsub.f32 1.5, %v706_v12  ;;  %v1263_v48 = vmul.f32 %v722_v53, %v4563_v28  ;;  %v1796_v28 = vld [vmem:[%s6992_s3 + $0x30] sm:$0xff]  ;;  %v4863_v7 = vmax.f32 %v404_v41, 1e-24  ;;  %v413_v41 = vpop.xlane.xlu0 %412 }
  0xbe   : > { %v462_v42 = vsel %vm356_vm0, %v327_v6, 0.0  ;;  %v745_v12 = vmul.f32 %v4841_v55, %v744_v58  ;;  %v267_v6 = vld [vmem:[%s4503_s24 + $0x138] sm:$0xff]  ;;  %v4941_v60 = vmax.f32 %v413_v41, 1e-24 }
  0xbf   : > { %463 = vadd.xlane.f32.xlu2 %v462_v42  ;;  %v708_v21 = vmul.f32 %v4766_v23, %v707_v19  ;;  %vm769_vm1 = vweird.f32 %v4863_v7 }
  0xc0   : > { %469 = vadd.xlane.f32.xlu1 %v468_v1  ;;  %v746_v42 = vmul.f32 0.5, %v745_v12  ;;  %vm799_vm11 = vweird.f32 %v4941_v60 }
  0xc1   : > { %v712_v32 = vsel %vm711_vm15, %v4766_v23, %v708_v21  ;;  %v4838_v23 = vmax.f32 %v401_v44, 1e-24 }
  0xc2   : > { %v1262_v40 = vmul.f32 %v712_v32, %v4560_v27  ;;  %v747_v30 = vsub.f32 1.5, %v746_v42  ;;  %v410_v32 = vpop.xlane.xlu2 %409 }
  0xc3   : > { %4050 = vrsqrt.f32 %v4838_v23  ;;  %v4924_v50 = vmax.f32 %v410_v32, 1e-24  ;;  %vm759_vm13 = vweird.f32 %v4838_v23 }
  0xc4   : > { %3875 = vmatmul.msk.f32.gmra.mxu0 %vm356_vm0, %v1258_v5  ;;  %v724_v5 = vmul.f32 %v4804_v22, %v4784_v61  ;;  %v1797_v61 = vld [vmem:[%s6992_s3 + $0x38] sm:$0xff]  ;;  %4052 = vrsqrt.f32 %v4863_v7  ;;  %v748_v44 = vmul.f32 %v4841_v55, %v747_v30  ;;  %v335_v30 = vmul.f32 %v271_v3, %v271_v3 }
  0xc5   : > { %2003 = vmatpush.msra.mxu1 %v1797_v61  ;;  %4004 = vmatpush.msra.mxu2 %v1797_v61  ;;  %vm789_vm7 = vweird.f32 %v4924_v50 }
  0xc6   : > { %v725_v39 = vmul.f32 %v4804_v22, %v724_v5  ;;  %v4894_v5 = vmax.f32 %v407_v9, 1e-24  ;;  %v752_v53 = vsel %vm751_vm12, %v4841_v55, %v748_v44  ;;  %v333_v55 = vmul.f32 %v269_v49, %v269_v49  ;;  %v272_v44 = vld [vmem:[%s4503_s24 + $0x160] sm:$0xff] }
  0xc7   : > { %472 = vadd.xlane.f32.xlu2 %v471_v63  ;;  %2004 = vmatpush.msra.mxu1 %v1796_v28  ;;  %v1266_v35 = vmul.f32 %v752_v53, %v4581_v37 }
  0xc8   : > { %v726_v10 = vmul.f32 0.5, %v725_v39  ;;  %4005 = vmatpush.msra.mxu2 %v1796_v28  ;;  %4054 = vrsqrt.f32 %v4894_v5  ;;  %vm779_vm4 = vweird.f32 %v4894_v5 }
  0xc9   : > { %v4872_v15 = vpop.eup %4050  ;;  %2005 = vmatpush.msra.mxu1 %v1795_v0  ;;  %4056 = vrsqrt.f32 %v4924_v50 }
  0xca   : > { %v727_v27 = vsub.f32 1.5, %v726_v10  ;;  %4006 = vmatpush.msra.mxu2 %v1795_v0  ;;  %v754_v19 = vmul.f32 %v4872_v15, %v4838_v23  ;;  %v4900_v17 = vpop.eup %4052  ;;  %vm760_vm14 = vweird.f32 %v4872_v15  ;;  %v480_v23 = vsel %vm356_vm0, %v333_v55, 0.0 }
  0xcb   : > { %vm761_vm15 = vmor %vm759_vm13, %vm760_vm14  ;;  %vm770_vm2 = vweird.f32 %v4900_v17  ;;  %4058 = vrsqrt.f32 %v4941_v60 }
  0xcc   : > { %3876 = vmatmul.msk.f32.gmra.mxu0 %vm356_vm0, %v1259_v52  ;;  %v735_v52 = vmul.f32 %v4824_v31, %v734_v43  ;;  %v728_v18 = vmul.f32 %v4804_v22, %v727_v27  ;;  %v755_v21 = vmul.f32 %v4872_v15, %v754_v19  ;;  %v764_v43 = vmul.f32 %v4900_v17, %v4863_v7  ;;  %vm771_vm3 = vmor %vm769_vm1, %vm770_vm2 }
  0xce   : > { %v736_v57 = vmul.f32 0.5, %v735_v52  ;;  %v732_v14 = vsel %vm4852_vm6, %v4804_v22, %v728_v18  ;;  %v331_v22 = vmul.f32 %v267_v6, %v267_v6  ;;  %v756_v10 = vmul.f32 0.5, %v755_v21 }
  0xcf   : > { %v1264_v16 = vmul.f32 %v732_v14, %v4566_v29  ;;  %v1793_v29 = vld [vmem:[%s6992_s3 + $0x18] sm:$0xff]  ;;  %v765_v52 = vmul.f32 %v4900_v17, %v764_v43  ;;  %481 = vadd.xlane.f32.xlu2 %v480_v23  ;;  %v416_v14 = vpop.xlane.xlu1 %415  ;;  %v273_v23 = vld [vmem:[%s4503_s24 + $0x168] sm:$0xff] }
  0xd0   : > { %v474_v26 = vsel %vm356_vm0, %v331_v22, 0.0  ;;  %v757_v27 = vsub.f32 1.5, %v756_v10  ;;  %v4958_v42 = vmax.f32 %v416_v14, 1e-24 }
  0xd1   : > { %475 = vadd.xlane.f32.xlu0 %v474_v26 }
  0xd2   : > { %v758_v18 = vmul.f32 %v4872_v15, %v757_v27  ;;  %4060 = vrsqrt.f32 %v4958_v42  ;;  %vm809_vm14 = vweird.f32 %v4958_v42 }
  0xd4   : > { %3877 = vmatmul.msk.f32.gmra.mxu0 %vm356_vm0, %v1260_v8  ;;  %v737_v8 = vsub.f32 1.5, %v736_v57  ;;  %v766_v57 = vmul.f32 0.5, %v765_v52  ;;  %v762_v28 = vsel %vm761_vm15, %v4872_v15, %v758_v18 }
  0xd5   : > { %v1267_v0 = vmul.f32 %v762_v28, %v4584_v38  ;;  %v337_v28 = vmul.f32 %v273_v23, %v273_v23 }
  0xd6   : > { %v738_v4 = vmul.f32 %v4824_v31, %v737_v8  ;;  %v767_v37 = vsub.f32 1.5, %v766_v57  ;;  %v270_v8 = vld [vmem:[%s4503_s24 + $0x150] sm:$0xff] }
  0xd7   : > { %v334_v6 = vmul.f32 %v270_v8, %v270_v8  ;;  %v425_v57 = vpop.xlane.xlu1 %424 }
  0xd8   : > { %v742_v33 = vsel %vm4883_vm9, %v4824_v31, %v738_v4  ;;  %v1791_v31 = vld [vmem:[%s6992_s3 + $0x8] sm:$0xff]  ;;  %vm1802_vm9 = vcmask 523264  }
  0xd9   : > { %v1265_v39 = vmul.f32 %v742_v33, %v4578_v36  ;;  %v1790_v36 = vld [vmem:[%s6992_s3] sm:$0xff]  ;;  %v483_v7 = vsel %vm356_vm0, %v334_v6, 0.0 }
  0xda   : > { %484 = vadd.xlane.f32.xlu0 %v483_v7 }
  0xdc   : > { %3878 = vmatmul.msk.f32.gmra.mxu0 %vm356_vm0, %v1261_v13  ;;  %v1794_v13 = vld [vmem:[%s6992_s3 + $0x20] sm:$0xff] }
  0xdd   : > { %2006 = vmatpush.msra.mxu1 %v1794_v13  ;;  %4007 = vmatpush.msra.mxu2 %v1794_v13 }
  0xdf   : > { %2007 = vmatpush.msra.mxu1 %v1793_v29  ;;  %4008 = vmatpush.msra.mxu2 %v1793_v29  ;;  %v419_v29 = vpop.xlane.xlu2 %418 }
  0xe0   : > { %v4973_v33 = vmax.f32 %v419_v29, 1e-24 }
  0xe1   : > { %2008 = vmatpush.msra.mxu1 %v1792_v20  ;;  %4009 = vmatpush.msra.mxu2 %v1792_v20 }
  0xe2   : > { %4062 = vrsqrt.f32 %v4973_v33  ;;  %vm819_vm2 = vweird.f32 %v4973_v33 }
  0xe3   : > { %2009 = vmatpush.msra.mxu1 %v1791_v31  ;;  %4010 = vmatpush.msra.mxu2 %v1791_v31  ;;  %v422_v31 = vpop.xlane.xlu0 %421 }
  0xe4   : > { %3879 = vmatmul.msk.f32.gmra.mxu0 %vm356_vm0, %v1262_v40  ;;  %v268_v40 = vld [vmem:[%s4503_s24 + $0x140] sm:$0xff]  ;;  %v5002_v53 = vmax.f32 %v422_v31, 1e-24 }
  0xe5   : > { %v332_v47 = vmul.f32 %v268_v40, %v268_v40  ;;  %2010 = vmatpush.msra.mxu1 %v1790_v36  ;;  %4011 = vmatpush.msra.mxu2 %v1790_v36 }
  0xe6   : > { %4064 = vrsqrt.f32 %v5002_v53 }
  0xe7   : > { %v477_v1 = vsel %vm356_vm0, %v332_v47, 0.0 }
  0xe8   : > { %478 = vadd.xlane.f32.xlu1 %v477_v1  ;;  %v336_v1 = vmul.f32 %v272_v44, %v272_v44 }
  0xeb   : > { %v5012_v41 = vpop.xlane.xlu0 %430 }
  0xec   : > { %3880 = vmatmul.msk.f32.gmra.mxu0 %vm356_vm0, %v1263_v48  ;;  %v4929_v48 = vpop.eup %4054 }
  0xed   : > { %v774_v58 = vmul.f32 %v4929_v48, %v4894_v5  ;;  %v4943_v62 = vpop.eup %4056  ;;  %vm780_vm5 = vweird.f32 %v4929_v48  ;;  %v486_v5 = vsel %vm356_vm0, %v335_v30, 0.0 }
  0xee   : > { %v784_v63 = vmul.f32 %v4943_v62, %v4924_v50  ;;  %v4961_v9 = vpop.eup %4058  ;;  %vm781_vm6 = vmor %vm779_vm4, %vm780_vm5  ;;  %vm790_vm8 = vweird.f32 %v4943_v62  ;;  %vm829_vm5 = vweird.f32 %v5002_v53 }
  0xef   : > { %v775_v61 = vmul.f32 %v4929_v48, %v774_v58  ;;  %v794_v13 = vmul.f32 %v4961_v9, %v4941_v60  ;;  %vm4996_vm10 = vmor %vm789_vm7, %vm790_vm8  ;;  %vm800_vm12 = vweird.f32 %v4961_v9  ;;  %v428_v60 = vpop.xlane.xlu2 %427 }
  0xf0   : > { %v785_v15 = vmul.f32 %v4943_v62, %v784_v63  ;;  %487 = vadd.xlane.f32.xlu1 %v486_v5  ;;  %vm5026_vm13 = vmor %vm799_vm11, %vm800_vm12 }
  0xf1   : > { %v776_v12 = vmul.f32 0.5, %v775_v61 }
  0xf2   : > { %v786_v4 = vmul.f32 0.5, %v785_v15 }
  0xf3   : > { %v777_v19 = vsub.f32 1.5, %v776_v12 }
  0xf4   : > { %3881 = vmatmul.msk.f32.gmra.mxu0 %vm356_vm0, %v1264_v16  ;;  %v768_v16 = vmul.f32 %v4900_v17, %v767_v37  ;;  %v787_v21 = vsub.f32 1.5, %v786_v4 }
  0xf5   : > { %v778_v26 = vmul.f32 %v4929_v48, %v777_v19 }
  0xf6   : > { %v772_v38 = vsel %vm771_vm3, %v4900_v17, %v768_v16  ;;  %v795_v17 = vmul.f32 %v4961_v9, %v794_v13  ;;  %v788_v43 = vmul.f32 %v4943_v62, %v787_v21 }
  0xf7   : > { %v1268_v22 = vmul.f32 %v772_v38, %v4596_v45  ;;  %v4978_v45 = vld [vmem:[%s6991_s2] ss:$0 sm:$0xff]  ;;  %v782_v20 = vsel %vm781_vm6, %v4929_v48, %v778_v26 }
  0xf8   : > { %v1269_v10 = vmul.f32 %v782_v20, %v4599_v46  ;;  %v796_v47 = vmul.f32 0.5, %v795_v17  ;;  %v489_v46 = vsel %vm356_vm0, %v336_v1, 0.0  ;;  %v792_v49 = vsel %vm4996_vm10, %v4943_v62, %v788_v43 }
  0xf9   : > { %490 = vadd.xlane.f32.xlu2 %v489_v46  ;;  %v1270_v55 = vmul.f32 %v792_v49, %v4608_v51  ;;  %v492_v51 = vsel %vm356_vm0, %v337_v28, 0.0 }
  0xfa   : > { %v797_v48 = vsub.f32 1.5, %v796_v47  ;;  %493 = vadd.xlane.f32.xlu0 %v492_v51 }
  0xfc   : > { %3882 = vmatmul.msk.f32.gmra.mxu0 %vm356_vm0, %v1265_v39  ;;  %v4982_v39 = vpop.eup %4060  ;;  %v798_v61 = vmul.f32 %v4961_v9, %v797_v48  ;;  %v5086_v48 = vmax.f32 %v5012_v41, 1e-24 }
  0xfd   : > { %v804_v36 = vmul.f32 %v4982_v39, %v4958_v42  ;;  %v5008_v50 = vpop.eup %4062  ;;  %vm810_vm15 = vweird.f32 %v4982_v39  ;;  %v5050_v42 = vmax.f32 %v428_v60, 1e-24 }
  0xfe   : > { %v814_v62 = vmul.f32 %v5008_v50, %v4973_v33  ;;  %v802_v16 = vsel %vm5026_vm13, %v4961_v9, %v798_v61  ;;  %v5036_v6 = vpop.eup %4064  ;;  %vm5052_vm1 = vmor %vm809_vm14, %vm810_vm15  ;;  %vm820_vm3 = vweird.f32 %v5008_v50 }
  0xff   : > { %v1271_v4 = vmul.f32 %v802_v16, %v4614_v54  ;;  %v824_v9 = vmul.f32 %v5036_v6, %v5002_v53  ;;  %vm5080_vm4 = vmor %vm819_vm2, %vm820_vm3  ;;  %vm830_vm6 = vweird.f32 %v5036_v6  ;;  %vm849_vm12 = vweird.f32 %v5050_v42 }
 0x100   : > { %v815_v14 = vmul.f32 %v5008_v50, %v814_v62  ;;  %vm5112_vm7 = vmor %vm829_vm5, %vm830_vm6  ;;  %vm859_vm3 = vweird.f32 %v5086_v48 }
 0x101   : > { %v825_v17 = vmul.f32 %v5036_v6, %v824_v9 }
 0x102   : > { %v816_v3 = vmul.f32 0.5, %v815_v14 }
 0x104   : > { %3883 = vmatmul.msk.f32.gmra.mxu0 %vm356_vm0, %v1266_v35  ;;  %v805_v35 = vmul.f32 %v4982_v39, %v804_v36  ;;  %v817_v21 = vsub.f32 1.5, %v816_v3  ;;  %v826_v36 = vmul.f32 0.5, %v825_v17  ;;  %v277_v17 = vld [vmem:[%s4503_s24 + $0x188] sm:$0xff] }
 0x106   : > { %v806_v37 = vmul.f32 0.5, %v805_v35  ;;  %v818_v1 = vmul.f32 %v5008_v50, %v817_v21  ;;  %v827_v49 = vsub.f32 1.5, %v826_v36  ;;  %v341_v36 = vmul.f32 %v277_v17, %v277_v17  ;;  %v279_v17 = vld [vmem:[%s4503_s24 + $0x198] sm:$0xff] }
 0x107   : > { %v434_v7 = vpop.xlane.xlu1 %433 }
 0x108   : > { %v807_v12 = vsub.f32 1.5, %v806_v37  ;;  %v5106_v61 = vmax.f32 %v434_v7, 1e-24  ;;  %v828_v28 = vmul.f32 %v5036_v6, %v827_v49 }
 0x10a   : > { %v808_v13 = vmul.f32 %v4982_v39, %v807_v12  ;;  %v276_v12 = vld [vmem:[%s4503_s24 + $0x180] sm:$0xff]  ;;  %v832_v53 = vsel %vm5112_vm7, %v5036_v6, %v828_v28 }
 0x10b   : > { %v340_v60 = vmul.f32 %v276_v12, %v276_v12 }
 0x10c   : > { %3884 = vmatmul.msk.f32.gmra.mxu0 %vm356_vm0, %v1267_v0  ;;  %v5022_v0 = vmax.f32 %v425_v57, 1e-24  ;;  %v812_v20 = vsel %vm5052_vm1, %v4982_v39, %v808_v13  ;;  %v275_v39 = vld [vmem:[%s4503_s24 + $0x178] sm:$0xff]  ;;  %v822_v57 = vsel %vm5080_vm4, %v5008_v50, %v818_v1  ;;  %v4406_v13 = vld [vmem:[%s4503_s24 + $0xa8] sm:$0xff]  ;;  %v4407_v1 = vld [vmem:[%s4503_s24 + $0xb0] sm:$0xff] }
 0x10d   : > { %v1272_v44 = vmul.f32 %v812_v20, %v4626_v59  ;;  %v1273_v37 = vmul.f32 %v822_v57, %v4638_v2 }
 0x10e   : > { %4066 = vrsqrt.f32 %v5022_v0  ;;  %vm839_vm8 = vweird.f32 %v5022_v0 }
 0x10f   : > { %4068 = vrsqrt.f32 %v5050_v42 }
 0x110   : > { %4070 = vrsqrt.f32 %v5086_v48 }
 0x113   : > { %v5041_v19 = vpop.xlane.xlu0 %439 }
 0x114   : > { %3885 = vmatmul.msk.f32.gmra.mxu0 %vm356_vm0, %v1268_v22  ;;  %v274_v22 = vld [vmem:[%s4503_s24 + $0x170] sm:$0xff]  ;;  %v5057_v54 = vpop.eup %4066  ;;  %v5181_v8 = vmax.f32 %v5041_v19, 1e-24 }
 0x115   : > { %v338_v29 = vmul.f32 %v274_v22, %v274_v22  ;;  %v834_v31 = vmul.f32 %v5057_v54, %v5022_v0  ;;  %v5089_v35 = vpop.eup %4068  ;;  %vm840_vm10 = vweird.f32 %v5057_v54 }
 0x116   : > { %v844_v41 = vmul.f32 %v5089_v35, %v5050_v42  ;;  %v5123_v16 = vpop.eup %4070  ;;  %vm5140_vm11 = vmor %vm839_vm8, %vm840_vm10  ;;  %vm850_vm13 = vweird.f32 %v5089_v35  ;;  %vm869_vm10 = vweird.f32 %v5106_v61 }
 0x117   : > { %v495_v5 = vsel %vm356_vm0, %v338_v29, 0.0  ;;  %v835_v46 = vmul.f32 %v5057_v54, %v834_v31  ;;  %v854_v3 = vmul.f32 %v5123_v16, %v5086_v48  ;;  %v1274_v29 = vmul.f32 %v4406_v13, %v832_v53  ;;  %vm5175_vm15 = vmor %vm849_vm12, %vm850_vm13 }
 0x118   : > { %496 = vadd.xlane.f32.xlu1 %v495_v5  ;;  %v845_v14 = vmul.f32 %v5089_v35, %v844_v41  ;;  %v278_v41 = vld [vmem:[%s4503_s24 + $0x190] sm:$0xff]  ;;  %vm860_vm4 = vweird.f32 %v5123_v16 }
 0x119   : > { %v1534_v32 = vpop.f32.mrf.mxu0  ;;  %vm5218_vm6 = vmor %vm859_vm3, %vm860_vm4 }
 0x11a   : > { %v1535_v40 = vadd.f32 %v4978_v45, %v1534_v32  ;;  %v5065_v32 = vpop.xlane.xlu2 %436  ;;  %v846_v7 = vmul.f32 0.5, %v845_v14 }
 0x11b   : > { %v5075_v47 = vpop.xlane.xlu0 %448 }
 0x11c   : > { %v1726_v27 = vmax.f32 %v1535_v40, 0.0  ;;  %3886 = vmatmul.msk.f32.gmra.mxu0 %vm356_vm0, %v1269_v10  ;;  %v5071_v10 = vpop.xlane.xlu1 %442  ;;  %v847_v31 = vsub.f32 1.5, %v846_v7 }
 0x11e   : > { %3934 = vmatmul.msk.f32.vlgmr.msra.gmra.mxu1 %vm1802_vm9, %v1726_v27  ;;  %v339_v27 = vmul.f32 %v275_v39, %v275_v39 }
 0x120   : > { %v498_v59 = vsel %vm356_vm0, %v339_v27, 0.0 }
 0x121   : > { %v1537_v58 = vpop.f32.mrf.mxu0  ;;  %499 = vadd.xlane.f32.xlu2 %v498_v59 }
 0x122   : > { %v1538_v18 = vadd.f32 %v4978_v45, %v1537_v58  ;;  %v836_v58 = vmul.f32 0.5, %v835_v46  ;;  %v504_v46 = vsel %vm356_vm0, %v341_v36, 0.0 }
 0x123   : > { %v458_v50 = vpop.xlane.xlu0 %457  ;;  %505 = vadd.xlane.f32.xlu1 %v504_v46 }
 0x124   : > { %v1727_v63 = vmax.f32 %v1538_v18, 0.0  ;;  %3887 = vmatmul.msk.f32.gmra.mxu0 %vm356_vm0, %v1270_v55  ;;  %v5100_v55 = vpop.xlane.xlu2 %445  ;;  %v5104_v62 = vpop.xlane.xlu1 %451  ;;  %v5116_v51 = vmax.f32 %v458_v50, 1e-24  ;;  %v837_v2 = vsub.f32 1.5, %v836_v58 }
 0x126   : > { %3935 = vmatmul.msk.f32.gmra.mxu1 %vm1802_vm9, %v1727_v63  ;;  %4072 = vrsqrt.f32 %v5116_v51  ;;  %vm949_vm14 = vweird.f32 %v5116_v51 }
 0x127   : > { %4074 = vrsqrt.f32 %v5106_v61 }
 0x129   : > { %v1540_v15 = vpop.f32.mrf.mxu0 }
 0x12a   : > { %v1541_v38 = vadd.f32 %v4978_v45, %v1540_v15 }
 0x12b   : > { %v467_v13 = vpop.xlane.xlu0 %466 }
 0x12c   : > { %v1728_v26 = vmax.f32 %v1541_v38, 0.0  ;;  %3888 = vmatmul.msk.f32.gmra.mxu0 %vm356_vm0, %v1271_v4  ;;  %v838_v38 = vmul.f32 %v5057_v54, %v837_v2  ;;  %v501_v4 = vsel %vm356_vm0, %v340_v60, 0.0  ;;  %v5132_v22 = vpop.xlane.xlu2 %454  ;;  %v4073_v5 = vpop.eup %4072 }
 0x12d   : > { %502 = vadd.xlane.f32.xlu0 %v501_v4  ;;  %v5148_v20 = vpop.eup %4074  ;;  %vm950_vm1 = vweird.f32 %v4073_v5  ;;  %v4408_v4 = vld [vmem:[%s4503_s24 + $0xb8] sm:$0xff] }
 0x12e   : > { %3936 = vmatmul.msk.f32.gmra.mxu1 %vm1802_vm9, %v1728_v26  ;;  %v461_v26 = vpop.xlane.xlu1 %460  ;;  %v842_v0 = vsel %vm5140_vm11, %v5057_v54, %v838_v38  ;;  %vm5189_vm2 = vmor %vm949_vm14, %vm950_vm1  ;;  %vm870_vm11 = vweird.f32 %v5148_v20 }
 0x12f   : > { %v5144_v30 = vmax.f32 %v461_v26, 1e-24  ;;  %v1275_v27 = vmul.f32 %v4407_v1, %v842_v0  ;;  %vm5246_vm12 = vmor %vm869_vm10, %vm870_vm11 }
 0x131   : > { %v1543_v40 = vpop.f32.mrf.mxu0  ;;  %4076 = vrsqrt.f32 %v5144_v30  ;;  %vm959_vm5 = vweird.f32 %v5144_v30 }
 0x132   : > { %v1544_v43 = vadd.f32 %v4978_v45, %v1543_v40  ;;  %v5151_v40 = vmax.f32 %v5065_v32, 1e-24  ;;  %v864_v32 = vmul.f32 %v5148_v20, %v5106_v61 }
 0x134   : > { %v1729_v33 = vmax.f32 %v1544_v43, 0.0  ;;  %3889 = vmatmul.msk.f32.gmra.mxu0 %vm356_vm0, %v1272_v44  ;;  %v944_v43 = vmul.f32 %v4073_v5, %v5116_v51  ;;  %v855_v44 = vmul.f32 %v5123_v16, %v854_v3  ;;  %4078 = vrsqrt.f32 %v5151_v40  ;;  %v464_v59 = vpop.xlane.xlu2 %463 }
 0x135   : > { %v5170_v58 = vmax.f32 %v464_v59, 1e-24  ;;  %v865_v28 = vmul.f32 %v5148_v20, %v864_v32  ;;  %vm879_vm1 = vweird.f32 %v5151_v40 }
 0x136   : > { %3937 = vmatmul.msk.f32.gmra.mxu1 %vm1802_vm9, %v1729_v33  ;;  %v945_v39 = vmul.f32 %v4073_v5, %v944_v43  ;;  %v848_v33 = vmul.f32 %v5089_v35, %v847_v31  ;;  %v856_v49 = vmul.f32 0.5, %v855_v44  ;;  %v343_v43 = vmul.f32 %v279_v17, %v279_v17 }
 0x137   : > { %v4077_v50 = vpop.eup %4076  ;;  %4080 = vrsqrt.f32 %v5170_v58  ;;  %v866_v51 = vmul.f32 0.5, %v865_v28  ;;  %vm969_vm13 = vweird.f32 %v5170_v58  ;;  %v280_v28 = vld [vmem:[%s4503_s24 + $0x1a0] sm:$0xff]  ;;  %v5291_v17 = vmax.f32 %v5075_v47, 1e-24 }
 0x138   : > { %v946_v52 = vmul.f32 0.5, %v945_v39  ;;  %v954_v12 = vmul.f32 %v4077_v50, %v5144_v30  ;;  %v857_v14 = vsub.f32 1.5, %v856_v49  ;;  %v852_v19 = vsel %vm5175_vm15, %v5089_v35, %v848_v33 }
 0x139   : > { %v1546_v18 = vpop.f32.mrf.mxu0  ;;  %4082 = vrsqrt.f32 %v5181_v8  ;;  %v1276_v3 = vmul.f32 %v4408_v4, %v852_v19  ;;  %vm960_vm7 = vweird.f32 %v4077_v50  ;;  %v867_v44 = vsub.f32 1.5, %v866_v51 }
 0x13a   : > { %v1547_v23 = vadd.f32 %v4978_v45, %v1546_v18  ;;  %v5197_v60 = vpop.eup %4078  ;;  %v955_v7 = vmul.f32 %v4077_v50, %v954_v12  ;;  %vm961_vm8 = vmor %vm959_vm5, %vm960_vm7  ;;  %v470_v18 = vpop.xlane.xlu1 %469  ;;  %v344_v12 = vmul.f32 %v280_v28, %v280_v28  ;;  %vm889_vm7 = vweird.f32 %v5181_v8 }
 0x13b   : > { %v874_v6 = vmul.f32 %v5197_v60, %v5151_v40  ;;  %v868_v33 = vmul.f32 %v5148_v20, %v867_v44  ;;  %v5257_v61 = vmax.f32 %v470_v18, 1e-24 }
 0x13c   : > { %v1730_v63 = vmax.f32 %v1547_v23, 0.0  ;;  %3890 = vmatmul.msk.f32.gmra.mxu0 %vm356_vm0, %v1273_v37  ;;  %v947_v23 = vsub.f32 1.5, %v946_v52  ;;  %v342_v37 = vmul.f32 %v278_v41, %v278_v41  ;;  %v956_v35 = vmul.f32 0.5, %v955_v7 }
 0x13d   : > { %v875_v1 = vmul.f32 %v5197_v60, %v874_v6  ;;  %v872_v2 = vsel %vm5246_vm12, %v5148_v20, %v868_v33  ;;  %v5274_v7 = vmax.f32 %v5100_v55, 1e-24  ;;  %v473_v6 = vpop.xlane.xlu2 %472  ;;  %vm989_vm10 = vweird.f32 %v5257_v61 }
 0x13e   : > { %3938 = vmatmul.msk.f32.gmra.mxu1 %vm1802_vm9, %v1730_v63  ;;  %v507_v42 = vsel %vm356_vm0, %v342_v37, 0.0  ;;  %v948_v53 = vmul.f32 %v4073_v5, %v947_v23  ;;  %v957_v0 = vsub.f32 1.5, %v956_v35  ;;  %v5294_v31 = vmax.f32 %v473_v6, 1e-24 }
 0x13f   : > { %508 = vadd.xlane.f32.xlu2 %v507_v42  ;;  %v876_v37 = vmul.f32 0.5, %v875_v1 }
 0x140   : > { %v958_v48 = vmul.f32 %v4077_v50, %v957_v0  ;;  %v281_v0 = vld [vmem:[%s4503_s24 + $0x1a8] sm:$0xff] }
 0x141   : > { %v1549_v15 = vpop.f32.mrf.mxu0  ;;  %v345_v47 = vmul.f32 %v281_v0, %v281_v0 }
 0x142   : > { %v1550_v9 = vadd.f32 %v4978_v45, %v1549_v15  ;;  %v952_v15 = vsel %vm5189_vm2, %v4073_v5, %v948_v53  ;;  %v4081_v5 = vpop.eup %4080  ;;  %vm880_vm2 = vweird.f32 %v5197_v60 }
 0x143   : > { %v964_v36 = vmul.f32 %v4081_v5, %v5170_v58  ;;  %v5233_v32 = vpop.eup %4082  ;;  %vm970_vm14 = vweird.f32 %v4081_v5  ;;  %vm5301_vm4 = vmor %vm879_vm1, %vm880_vm2  ;;  %vm999_vm1 = vweird.f32 %v5294_v31 }
 0x144   : > { %v1731_v21 = vmax.f32 %v1550_v9, 0.0  ;;  %3891 = vmatmul.msk.f32.gmra.mxu0 %vm356_vm0, %v1274_v29  ;;  %v1286_v9 = vmul.f32 %v952_v15, %v4751_v34  ;;  %v858_v29 = vmul.f32 %v5123_v16, %v857_v14  ;;  %v5223_v34 = vmax.f32 %v5071_v10, 1e-24  ;;  %vm971_vm15 = vmor %vm969_vm13, %vm970_vm14  ;;  %v476_v18 = vpop.xlane.xlu0 %475 }
 0x145   : > { %v510_v10 = vsel %vm356_vm0, %v343_v43, 0.0  ;;  %v965_v30 = vmul.f32 %v4081_v5, %v964_v36  ;;  %v513_v15 = vsel %vm356_vm0, %v344_v12, 0.0  ;;  %v5341_v28 = vmax.f32 %v476_v18, 1e-24 }
 0x146   : > { %3939 = vmatmul.msk.f32.gmra.mxu1 %vm1802_vm9, %v1731_v21  ;;  %v5211_v21 = vmax.f32 %v467_v13, 1e-24  ;;  %3903 = vmatmul.msk.f32.vlgmr.msra.gmra.mxu3 %vm356_vm0, %v1286_v9  ;;  %vm899_vm14 = vweird.f32 %v5223_v34  ;;  %v5431_v18 = vmax.f32 %v5132_v22, 1e-24 }
 0x147   : > { %511 = vadd.xlane.f32.xlu0 %v510_v10  ;;  %v966_v52 = vmul.f32 0.5, %v965_v30  ;;  %514 = vadd.xlane.f32.xlu1 %v513_v15  ;;  %v516_v30 = vsel %vm356_vm0, %v345_v47, 0.0 }
 0x148   : > { %4084 = vrsqrt.f32 %v5211_v21  ;;  %vm979_vm3 = vweird.f32 %v5211_v21  ;;  %517 = vadd.xlane.f32.xlu2 %v516_v30 }
 0x149   : > { %v1552_v54 = vpop.f32.mrf.mxu0  ;;  %4086 = vrsqrt.f32 %v5223_v34 }
 0x14a   : > { %v1553_v57 = vadd.f32 %v4978_v45, %v1552_v54  ;;  %v962_v54 = vsel %vm961_vm8, %v4077_v50, %v958_v48  ;;  %v967_v50 = vsub.f32 1.5, %v966_v52  ;;  %4088 = vrsqrt.f32 %v5257_v61 }
 0x14b   : > { %v1287_v46 = vmul.f32 %v962_v54, %v4775_v56  ;;  %4090 = vrsqrt.f32 %v5274_v7  ;;  %vm890_vm8 = vweird.f32 %v5233_v32 }
 0x14c   : > { %v1732_v63 = vmax.f32 %v1553_v57, 0.0  ;;  %3892 = vmatmul.msk.f32.gmra.mxu0 %vm356_vm0, %v1275_v27  ;;  %v862_v27 = vsel %vm5218_vm6, %v5123_v16, %v858_v29  ;;  %v884_v16 = vmul.f32 %v5233_v32, %v5181_v8  ;;  %v4409_v57 = vld [vmem:[%s4503_s24 + $0xc0] sm:$0xff]  ;;  %v968_v14 = vmul.f32 %v4081_v5, %v967_v50  ;;  %vm5350_vm11 = vmor %vm889_vm7, %vm890_vm8 }
 0x14d   : > { %v1277_v41 = vmul.f32 %v4409_v57, %v862_v27  ;;  %4092 = vrsqrt.f32 %v5294_v31  ;;  %v5332_v57 = vmax.f32 %v5104_v62, 1e-24  ;;  %v5344_v62 = vld [vmem:[%s4503_s24 + $0x1b0] sm:$0xff]  ;;  %vm1009_vm7 = vweird.f32 %v5341_v28 }
 0x14e   : > { %3940 = vmatmul.msk.f32.gmra.mxu1 %vm1802_vm9, %v1732_v63  ;;  %v5254_v23 = vpop.eup %4084  ;;  %3904 = vmatmul.msk.f32.gmra.mxu3 %vm356_vm0, %v1287_v46  ;;  %v885_v53 = vmul.f32 %v5233_v32, %v884_v16  ;;  %v972_v20 = vsel %vm971_vm15, %v4081_v5, %v968_v14  ;;  %4094 = vrsqrt.f32 %v5291_v17  ;;  %v286_v14 = vld [vmem:[%s4503_s24 + $0x1d0] sm:$0xff] }
 0x14f   : > { %v974_v63 = vmul.f32 %v5254_v23, %v5211_v21  ;;  %v5270_v19 = vpop.eup %4086  ;;  %v1288_v58 = vmul.f32 %v972_v20, %v4793_v11  ;;  %vm980_vm5 = vweird.f32 %v5254_v23  ;;  %4096 = vrsqrt.f32 %v5341_v28 }
 0x150   : > { %v894_v55 = vmul.f32 %v5270_v19, %v5223_v34  ;;  %v886_v9 = vmul.f32 0.5, %v885_v53  ;;  %v5287_v11 = vpop.eup %4088  ;;  %vm981_vm6 = vmor %vm979_vm3, %vm980_vm5  ;;  %vm900_vm15 = vweird.f32 %v5270_v19  ;;  %4098 = vrsqrt.f32 %v5332_v57 }
 0x151   : > { %v1555_v38 = vpop.f32.mrf.mxu0  ;;  %v975_v51 = vmul.f32 %v5254_v23, %v974_v63  ;;  %v984_v44 = vmul.f32 %v5287_v11, %v5257_v61  ;;  %v5321_v52 = vpop.eup %4090  ;;  %vm990_vm12 = vweird.f32 %v5287_v11  ;;  %vm5399_vm2 = vmor %vm899_vm14, %vm900_vm15  ;;  %vm909_vm5 = vweird.f32 %v5274_v7 }
 0x152   : > { %v1556_v26 = vadd.f32 %v4978_v45, %v1555_v38  ;;  %v877_v38 = vsub.f32 1.5, %v876_v37  ;;  %v895_v10 = vmul.f32 %v5270_v19, %v894_v55  ;;  %v887_v1 = vsub.f32 1.5, %v886_v9  ;;  %vm5367_vm13 = vmor %vm989_vm10, %vm990_vm12 }
 0x153   : > { %v976_v4 = vmul.f32 0.5, %v975_v51  ;;  %v985_v27 = vmul.f32 %v5287_v11, %v984_v44  ;;  %v350_v55 = vmul.f32 %v286_v14, %v286_v14  ;;  %vm919_vm12 = vweird.f32 %v5291_v17 }
 0x154   : > { %v1733_v39 = vmax.f32 %v1556_v26, 0.0  ;;  %3893 = vmatmul.msk.f32.gmra.mxu0 %vm356_vm0, %v1276_v3  ;;  %v4410_v3 = vld [vmem:[%s4503_s24 + $0xc8] sm:$0xff]  ;;  %v878_v26 = vmul.f32 %v5197_v60, %v877_v38  ;;  %v896_v16 = vmul.f32 0.5, %v895_v10 }
 0x155   : > { %v1278_v35 = vmul.f32 %v4410_v3, %v872_v2  ;;  %v977_v29 = vsub.f32 1.5, %v976_v4  ;;  %v986_v46 = vmul.f32 0.5, %v985_v27  ;;  %v284_v2 = vld [vmem:[%s4503_s24 + $0x1c0] sm:$0xff]  ;;  %v285_v27 = vld [vmem:[%s4503_s24 + $0x1c8] sm:$0xff] }
 0x156   : > { %3941 = vmatmul.msk.f32.gmra.mxu1 %vm1802_vm9, %v1733_v39  ;;  %3905 = vmatmul.msk.f32.gmra.mxu3 %vm356_vm0, %v1288_v58  ;;  %v283_v39 = vld [vmem:[%s4503_s24 + $0x1b8] sm:$0xff]  ;;  %v882_v21 = vsel %vm5301_vm4, %v5197_v60, %v878_v26  ;;  %v897_v51 = vsub.f32 1.5, %v896_v16  ;;  %v348_v15 = vmul.f32 %v284_v2, %v284_v2  ;;  %v349_v16 = vmul.f32 %v285_v27, %v285_v27  ;;  %v482_v2 = vpop.xlane.xlu2 %481 }
 0x157   : > { %v978_v36 = vmul.f32 %v5254_v23, %v977_v29  ;;  %v347_v40 = vmul.f32 %v283_v39, %v283_v39  ;;  %v987_v60 = vsub.f32 1.5, %v986_v46  ;;  %v531_v29 = vsel %vm356_vm0, %v350_v55, 0.0  ;;  %v4412_v39 = vld [vmem:[%s4503_s24 + $0xd8] sm:$0xff]  ;;  %v290_v55 = vld [vmem:[%s4503_s24 + $0x1f0] sm:$0xff] }
 0x158   : > { %v898_v26 = vmul.f32 %v5270_v19, %v897_v51  ;;  %v4414_v51 = vld [vmem:[%s4503_s24 + $0xe0] sm:$0xff] }
 0x159   : > { %v1558_v49 = vpop.f32.mrf.mxu0  ;;  %v982_v54 = vsel %vm981_vm6, %v5254_v23, %v978_v36  ;;  %v522_v33 = vsel %vm356_vm0, %v347_v40, 0.0  ;;  %v5335_v23 = vpop.eup %4092  ;;  %v988_v53 = vmul.f32 %v5287_v11, %v987_v60  ;;  %v287_v40 = vld [vmem:[%s4503_s24 + $0x1d8] sm:$0xff]  ;;  %vm910_vm6 = vweird.f32 %v5321_v52 }
 0x15a   : > { %v1559_v56 = vadd.f32 %v4978_v45, %v1558_v49  ;;  %523 = vadd.xlane.f32.xlu1 %v522_v33  ;;  %v1289_v59 = vmul.f32 %v982_v54, %v4811_v24  ;;  %v888_v49 = vmul.f32 %v5233_v32, %v887_v1  ;;  %v904_v24 = vmul.f32 %v5321_v52, %v5274_v7  ;;  %v5371_v20 = vpop.eup %4094  ;;  %v289_v1 = vld [vmem:[%s4503_s24 + $0x1e8] sm:$0xff]  ;;  %vm5458_vm8 = vmor %vm909_vm5, %vm910_vm6 }
 0x15b   : > { %v994_v12 = vmul.f32 %v5335_v23, %v5294_v31  ;;  %v992_v3 = vsel %vm5367_vm13, %v5287_v11, %v988_v53  ;;  %v914_v11 = vmul.f32 %v5371_v20, %v5291_v17  ;;  %v479_v0 = vpop.xlane.xlu1 %478  ;;  %v5393_v43 = vpop.eup %4096  ;;  %vm1000_vm3 = vweird.f32 %v5335_v23  ;;  %v4423_v17 = vld [vmem:[%s4503_s24 + $0x100] sm:$0xff] }
 0x15c   : > { %v1734_v42 = vmax.f32 %v1559_v56, 0.0  ;;  %3894 = vmatmul.msk.f32.gmra.mxu0 %vm356_vm0, %v1277_v41  ;;  %v4411_v56 = vld [vmem:[%s4503_s24 + $0xd0] sm:$0xff]  ;;  %v905_v61 = vmul.f32 %v5321_v52, %v904_v24  ;;  %v892_v9 = vsel %vm5350_vm11, %v5233_v32, %v888_v49  ;;  %v1290_v6 = vmul.f32 %v992_v3, %v4830_v25  ;;  %vm5420_vm4 = vmor %vm999_vm1, %vm1000_vm3  ;;  %v288_v3 = vld [vmem:[%s4503_s24 + $0x1e0] sm:$0xff] }
 0x15d   : > { %v1279_v50 = vmul.f32 %v4411_v56, %v882_v21  ;;  %v995_v4 = vmul.f32 %v5335_v23, %v994_v12  ;;  %v1280_v36 = vmul.f32 %v4412_v39, %v892_v9  ;;  %v5405_v10 = vmax.f32 %v479_v0, 1e-24  ;;  %v4415_v0 = vld [vmem:[%s4503_s24 + $0x138] sm:$0xff] }
 0x15e   : > { %3942 = vmatmul.msk.f32.gmra.mxu1 %vm1802_vm9, %v1734_v42  ;;  %3906 = vmatmul.msk.f32.gmra.mxu3 %vm356_vm0, %v1289_v59  ;;  %v346_v42 = vmul.f32 %v5344_v62, %v5344_v62  ;;  %v906_v44 = vmul.f32 0.5, %v905_v61  ;;  %v915_v30 = vmul.f32 %v5371_v20, %v914_v11  ;;  %v351_v33 = vmul.f32 %v287_v40, %v287_v40 }
 0x15f   : > { %4100 = vrsqrt.f32 %v5405_v10  ;;  %v353_v59 = vmul.f32 %v289_v1, %v289_v1  ;;  %v902_v31 = vsel %vm5399_vm2, %v5270_v19, %v898_v26  ;;  %vm1010_vm10 = vweird.f32 %v5393_v43  ;;  %v4416_v1 = vld [vmem:[%s4503_s24 + $0xe8] sm:$0xff] }
 0x160   : > { %v519_v58 = vsel %vm356_vm0, %v346_v42, 0.0  ;;  %v907_v60 = vsub.f32 1.5, %v906_v44  ;;  %v534_v24 = vsel %vm356_vm0, %v351_v33, 0.0  ;;  %v916_v22 = vmul.f32 0.5, %v915_v30  ;;  %vm1011_vm11 = vmor %vm1009_vm7, %vm1010_vm10  ;;  %v291_v33 = vld [vmem:[%s4503_s24 + $0x1f8] sm:$0xff] }
 0x161   : > { %v1561_v13 = vpop.f32.mrf.mxu0  ;;  %520 = vadd.xlane.f32.xlu0 %v519_v58  ;;  %v540_v56 = vsel %vm356_vm0, %v353_v59, 0.0  ;;  %4102 = vrsqrt.f32 %v5431_v18  ;;  %v354_v7 = vmul.f32 %v290_v55, %v290_v55  ;;  %vm920_vm13 = vweird.f32 %v5371_v20 }
 0x162   : > { %v1562_v5 = vadd.f32 %v4978_v45, %v1561_v13  ;;  %v996_v13 = vmul.f32 0.5, %v995_v4  ;;  %532 = vadd.xlane.f32.xlu1 %v531_v29  ;;  %v908_v38 = vmul.f32 %v5321_v52, %v907_v60  ;;  %v917_v9 = vsub.f32 1.5, %v916_v22  ;;  %vm5493_vm15 = vmor %vm919_vm12, %vm920_vm13 }
 0x163   : > { %v352_v29 = vmul.f32 %v288_v3, %v288_v3  ;;  %v543_v26 = vsel %vm356_vm0, %v354_v7, 0.0  ;;  %vm1019_vm14 = vweird.f32 %v5405_v10  ;;  %v355_v59 = vmul.f32 %v291_v33, %v291_v33  ;;  %v488_v22 = vpop.xlane.xlu1 %487 }
 0x164   : > { %v1735_v48 = vmax.f32 %v1562_v5, 0.0  ;;  %3895 = vmatmul.msk.f32.gmra.mxu0 %vm356_vm0, %v1278_v35  ;;  %v525_v35 = vsel %vm356_vm0, %v348_v15, 0.0  ;;  %v997_v32 = vsub.f32 1.5, %v996_v13  ;;  %v5451_v15 = vmax.f32 %v482_v2, 1e-24  ;;  %v4418_v2 = vld [vmem:[%s4503_s24 + $0xf0] sm:$0xff] }
 0x165   : > { %526 = vadd.xlane.f32.xlu2 %v525_v35  ;;  %vm929_vm3 = vweird.f32 %v5332_v57  ;;  %vm939_vm10 = vweird.f32 %v5431_v18 }
 0x166   : > { %3943 = vmatmul.msk.f32.gmra.mxu1 %vm1802_vm9, %v1735_v48  ;;  %v1004_v48 = vmul.f32 %v5393_v43, %v5341_v28  ;;  %3907 = vmatmul.msk.f32.gmra.mxu3 %vm356_vm0, %v1290_v6  ;;  %v998_v34 = vmul.f32 %v5335_v23, %v997_v32  ;;  %4104 = vrsqrt.f32 %v5451_v15  ;;  %v537_v28 = vsel %vm356_vm0, %v352_v29, 0.0 }
 0x167   : > { %vm1029_vm5 = vweird.f32 %v5451_v15 }
 0x168   : > { %v1005_v46 = vmul.f32 %v5393_v43, %v1004_v48  ;;  %v1002_v49 = vsel %vm5420_vm4, %v5335_v23, %v998_v34  ;;  %v528_v23 = vsel %vm356_vm0, %v349_v16, 0.0 }
 0x169   : > { %v1564_v41 = vpop.f32.mrf.mxu0  ;;  %529 = vadd.xlane.f32.xlu0 %v528_v23  ;;  %v4417_v23 = vld [vmem:[%s4503_s24 + $0x140] sm:$0xff] }
 0x16a   : > { %v1565_v37 = vadd.f32 %v4978_v45, %v1564_v41  ;;  %v5428_v41 = vpop.eup %4098  ;;  %541 = vadd.xlane.f32.xlu1 %v540_v56 }
 0x16b   : > { %v924_v19 = vmul.f32 %v5428_v41, %v5332_v57  ;;  %v5446_v14 = vpop.eup %4100  ;;  %vm930_vm4 = vweird.f32 %v5428_v41 }
 0x16c   : > { %v1736_v8 = vmax.f32 %v1565_v37, 0.0  ;;  %3896 = vmatmul.msk.f32.gmra.mxu0 %vm356_vm0, %v1279_v50  ;;  %v1006_v37 = vmul.f32 0.5, %v1005_v46  ;;  %v4413_v50 = vld [vmem:[%s4503_s24 + $0x130] sm:$0xff]  ;;  %v1014_v58 = vmul.f32 %v5446_v14, %v5405_v10  ;;  %v5483_v44 = vpop.eup %4102  ;;  %vm1020_vm1 = vweird.f32 %v5446_v14  ;;  %vm5524_vm6 = vmor %vm929_vm3, %vm930_vm4 }
 0x16d   : > { %535 = vadd.xlane.f32.xlu2 %v534_v24  ;;  %v1291_v63 = vmul.f32 %v4413_v50, %v1002_v49  ;;  %v925_v11 = vmul.f32 %v5428_v41, %v924_v19  ;;  %v934_v30 = vmul.f32 %v5483_v44, %v5431_v18  ;;  %vm1021_vm2 = vmor %vm1019_vm14, %vm1020_vm1 }
 0x16e   : > { %3944 = vmatmul.msk.f32.gmra.mxu1 %vm1802_vm9, %v1736_v8  ;;  %v1007_v42 = vsub.f32 1.5, %v1006_v37  ;;  %v1281_v8 = vmul.f32 %v4414_v51, %v902_v31  ;;  %v1015_v13 = vmul.f32 %v5446_v14, %v1014_v58  ;;  %v546_v31 = vsel %vm356_vm0, %v355_v59, 0.0 }
 0x16f   : > { %3908 = vmatmul.msk.f32.gmra.mxu3 %vm356_vm0, %v1291_v63  ;;  %v926_v48 = vmul.f32 0.5, %v925_v11  ;;  %v935_v24 = vmul.f32 %v5483_v44, %v934_v30  ;;  %v4420_v11 = vld [vmem:[%s4503_s24 + $0xf8] sm:$0xff] }
 0x170   : > { %v1008_v61 = vmul.f32 %v5393_v43, %v1007_v42  ;;  %v1016_v32 = vmul.f32 0.5, %v1015_v13  ;;  %v491_v13 = vpop.xlane.xlu2 %490 }
 0x171   : > { %v1567_v5 = vpop.f32.mrf.mxu0  ;;  %538 = vadd.xlane.f32.xlu0 %v537_v28  ;;  %v927_v60 = vsub.f32 1.5, %v926_v48  ;;  %v936_v57 = vmul.f32 0.5, %v935_v24 }
 0x172   : > { %v1568_v47 = vadd.f32 %v4978_v45, %v1567_v5  ;;  %v1012_v6 = vsel %vm1011_vm11, %v5393_v43, %v1008_v61  ;;  %v912_v5 = vsel %vm5458_vm8, %v5321_v52, %v908_v38  ;;  %v918_v43 = vmul.f32 %v5371_v20, %v917_v9  ;;  %v485_v52 = vpop.xlane.xlu0 %484 }
 0x173   : > { %v1292_v25 = vmul.f32 %v4415_v0, %v1012_v6  ;;  %v1017_v39 = vsub.f32 1.5, %v1016_v32  ;;  %v1282_v27 = vmul.f32 %v4416_v1, %v912_v5  ;;  %v5491_v34 = vmax.f32 %v485_v52, 1e-24 }
 0x174   : > { %v1737_v54 = vmax.f32 %v1568_v47, 0.0  ;;  %3897 = vmatmul.msk.f32.gmra.mxu0 %vm356_vm0, %v1280_v36  ;;  %v4105_v36 = vpop.eup %4104  ;;  %v922_v37 = vsel %vm5493_vm15, %v5371_v20, %v918_v43  ;;  %v937_v55 = vsub.f32 1.5, %v936_v57  ;;  %vm940_vm11 = vweird.f32 %v5483_v44 }
 0x175   : > { %544 = vadd.xlane.f32.xlu2 %v543_v26  ;;  %v1018_v21 = vmul.f32 %v5446_v14, %v1017_v39  ;;  %4106 = vrsqrt.f32 %v5491_v34  ;;  %v1283_v20 = vmul.f32 %v4418_v2, %v922_v37  ;;  %vm1030_vm7 = vweird.f32 %v4105_v36  ;;  %vm5547_vm13 = vmor %vm939_vm10, %vm940_vm11  ;;  %v4421_v39 = vld [vmem:[%s4503_s24 + $0x150] sm:$0xff]  ;;  %v4424_v37 = vld [vmem:[%s4503_s24 + $0x158] sm:$0xff] }
 0x176   : > { %3945 = vmatmul.msk.f32.gmra.mxu1 %vm1802_vm9, %v1737_v54  ;;  %v1024_v54 = vmul.f32 %v4105_v36, %v5451_v15  ;;  %vm1031_vm8 = vmor %vm1029_vm5, %vm1030_vm7  ;;  %vm1039_vm12 = vweird.f32 %v5491_v34  ;;  %v5544_v5 = vmax.f32 %v491_v13, 1e-24 }
 0x177   : > { %3909 = vmatmul.msk.f32.gmra.mxu3 %vm356_vm0, %v1292_v25  ;;  %v1022_v49 = vsel %vm1021_vm2, %v5446_v14, %v1018_v21  ;;  %v5522_v14 = vmax.f32 %v488_v22, 1e-24  ;;  %vm2204_vm2 = vcmask 130048  }
 0x178   : > { %v1025_v16 = vmul.f32 %v4105_v36, %v1024_v54  ;;  %v1293_v50 = vmul.f32 %v4417_v23, %v1022_v49  ;;  %vm1059_vm5 = vweird.f32 %v5544_v5 }
 0x179   : > { %v1570_v12 = vpop.f32.mrf.mxu0  ;;  %547 = vadd.xlane.f32.xlu0 %v546_v31  ;;  %4108 = vrsqrt.f32 %v5522_v14  ;;  %vm1049_vm1 = vweird.f32 %v5522_v14 }
 0x17a   : > { %v1571_v53 = vadd.f32 %v4978_v45, %v1570_v12  ;;  %v1026_v56 = vmul.f32 0.5, %v1025_v16  ;;  %v928_v12 = vmul.f32 %v5428_v41, %v927_v60  ;;  %4110 = vrsqrt.f32 %v5544_v5  ;;  %v494_v1 = vpop.xlane.xlu0 %493 }
 0x17b   : > { %v4107_v19 = vpop.eup %4106  ;;  %v594_v54 = vmax.f32 %v494_v1, 1e-24 }
 0x17c   : > { %v1738_v35 = vmax.f32 %v1571_v53, 0.0  ;;  %3898 = vmatmul.msk.f32.gmra.mxu0 %vm356_vm0, %v1281_v8  ;;  %v1027_v63 = vsub.f32 1.5, %v1026_v56  ;;  %v1034_v51 = vmul.f32 %v4107_v19, %v5491_v34  ;;  %v932_v3 = vsel %vm5524_vm6, %v5428_v41, %v928_v12  ;;  %v5571_v34 = vld [vmem:[%s6991_s2] ss:$0 sm:$0xff] }
 0x17d   : > { %v1284_v26 = vmul.f32 %v4420_v11, %v932_v3  ;;  %v938_v41 = vmul.f32 %v5483_v44, %v937_v55  ;;  %vm1040_vm14 = vweird.f32 %v4107_v19  ;;  %4112 = vrsqrt.f32 %v594_v54 }
 0x17e   : > { %3946 = vmatmul.msk.f32.gmra.mxu1 %vm1802_vm9, %v1738_v35  ;;  %v1028_v8 = vmul.f32 %v4105_v36, %v1027_v63  ;;  %v1035_v4 = vmul.f32 %v4107_v19, %v1034_v51  ;;  %v4419_v35 = vld [vmem:[%s4503_s24 + $0x148] sm:$0xff]  ;;  %vm1041_vm15 = vmor %vm1039_vm12, %vm1040_vm14 }
 0x17f   : > { %3910 = vmatmul.msk.f32.gmra.mxu3 %vm356_vm0, %v1293_v50  ;;  %v4109_v29 = vpop.eup %4108  ;;  %v942_v43 = vsel %vm5547_vm13, %v5483_v44, %v938_v41 }
 0x180   : > { %v1032_v58 = vsel %vm1031_vm8, %v4105_v36, %v1028_v8  ;;  %v1036_v61 = vmul.f32 0.5, %v1035_v4  ;;  %v1044_v18 = vmul.f32 %v4109_v29, %v5522_v14  ;;  %v5565_v36 = vld [vmem:[%s6993_s4] ss:$0 sm:$0xff]  ;;  %v1285_v30 = vmul.f32 %v4423_v17, %v942_v43 }
 0x181   : > { %v1573_v47 = vpop.f32.mrf.mxu0  ;;  %v1294_v7 = vmul.f32 %v4419_v35, %v1032_v58  ;;  %vm1050_vm3 = vweird.f32 %v4109_v29  ;;  %vm1069_vm8 = vweird.f32 %v594_v54 }
 0x182   : > { %v1574_v40 = vadd.f32 %v4978_v45, %v1573_v47  ;;  %v1037_v15 = vsub.f32 1.5, %v1036_v61  ;;  %vm1051_vm4 = vmor %vm1049_vm1, %vm1050_vm3 }
 0x184   : > { %v1739_v46 = vmax.f32 %v1574_v40, 0.0  ;;  %3899 = vmatmul.msk.f32.gmra.mxu0 %vm356_vm0, %v1282_v27  ;;  %v1038_v28 = vmul.f32 %v4107_v19, %v1037_v15  ;;  %v4111_v27 = vpop.eup %4110 }
 0x185   : > { %v1054_v21 = vmul.f32 %v4111_v27, %v5544_v5  ;;  %v4113_v63 = vpop.eup %4112  ;;  %vm1060_vm6 = vweird.f32 %v4111_v27 }
 0x186   : > { %3947 = vmatmul.msk.f32.gmra.mxu1 %vm1802_vm9, %v1739_v46  ;;  %v1042_v25 = vsel %vm1041_vm15, %v4107_v19, %v1038_v28  ;;  %vm1061_vm7 = vmor %vm1059_vm5, %vm1060_vm6  ;;  %vm1070_vm10 = vweird.f32 %v4113_v63 }
 0x187   : > { %3911 = vmatmul.msk.f32.gmra.mxu3 %vm356_vm0, %v1294_v7  ;;  %v1295_v52 = vmul.f32 %v4421_v39, %v1042_v25  ;;  %v1055_v49 = vmul.f32 %v4111_v27, %v1054_v21  ;;  %vm5598_vm11 = vmor %vm1069_vm8, %vm1070_vm10  ;;  %v4427_v21 = vld [vmem:[%s4503_s24 + $0x170] sm:$0xff] }
 0x189   : > { %v1576_v10 = vpop.f32.mrf.mxu0  ;;  %v1056_v24 = vmul.f32 0.5, %v1055_v49 }
 0x18a   : > { %v1577_v42 = vadd.f32 %v4978_v45, %v1576_v10 }
 0x18b   : > { %v1057_v50 = vsub.f32 1.5, %v1056_v24  ;;  %v497_v10 = vpop.xlane.xlu1 %496 }
 0x18c   : > { %v1740_v38 = vmax.f32 %v1577_v42, 0.0  ;;  %3900 = vmatmul.msk.f32.gmra.mxu0 %vm356_vm0, %v1283_v20  ;;  %v595_v19 = vmax.f32 %v497_v10, 1e-24  ;;  %v1064_v42 = vmul.f32 %v4113_v63, %v594_v54 }
 0x18d   : > { %v1058_v2 = vmul.f32 %v4111_v27, %v1057_v50 }
 0x18e   : > { %3948 = vmatmul.msk.f32.gmra.mxu1 %vm1802_vm9, %v1740_v38  ;;  %4114 = vrsqrt.f32 %v595_v19  ;;  %v1065_v53 = vmul.f32 %v4113_v63, %v1064_v42  ;;  %v4425_v38 = vld [vmem:[%s4503_s24 + $0x160] sm:$0xff]  ;;  %vm1079_vm12 = vweird.f32 %v595_v19 }
 0x18f   : > { %3912 = vmatmul.msk.f32.gmra.mxu3 %vm356_vm0, %v1295_v52  ;;  %v1062_v51 = vsel %vm1061_vm7, %v4111_v27, %v1058_v2 }
 0x190   : > { %v1066_v8 = vmul.f32 0.5, %v1065_v53  ;;  %v1297_v4 = vmul.f32 %v4425_v38, %v1062_v51 }
 0x191   : > { %v1579_v9 = vpop.f32.mrf.mxu0 }
 0x192   : > { %v1580_v6 = vadd.f32 %v4978_v45, %v1579_v9  ;;  %v1045_v45 = vmul.f32 %v4109_v29, %v1044_v18  ;;  %v1067_v55 = vsub.f32 1.5, %v1066_v8  ;;  %v4426_v18 = vld [vmem:[%s4503_s24 + $0x168] sm:$0xff] }
 0x194   : > { %v1741_v0 = vmax.f32 %v1580_v6, 0.0  ;;  %3901 = vmatmul.msk.f32.gmra.mxu0 %vm356_vm0, %v1284_v26  ;;  %v1046_v47 = vmul.f32 0.5, %v1045_v45  ;;  %v500_v3 = vpop.xlane.xlu2 %499  ;;  %v4115_v61 = vpop.eup %4114 }
 0x195   : > { %v596_v9 = vmax.f32 %v500_v3, 1e-24  ;;  %v1074_v13 = vmul.f32 %v4115_v61, %v595_v19  ;;  %vm1080_vm13 = vweird.f32 %v4115_v61 }
 0x196   : > { %3949 = vmatmul.msk.f32.gmra.mxu1 %vm1802_vm9, %v1741_v0  ;;  %v1047_v40 = vsub.f32 1.5, %v1046_v47  ;;  %vm5613_vm14 = vmor %vm1079_vm12, %vm1080_vm13 }
 0x197   : > { %4116 = vrsqrt.f32 %v596_v9  ;;  %v1075_v26 = vmul.f32 %v4115_v61, %v1074_v13  ;;  %vm1089_vm15 = vweird.f32 %v596_v9 }
 0x198   : > { %v1048_v46 = vmul.f32 %v4109_v29, %v1047_v40 }
 0x199   : > { %v1582_v48 = vpop.f32.mrf.mxu0  ;;  %v1076_v32 = vmul.f32 0.5, %v1075_v26 }
 0x19a   : > { %v1583_v44 = vadd.f32 %v5571_v34, %v1582_v48  ;;  %v1052_v60 = vsel %vm1051_vm4, %v4109_v29, %v1048_v46  ;;  %v1068_v29 = vmul.f32 %v4113_v63, %v1067_v55 }
 0x19b   : > { %v2012_v33 = vpop.f32.mrf.mxu1  ;;  %v1296_v56 = vmul.f32 %v4424_v37, %v1052_v60  ;;  %v1077_v45 = vsub.f32 1.5, %v1076_v32 }
 0x19c   : > { %v1742_v59 = vmax.f32 %v1583_v44, 0.0  ;;  %v5578_v16 = vadd.f32 %v5565_v36, %v2012_v33  ;;  %3902 = vmatmul.msk.f32.gmra.mxu0 %vm356_vm0, %v1285_v30  ;;  %v1072_v5 = vsel %vm5598_vm11, %v4113_v63, %v1068_v29 }
 0x19d   : > { %3913 = vmatmul.msk.f32.gmra.mxu3 %vm356_vm0, %v1296_v56  ;;  %v1298_v28 = vmul.f32 %v4426_v18, %v1072_v5  ;;  %v4117_v25 = vpop.eup %4116  ;;  %v1078_v48 = vmul.f32 %v4115_v61, %v1077_v45  ;;  %v4429_v5 = vld [vmem:[%s4503_s24 + $0x180] sm:$0xff] }
 0x19e   : > { %3950 = vmatmul.msk.f32.gmra.mxu1 %vm1802_vm9, %v1742_v59  ;;  %v2205_v31 = vsel %vm2204_vm2, %v5578_v16, -inf  ;;  %v1084_v52 = vmul.f32 %v4117_v25, %v596_v9  ;;  %vm1090_vm1 = vweird.f32 %v4117_v25 }
 0x19f   : > { %2206 = vmax.xlane.f32.xlu1 %v2205_v31  ;;  %v1082_v17 = vsel %vm5613_vm14, %v4115_v61, %v1078_v48  ;;  %vm1091_vm3 = vmor %vm1089_vm15, %vm1090_vm1 }
 0x1a0   : > { %v1085_v27 = vmul.f32 %v4117_v25, %v1084_v52  ;;  %v503_v44 = vpop.xlane.xlu0 %502  ;;  %v1299_v46 = vmul.f32 %v4427_v21, %v1082_v17  ;;  %v4430_v21 = vld [vmem:[%s4503_s24 + $0x188] sm:$0xff] }
 0x1a1   : > { %v1585_v23 = vpop.f32.mrf.mxu0  ;;  %v597_v54 = vmax.f32 %v503_v44, 1e-24 }
 0x1a2   : > { %v1586_v22 = vadd.f32 %v5571_v34, %v1585_v23  ;;  %v1086_v33 = vmul.f32 0.5, %v1085_v27  ;;  %v506_v23 = vpop.xlane.xlu1 %505 }
 0x1a3   : > { %v2015_v12 = vpop.f32.mrf.mxu1  ;;  %4118 = vrsqrt.f32 %v597_v54  ;;  %vm1099_vm4 = vweird.f32 %v597_v54 }
 0x1a4   : > { %v1743_v20 = vmax.f32 %v1586_v22, 0.0  ;;  %v5591_v14 = vadd.f32 %v5565_v36, %v2015_v12  ;;  %v1087_v49 = vsub.f32 1.5, %v1086_v33  ;;  %v598_v22 = vmax.f32 %v506_v23, 1e-24  ;;  %v4428_v12 = vld [vmem:[%s4503_s24 + $0x178] sm:$0xff] }
 0x1a5   : > { %3914 = vmatmul.msk.f32.gmra.mxu3 %vm356_vm0, %v1297_v4 }
 0x1a6   : > { %3951 = vmatmul.msk.f32.gmra.mxu1 %vm1802_vm9, %v1743_v20  ;;  %v2208_v57 = vsel %vm2204_vm2, %v5591_v14, -inf  ;;  %v1088_v24 = vmul.f32 %v4117_v25, %v1087_v49  ;;  %4120 = vrsqrt.f32 %v598_v22  ;;  %vm1109_vm7 = vweird.f32 %v598_v22 }
 0x1a7   : > { %2209 = vmax.xlane.f32.xlu2 %v2208_v57 }
 0x1a8   : > { %v1092_v50 = vsel %vm1091_vm3, %v4117_v25, %v1088_v24 }
 0x1a9   : > { %v1588_v58 = vpop.f32.mrf.mxu0  ;;  %v4119_v10 = vpop.eup %4118  ;;  %v1300_v42 = vmul.f32 %v4428_v12, %v1092_v50 }
 0x1aa   : > { %v1589_v35 = vadd.f32 %v5571_v34, %v1588_v58  ;;  %v1094_v19 = vmul.f32 %v4119_v10, %v597_v54  ;;  %vm1100_vm5 = vweird.f32 %v4119_v10 }
 0x1ab   : > { %v2018_v15 = vpop.f32.mrf.mxu1  ;;  %vm1101_vm6 = vmor %vm1099_vm4, %vm1100_vm5 }
 0x1ac   : > { %v1744_v6 = vmax.f32 %v1589_v35, 0.0  ;;  %v5604_v11 = vadd.f32 %v5565_v36, %v2018_v15  ;;  %v1095_v20 = vmul.f32 %v4119_v10, %v1094_v19  ;;  %v4121_v3 = vpop.eup %4120 }
 0x1ad   : > { %3915 = vmatmul.msk.f32.gmra.mxu3 %vm356_vm0, %v1298_v28  ;;  %v1104_v35 = vmul.f32 %v4121_v3, %v598_v22  ;;  %vm1110_vm8 = vweird.f32 %v4121_v3  ;;  %v4431_v22 = vld [vmem:[%s4503_s24 + $0x190] sm:$0xff] }
 0x1ae   : > { %3952 = vmatmul.msk.f32.gmra.mxu1 %vm1802_vm9, %v1744_v6  ;;  %v2211_v41 = vsel %vm2204_vm2, %v5604_v11, -inf  ;;  %v1096_v38 = vmul.f32 0.5, %v1095_v20  ;;  %vm1111_vm10 = vmor %vm1109_vm7, %vm1110_vm8 }
 0x1af   : > { %2212 = vmax.xlane.f32.xlu0 %v2211_v41  ;;  %v1105_v15 = vmul.f32 %v4121_v3, %v1104_v35 }
 0x1b0   : > { %v1097_v55 = vsub.f32 1.5, %v1096_v38 }
 0x1b1   : > { %v1591_v0 = vpop.f32.mrf.mxu0  ;;  %v1106_v28 = vmul.f32 0.5, %v1105_v15 }
 0x1b2   : > { %v1592_v43 = vadd.f32 %v5571_v34, %v1591_v0  ;;  %v509_v53 = vpop.xlane.xlu2 %508  ;;  %v1098_v7 = vmul.f32 %v4119_v10, %v1097_v55 }
 0x1b3   : > { %v2021_v39 = vpop.f32.mrf.mxu1  ;;  %v599_v51 = vmax.f32 %v509_v53, 1e-24 }
 0x1b4   : > { %v1745_v40 = vmax.f32 %v1592_v43, 0.0  ;;  %v5619_v1 = vadd.f32 %v5565_v36, %v2021_v39  ;;  %v1102_v13 = vsel %vm1101_vm6, %v4119_v10, %v1098_v7  ;;  %v1107_v43 = vsub.f32 1.5, %v1106_v28 }
 0x1b5   : > { %3916 = vmatmul.msk.f32.gmra.mxu3 %vm356_vm0, %v1299_v46  ;;  %4122 = vrsqrt.f32 %v599_v51  ;;  %v1301_v41 = vmul.f32 %v4429_v5, %v1102_v13  ;;  %vm1119_vm11 = vweird.f32 %v599_v51 }
 0x1b6   : > { %3953 = vmatmul.msk.f32.gmra.mxu1 %vm1802_vm9, %v1745_v40  ;;  %v2214_v30 = vsel %vm2204_vm2, %v5619_v1, -inf  ;;  %v1108_v48 = vmul.f32 %v4121_v3, %v1107_v43 }
 0x1b7   : > { %2215 = vmax.xlane.f32.xlu1 %v2214_v30 }
 0x1b8   : > { %v1112_v44 = vsel %vm1111_vm10, %v4121_v3, %v1108_v48 }
 0x1b9   : > { %v1594_v59 = vpop.f32.mrf.mxu0  ;;  %v1302_v46 = vmul.f32 %v4430_v21, %v1112_v44  ;;  %v4433_v21 = vld [vmem:[%s4503_s24 + $0x1a0] sm:$0xff] }
 0x1ba   : > { %v1595_v60 = vadd.f32 %v5571_v34, %v1594_v59  ;;  %v512_v29 = vpop.xlane.xlu0 %511  ;;  %v515_v17 = vpop.xlane.xlu1 %514 }
 0x1bb   : > { %v2024_v31 = vpop.f32.mrf.mxu1  ;;  %v4123_v6 = vpop.eup %4122  ;;  %v600_v32 = vmax.f32 %v512_v29, 1e-24  ;;  %v601_v59 = vmax.f32 %v515_v17, 1e-24 }
 0x1bc   : > { %v1746_v37 = vmax.f32 %v1595_v60, 0.0  ;;  %v5630_v56 = vadd.f32 %v5565_v36, %v2024_v31  ;;  %v1114_v0 = vmul.f32 %v4123_v6, %v599_v51  ;;  %vm1120_vm12 = vweird.f32 %v4123_v6 }
 0x1bd   : > { %3917 = vmatmul.msk.f32.gmra.mxu3 %vm356_vm0, %v1300_v42  ;;  %4124 = vrsqrt.f32 %v600_v32  ;;  %vm5654_vm13 = vmor %vm1119_vm11, %vm1120_vm12  ;;  %vm1129_vm14 = vweird.f32 %v600_v32  ;;  %vm1139_vm3 = vweird.f32 %v601_v59 }
 0x1be   : > { %3954 = vmatmul.msk.f32.gmra.mxu1 %vm1802_vm9, %v1746_v37  ;;  %v2217_v63 = vsel %vm2204_vm2, %v5630_v56, -inf  ;;  %v1115_v47 = vmul.f32 %v4123_v6, %v1114_v0  ;;  %4126 = vrsqrt.f32 %v601_v59 }
 0x1bf   : > { %2218 = vmax.xlane.f32.xlu2 %v2217_v63 }
 0x1c0   : > { %v1116_v52 = vmul.f32 0.5, %v1115_v47 }
 0x1c1   : > { %v1597_v2 = vpop.f32.mrf.mxu0 }
 0x1c2   : > { %v1598_v57 = vadd.f32 %v5571_v34, %v1597_v2  ;;  %v1117_v27 = vsub.f32 1.5, %v1116_v52  ;;  %v518_v2 = vpop.xlane.xlu2 %517 }
 0x1c3   : > { %v2027_v8 = vpop.f32.mrf.mxu1  ;;  %v4125_v30 = vpop.eup %4124  ;;  %v602_v51 = vmax.f32 %v518_v2, 1e-24 }
 0x1c4   : > { %v1747_v4 = vmax.f32 %v1598_v57, 0.0  ;;  %v5639_v58 = vadd.f32 %v5565_v36, %v2027_v8  ;;  %v1124_v60 = vmul.f32 %v4125_v30, %v600_v32  ;;  %v1118_v31 = vmul.f32 %v4123_v6, %v1117_v27  ;;  %v4127_v20 = vpop.eup %4126 }
 0x1c5   : > { %3918 = vmatmul.msk.f32.gmra.mxu3 %vm356_vm0, %v1301_v41  ;;  %vm1130_vm15 = vweird.f32 %v4125_v30  ;;  %v1134_v38 = vmul.f32 %v4127_v20, %v601_v59  ;;  %4128 = vrsqrt.f32 %v602_v51  ;;  %vm1140_vm4 = vweird.f32 %v4127_v20 }
 0x1c6   : > { %3955 = vmatmul.msk.f32.gmra.mxu1 %vm1802_vm9, %v1747_v4  ;;  %v2220_v61 = vsel %vm2204_vm2, %v5639_v58, -inf  ;;  %v1125_v23 = vmul.f32 %v4125_v30, %v1124_v60  ;;  %v1122_v50 = vsel %vm5654_vm13, %v4123_v6, %v1118_v31  ;;  %vm5670_vm1 = vmor %vm1129_vm14, %vm1130_vm15  ;;  %v4432_v6 = vld [vmem:[%s4503_s24 + $0x198] sm:$0xff]  ;;  %vm1149_vm6 = vweird.f32 %v602_v51 }
 0x1c7   : > { %2221 = vmax.xlane.f32.xlu0 %v2220_v61  ;;  %v1303_v19 = vmul.f32 %v4431_v22, %v1122_v50  ;;  %v1135_v61 = vmul.f32 %v4127_v20, %v1134_v38  ;;  %vm5689_vm5 = vmor %vm1139_vm3, %vm1140_vm4 }
 0x1c8   : > { %v1126_v63 = vmul.f32 0.5, %v1125_v23 }
 0x1c9   : > { %v1600_v9 = vpop.f32.mrf.mxu0  ;;  %v1136_v13 = vmul.f32 0.5, %v1135_v61  ;;  %v5685_v29 = vpop.f32.mrf.mxu3 }
 0x1ca   : > { %v1601_v26 = vadd.f32 %v5571_v34, %v1600_v9  ;;  %v1127_v42 = vsub.f32 1.5, %v1126_v63 }
 0x1cb   : > { %v2030_v18 = vpop.f32.mrf.mxu1  ;;  %v1137_v41 = vsub.f32 1.5, %v1136_v13 }
 0x1cc   : > { %v1748_v45 = vmax.f32 %v1601_v26, 0.0  ;;  %v5647_v25 = vadd.f32 %v5565_v36, %v2030_v18  ;;  %v1128_v4 = vmul.f32 %v4125_v30, %v1127_v42  ;;  %v4129_v18 = vpop.eup %4128 }
 0x1cd   : > { %3919 = vmatmul.msk.f32.gmra.mxu3 %vm356_vm0, %v1302_v46  ;;  %v524_v35 = vpop.xlane.xlu1 %523  ;;  %v1144_v47 = vmul.f32 %v4129_v18, %v602_v51  ;;  %vm1150_vm7 = vweird.f32 %v4129_v18 }
 0x1ce   : > { %3956 = vmatmul.msk.f32.gmra.mxu1 %vm1802_vm9, %v1748_v45  ;;  %v2223_v39 = vsel %vm2204_vm2, %v5647_v25, -inf  ;;  %v1132_v7 = vsel %vm5670_vm1, %v4125_v30, %v1128_v4  ;;  %v5683_v15 = vmax.f32 %v524_v35, 1e-24  ;;  %vm5717_vm8 = vmor %vm1149_vm6, %vm1150_vm7 }
 0x1cf   : > { %2224 = vmax.xlane.f32.xlu1 %v2223_v39  ;;  %v1304_v26 = vmul.f32 %v4432_v6, %v1132_v7  ;;  %v1138_v39 = vmul.f32 %v4127_v20, %v1137_v41  ;;  %v4434_v7 = vld [vmem:[%s4503_s24 + $0x1a8] sm:$0xff] }
 0x1d0   : > { %4130 = vrsqrt.f32 %v5683_v15  ;;  %vm1169_vm13 = vweird.f32 %v5683_v15 }
 0x1d1   : > { %v1603_v40 = vpop.f32.mrf.mxu0  ;;  %v1142_v44 = vsel %vm5689_vm5, %v4127_v20, %v1138_v39  ;;  %v5712_v50 = vpop.f32.mrf.mxu3 }
 0x1d2   : > { %v1604_v54 = vadd.f32 %v5571_v34, %v1603_v40  ;;  %v1145_v40 = vmul.f32 %v4129_v18, %v1144_v47  ;;  %v1305_v46 = vmul.f32 %v4433_v21, %v1142_v44 }
 0x1d3   : > { %v2033_v49 = vpop.f32.mrf.mxu1 }
 0x1d4   : > { %v1749_v24 = vmax.f32 %v1604_v54, 0.0  ;;  %v5660_v37 = vadd.f32 %v5565_v36, %v2033_v49  ;;  %v521_v32 = vpop.xlane.xlu0 %520  ;;  %v1146_v54 = vmul.f32 0.5, %v1145_v40 }
 0x1d5   : > { %3920 = vmatmul.msk.f32.gmra.mxu3 %vm356_vm0, %v1303_v19  ;;  %v603_v45 = vmax.f32 %v521_v32, 1e-24 }
 0x1d6   : > { %3957 = vmatmul.msk.f32.gmra.mxu1 %vm1802_vm9, %v1749_v24  ;;  %v2226_v10 = vsel %vm2204_vm2, %v5660_v37, -inf  ;;  %v5705_v33 = vpop.eup %4130  ;;  %v1147_v49 = vsub.f32 1.5, %v1146_v54 }
 0x1d7   : > { %2227 = vmax.xlane.f32.xlu2 %v2226_v10  ;;  %4132 = vrsqrt.f32 %v603_v45  ;;  %v1164_v23 = vmul.f32 %v5705_v33, %v5683_v15  ;;  %vm1159_vm10 = vweird.f32 %v603_v45  ;;  %vm1170_vm14 = vweird.f32 %v5705_v33 }
 0x1d8   : > { %v527_v27 = vpop.xlane.xlu2 %526  ;;  %v1148_v63 = vmul.f32 %v4129_v18, %v1147_v49  ;;  %vm5764_vm15 = vmor %vm1169_vm13, %vm1170_vm14 }
 0x1d9   : > { %v1606_v12 = vpop.f32.mrf.mxu0  ;;  %v5703_v30 = vmax.f32 %v527_v27, 1e-24  ;;  %v1165_v57 = vmul.f32 %v5705_v33, %v1164_v23  ;;  %v5747_v0 = vpop.f32.mrf.mxu3 }
 0x1da   : > { %v1607_v53 = vadd.f32 %v5571_v34, %v1606_v12  ;;  %v4435_v12 = vld [vmem:[%s4503_s24 + $0x1b8] sm:$0xff] }
 0x1db   : > { %v2036_v8 = vpop.f32.mrf.mxu1  ;;  %4134 = vrsqrt.f32 %v5703_v30  ;;  %v1166_v6 = vmul.f32 0.5, %v1165_v57  ;;  %vm1179_vm1 = vweird.f32 %v5703_v30 }
 0x1dc   : > { %v1750_v55 = vmax.f32 %v1607_v53, 0.0  ;;  %v5675_v3 = vadd.f32 %v5565_v36, %v2036_v8  ;;  %v530_v42 = vpop.xlane.xlu0 %529  ;;  %v1152_v8 = vsel %vm5717_vm8, %v4129_v18, %v1148_v63 }
 0x1dd   : > { %3921 = vmatmul.msk.f32.gmra.mxu3 %vm356_vm0, %v1304_v26  ;;  %v4133_v60 = vpop.eup %4132  ;;  %v5722_v20 = vmax.f32 %v530_v42, 1e-24  ;;  %v1167_v39 = vsub.f32 1.5, %v1166_v6 }
 0x1de   : > { %3958 = vmatmul.msk.f32.gmra.mxu1 %vm1802_vm9, %v1750_v55  ;;  %v2229_v9 = vsel %vm2204_vm2, %v5675_v3, -inf  ;;  %v1154_v10 = vmul.f32 %v4133_v60, %v603_v45  ;;  %vm1160_vm11 = vweird.f32 %v4133_v60 }
 0x1df   : > { %2230 = vmax.xlane.f32.xlu0 %v2229_v9  ;;  %4136 = vrsqrt.f32 %v5722_v20  ;;  %vm5734_vm12 = vmor %vm1159_vm10, %vm1160_vm11  ;;  %v1306_v9 = vmul.f32 %v4434_v7, %v1152_v8  ;;  %v1168_v15 = vmul.f32 %v5705_v33, %v1167_v39  ;;  %vm1189_vm5 = vweird.f32 %v5722_v20 }
 0x1e0   : > { %v1155_v2 = vmul.f32 %v4133_v60, %v1154_v10 }
 0x1e1   : > { %v1609_v5 = vpop.f32.mrf.mxu0  ;;  %v5730_v38 = vpop.eup %4134  ;;  %v1172_v10 = vsel %vm5764_vm15, %v5705_v33, %v1168_v15 }
 0x1e2   : > { %v1610_v28 = vadd.f32 %v5571_v34, %v1609_v5  ;;  %v1156_v51 = vmul.f32 0.5, %v1155_v2  ;;  %v1174_v26 = vmul.f32 %v5730_v38, %v5703_v30  ;;  %v533_v5 = vpop.xlane.xlu1 %532  ;;  %vm1180_vm3 = vweird.f32 %v5730_v38 }
 0x1e3   : > { %v2039_v43 = vpop.f32.mrf.mxu1  ;;  %v1308_v42 = vmul.f32 %v4435_v12, %v1172_v10  ;;  %vm5793_vm4 = vmor %vm1179_vm1, %vm1180_vm3 }
 0x1e4   : > { %v1751_v52 = vmax.f32 %v1610_v28, 0.0  ;;  %v5695_v48 = vadd.f32 %v5565_v36, %v2039_v43  ;;  %v1157_v55 = vsub.f32 1.5, %v1156_v51  ;;  %v5744_v28 = vmax.f32 %v533_v5, 1e-24  ;;  %v539_v8 = vpop.xlane.xlu0 %538 }
 0x1e5   : > { %3922 = vmatmul.msk.f32.gmra.mxu3 %vm356_vm0, %v1305_v46  ;;  %v5754_v47 = vpop.eup %4136  ;;  %v5801_v35 = vmax.f32 %v539_v8, 1e-24 }
 0x1e6   : > { %3959 = vmatmul.msk.f32.gmra.mxu1 %vm1802_vm9, %v1751_v52  ;;  %v2232_v17 = vsel %vm2204_vm2, %v5695_v48, -inf  ;;  %v1158_v41 = vmul.f32 %v4133_v60, %v1157_v55  ;;  %v1175_v52 = vmul.f32 %v5730_v38, %v1174_v26  ;;  %4138 = vrsqrt.f32 %v5744_v28 }
 0x1e7   : > { %2233 = vmax.xlane.f32.xlu1 %v2232_v17  ;;  %v1184_v44 = vmul.f32 %v5754_v47, %v5722_v20  ;;  %vm1190_vm6 = vweird.f32 %v5754_v47  ;;  %vm1199_vm8 = vweird.f32 %v5744_v28  ;;  %vm1219_vm15 = vweird.f32 %v5801_v35 }
 0x1e8   : > { %v1162_v45 = vsel %vm5734_vm12, %v4133_v60, %v1158_v41  ;;  %v1176_v46 = vmul.f32 0.5, %v1175_v52  ;;  %v4436_v41 = vld [vmem:[%s4503_s24 + $0x1c0] sm:$0xff]  ;;  %vm5823_vm7 = vmor %vm1189_vm5, %vm1190_vm6 }
 0x1e9   : > { %v1612_v59 = vpop.f32.mrf.mxu0  ;;  %v1307_v40 = vmul.f32 %v1162_v45, %v5344_v62 }
 0x1ea   : > { %v1613_v31 = vadd.f32 %v5571_v34, %v1612_v59  ;;  %v536_v59 = vpop.xlane.xlu2 %535  ;;  %v1177_v63 = vsub.f32 1.5, %v1176_v46  ;;  %v542_v5 = vpop.xlane.xlu1 %541 }
 0x1eb   : > { %v2042_v24 = vpop.f32.mrf.mxu1  ;;  %v5772_v62 = vmax.f32 %v536_v59, 1e-24 }
 0x1ec   : > { %v1752_v22 = vmax.f32 %v1613_v31, 0.0  ;;  %v5715_v19 = vadd.f32 %v5565_v36, %v2042_v24  ;;  %v1185_v31 = vmul.f32 %v5754_v47, %v1184_v44  ;;  %v5776_v24 = vpop.eup %4138 }
 0x1ed   : > { %3923 = vmatmul.msk.f32.gmra.mxu3 %vm356_vm0, %v1306_v9  ;;  %4140 = vrsqrt.f32 %v5772_v62  ;;  %vm1200_vm10 = vweird.f32 %v5776_v24  ;;  %vm1209_vm12 = vweird.f32 %v5772_v62 }
 0x1ee   : > { %3960 = vmatmul.msk.f32.gmra.mxu1 %vm1802_vm9, %v1752_v22  ;;  %v2235_v53 = vsel %vm2204_vm2, %v5715_v19, -inf  ;;  %v5786_v22 = vpop.f32.mrf.mxu3  ;;  %v1186_v57 = vmul.f32 0.5, %v1185_v31  ;;  %4142 = vrsqrt.f32 %v5801_v35  ;;  %vm5849_vm11 = vmor %vm1199_vm8, %vm1200_vm10 }
 0x1ef   : > { %2236 = vmax.xlane.f32.xlu2 %v2235_v53  ;;  %v1194_v53 = vmul.f32 %v5776_v24, %v5744_v28 }
 0x1f0   : > { %v1187_v9 = vsub.f32 1.5, %v1186_v57 }
 0x1f1   : > { %v1615_v4 = vpop.f32.mrf.mxu0  ;;  %v1195_v7 = vmul.f32 %v5776_v24, %v1194_v53 }
 0x1f2   : > { %v1616_v61 = vadd.f32 %v5571_v34, %v1615_v4  ;;  %v1178_v4 = vmul.f32 %v5730_v38, %v1177_v63  ;;  %v1188_v39 = vmul.f32 %v5754_v47, %v1187_v9  ;;  %v545_v31 = vpop.xlane.xlu2 %544 }
 0x1f3   : > { %v2045_v13 = vpop.f32.mrf.mxu1  ;;  %v5808_v6 = vpop.eup %4140  ;;  %v1196_v45 = vmul.f32 0.5, %v1195_v7 }
 0x1f4   : > { %v1753_v32 = vmax.f32 %v1616_v61, 0.0  ;;  %v5742_v18 = vadd.f32 %v5565_v36, %v2045_v13  ;;  %v1182_v13 = vsel %vm5793_vm4, %v5730_v38, %v1178_v4  ;;  %v1204_v38 = vmul.f32 %v5808_v6, %v5772_v62  ;;  %v5837_v15 = vpop.eup %4142 }
 0x1f5   : > { %3924 = vmatmul.msk.f32.gmra.mxu3 %vm356_vm0, %v1307_v40  ;;  %v1192_v59 = vsel %vm5823_vm7, %v5754_v47, %v1188_v39  ;;  %vm1210_vm13 = vweird.f32 %v5808_v6  ;;  %vm1220_vm1 = vweird.f32 %v5837_v15 }
 0x1f6   : > { %3961 = vmatmul.msk.f32.gmra.mxu1 %vm1802_vm9, %v1753_v32  ;;  %v2238_v43 = vsel %vm2204_vm2, %v5742_v18, -inf  ;;  %v1309_v32 = vmul.f32 %v4436_v41, %v1182_v13  ;;  %v5820_v52 = vpop.f32.mrf.mxu3  ;;  %v1205_v46 = vmul.f32 %v5808_v6, %v1204_v38  ;;  %v4438_v41 = vld [vmem:[%s4503_s24 + $0x1d0] sm:$0xff]  ;;  %vm5879_vm14 = vmor %vm1209_vm12, %vm1210_vm13 }
 0x1f7   : > { %2239 = vmax.xlane.f32.xlu0 %v2238_v43  ;;  %vm5911_vm3 = vmor %vm1219_vm15, %vm1220_vm1 }
 0x1f8   : > { %v1206_v47 = vmul.f32 0.5, %v1205_v46 }
 0x1f9   : > { %v1618_v27 = vpop.f32.mrf.mxu0 }
 0x1fa   : > { %v1619_v17 = vadd.f32 %v5571_v34, %v1618_v27  ;;  %v5827_v27 = vmax.f32 %v542_v5, 1e-24  ;;  %v1207_v7 = vsub.f32 1.5, %v1206_v47 }
 0x1fb   : > { %v2048_v21 = vpop.f32.mrf.mxu1 }
 0x1fc   : > { %v1754_v49 = vmax.f32 %v1619_v17, 0.0  ;;  %v5770_v60 = vadd.f32 %v5565_v36, %v2048_v21  ;;  %v1197_v21 = vsub.f32 1.5, %v1196_v45  ;;  %4144 = vrsqrt.f32 %v5827_v27 }
 0x1fd   : > { %3925 = vmatmul.msk.f32.gmra.mxu3 %vm356_vm0, %v1308_v42  ;;  %v1214_v42 = vmul.f32 %v5837_v15, %v5801_v35  ;;  %vm1229_vm4 = vweird.f32 %v5827_v27 }
 0x1fe   : > { %3962 = vmatmul.msk.f32.gmra.mxu1 %vm1802_vm9, %v1754_v49  ;;  %v2241_v23 = vsel %vm2204_vm2, %v5770_v60, -inf  ;;  %v1198_v63 = vmul.f32 %v5776_v24, %v1197_v21 }
 0x1ff   : > { %2242 = vmax.xlane.f32.xlu1 %v2241_v23  ;;  %v4437_v23 = vld [vmem:[%s4503_s24 + $0x1c8] sm:$0xff]  ;;  %v1215_v13 = vmul.f32 %v5837_v15, %v1214_v42 }
 0x200   : > { %v1310_v10 = vmul.f32 %v4437_v23, %v1192_v59 }
 0x201   : > { %v1621_v2 = vpop.f32.mrf.mxu0 }
 0x202   : > { %v1622_v51 = vadd.f32 %v5571_v34, %v1621_v2  ;;  %v5862_v4 = vpop.eup %4144 }
 0x203   : > { %v2051_v30 = vpop.f32.mrf.mxu1  ;;  %v1224_v5 = vmul.f32 %v5862_v4, %v5827_v27  ;;  %vm1230_vm5 = vweird.f32 %v5862_v4  ;;  %v4440_v27 = vld [vmem:[%s4503_s24 + $0x1e0] sm:$0xff] }
 0x204   : > { %v1755_v55 = vmax.f32 %v1622_v51, 0.0  ;;  %v5799_v61 = vadd.f32 %v5565_v36, %v2051_v30  ;;  %v5854_v51 = vpop.f32.mrf.mxu3  ;;  %v5856_v30 = vmax.f32 %v545_v31, 1e-24  ;;  %vm5941_vm6 = vmor %vm1229_vm4, %vm1230_vm5 }
 0x205   : > { %3926 = vmatmul.msk.f32.gmra.mxu3 %vm356_vm0, %v1309_v32  ;;  %v1208_v32 = vmul.f32 %v5808_v6, %v1207_v7 }
 0x206   : > { %3963 = vmatmul.msk.f32.gmra.mxu1 %vm1802_vm9, %v1755_v55  ;;  %v2244_v26 = vsel %vm2204_vm2, %v5799_v61, -inf  ;;  %v1202_v55 = vsel %vm5849_vm11, %v5776_v24, %v1198_v63  ;;  %4146 = vrsqrt.f32 %v5856_v30  ;;  %v548_v24 = vpop.xlane.xlu0 %547  ;;  %vm1239_vm7 = vweird.f32 %v5856_v30 }
 0x207   : > { %2245 = vmax.xlane.f32.xlu2 %v2244_v26  ;;  %v5885_v21 = vmax.f32 %v548_v24, 1e-24  ;;  %v1212_v59 = vsel %vm5879_vm14, %v5808_v6, %v1208_v32  ;;  %v1634_v6 = vadd.f32 %v5571_v34, %v5685_v29 }
 0x209   : > { %v1624_v43 = vpop.f32.mrf.mxu0  ;;  %v1759_v29 = vmax.f32 %v1634_v6, 0.0  ;;  %vm1249_vm11 = vweird.f32 %v5885_v21 }
 0x20a   : > { %v1625_v40 = vadd.f32 %v5571_v34, %v1624_v43  ;;  %v1216_v43 = vmul.f32 0.5, %v1215_v13 }
 0x20b   : > { %v2054_v44 = vpop.f32.mrf.mxu1 }
 0x20c   : > { %v1756_v17 = vmax.f32 %v1625_v40, 0.0  ;;  %v5830_v54 = vadd.f32 %v5565_v36, %v2054_v44  ;;  %v1225_v44 = vmul.f32 %v5862_v4, %v1224_v5  ;;  %v5895_v23 = vpop.f32.mrf.mxu3 }
 0x20d   : > { %3927 = vmatmul.msk.f32.gmra.mxu3 %vm356_vm0, %v1310_v10  ;;  %v5897_v10 = vpop.eup %4146 }
 0x20e   : > { %3964 = vmatmul.msk.f32.gmra.mxu1 %vm1802_vm9, %v1756_v17  ;;  %v2247_v49 = vsel %vm2204_vm2, %v5830_v54, -inf  ;;  %v1226_v47 = vmul.f32 0.5, %v1225_v44  ;;  %v1234_v42 = vmul.f32 %v5897_v10, %v5856_v30  ;;  %vm1240_vm8 = vweird.f32 %v5897_v10 }
 0x20f   : > { %2248 = vmax.xlane.f32.xlu0 %v2247_v49  ;;  %v1217_v49 = vsub.f32 1.5, %v1216_v43  ;;  %vm5971_vm10 = vmor %vm1239_vm7, %vm1240_vm8 }
 0x211   : > { %v1627_v12 = vpop.f32.mrf.mxu0  ;;  %v1218_v2 = vmul.f32 %v5837_v15, %v1217_v49 }
 0x212   : > { %v1628_v28 = vadd.f32 %v5571_v34, %v1627_v12  ;;  %v2207_v53 = vpop.xlane.xlu1 %2206 }
 0x213   : > { %v2057_v57 = vpop.f32.mrf.mxu1  ;;  %v2397_v9 = vsub.f32 %v5578_v16, %v2207_v53  ;;  %v1311_v16 = vmul.f32 %v4438_v41, %v1202_v55  ;;  %v1227_v55 = vsub.f32 1.5, %v1226_v47  ;;  %v1222_v13 = vsel %vm5911_vm3, %v5837_v15, %v1218_v2  ;;  %v4441_v47 = vld [vmem:[%s4503_s24 + $0x1e8] sm:$0xff] }
 0x214   : > { %v1757_v33 = vmax.f32 %v1628_v28, 0.0  ;;  %v5859_v8 = vadd.f32 %v5565_v36, %v2057_v57  ;;  %v5935_v15 = vpop.f32.mrf.mxu3  ;;  %v1313_v32 = vmul.f32 %v4440_v27, %v1222_v13 }
 0x215   : > { %v2461_v45 = vmul.f32 1.442695, %v2397_v9  ;;  %3928 = vmatmul.msk.f32.gmra.mxu3 %vm356_vm0, %v1311_v16  ;;  %v1235_v9 = vmul.f32 %v5897_v10, %v1234_v42  ;;  %v1228_v16 = vmul.f32 %v5862_v4, %v1227_v55 }
 0x216   : > { %3965 = vmatmul.msk.f32.gmra.mxu1 %vm1802_vm9, %v1757_v33  ;;  %v2250_v26 = vsel %vm2204_vm2, %v5859_v8, -inf }
 0x217   : > { %2251 = vmax.xlane.f32.xlu1 %v2250_v26  ;;  %4148 = vpow2.f32 %v2461_v45  ;;  %v1236_v43 = vmul.f32 0.5, %v1235_v9 }
 0x218   : > { %4150 = vrsqrt.f32 %v5885_v21 }
 0x219   : > { %v1630_v38 = vpop.f32.mrf.mxu0 }
 0x21a   : > { %v1631_v62 = vadd.f32 %v5571_v34, %v1630_v38  ;;  %v2210_v40 = vpop.xlane.xlu2 %2209 }
 0x21b   : > { %v2060_v20 = vpop.f32.mrf.mxu1  ;;  %v2398_v31 = vsub.f32 %v5591_v14, %v2210_v40  ;;  %v4439_v14 = vld [vmem:[%s4503_s24 + $0x1d8] sm:$0xff] }
 0x21c   : > { %v1758_v17 = vmax.f32 %v1631_v62, 0.0  ;;  %v5888_v46 = vadd.f32 %v5565_v36, %v2060_v20  ;;  %v1312_v12 = vmul.f32 %v4439_v14, %v1212_v59  ;;  %v1237_v59 = vsub.f32 1.5, %v1236_v43  ;;  %v5969_v2 = vpop.f32.mrf.mxu3 }
 0x21d   : > { %v2463_v28 = vmul.f32 1.442695, %v2398_v31  ;;  %v5915_v57 = vpop.eup %4148 }
 0x21e   : > { %3966 = vmatmul.msk.f32.vlgmr.msra.gmra.mxu2 %vm1802_vm9, %v1758_v17  ;;  %v2253_v63 = vsel %vm2204_vm2, %v5888_v46, -inf  ;;  %3929 = vmatmul.msk.f32.gmra.mxu3 %vm356_vm0, %v1312_v12  ;;  %v5926_v5 = vpop.eup %4150  ;;  %v2589_v41 = vsel %vm2204_vm2, %v5915_v57, 0.0 }
 0x21f   : > { %2254 = vmax.xlane.f32.xlu2 %v2253_v63  ;;  %4152 = vpow2.f32 %v2463_v28  ;;  %v1244_v38 = vmul.f32 %v5926_v5, %v5885_v21  ;;  %vm1250_vm12 = vweird.f32 %v5926_v5 }
 0x220   : > { %vm5996_vm13 = vmor %vm1249_vm11, %vm1250_vm12 }
 0x221   : > { %v1245_v49 = vmul.f32 %v5926_v5, %v1244_v38 }
 0x222   : > { %v2213_v35 = vpop.xlane.xlu0 %2212 }
 0x223   : > { %v2063_v33 = vpop.f32.mrf.mxu1  ;;  %v2399_v26 = vsub.f32 %v5604_v11, %v2213_v35  ;;  %v1637_v11 = vadd.f32 %v5571_v34, %v5712_v50  ;;  %v1232_v50 = vsel %vm5941_vm6, %v5862_v4, %v1228_v16  ;;  %v1640_v4 = vadd.f32 %v5571_v34, %v5747_v0 }
 0x224   : > { %v5918_v7 = vadd.f32 %v5565_v36, %v2063_v33  ;;  %v1314_v14 = vmul.f32 %v4441_v47, %v1232_v50  ;;  %v1246_v12 = vmul.f32 0.5, %v1245_v49  ;;  %v6002_v21 = vpop.f32.mrf.mxu3 }
 0x225   : > { %v2465_v39 = vmul.f32 1.442695, %v2399_v26  ;;  %v5947_v40 = vpop.eup %4152  ;;  %v1760_v44 = vmax.f32 %v1637_v11, 0.0  ;;  %v1761_v33 = vmax.f32 %v1640_v4, 0.0 }
 0x226   : > { %3967 = vmatmul.msk.f32.gmra.mxu2 %vm1802_vm9, %v1759_v29  ;;  %v2256_v24 = vsel %vm2204_vm2, %v5918_v7, -inf  ;;  %3930 = vmatmul.msk.f32.gmra.mxu3 %vm356_vm0, %v1313_v32  ;;  %v2592_v63 = vsel %vm2204_vm2, %v5947_v40, 0.0  ;;  %v1247_v55 = vsub.f32 1.5, %v1246_v12 }
 0x227   : > { %2257 = vmax.xlane.f32.xlu0 %v2256_v24  ;;  %2590 = vadd.xlane.f32.xlu2 %v2589_v41  ;;  %4154 = vpow2.f32 %v2465_v39  ;;  %v4442_v24 = vld [vmem:[%s4503_s24 + $0x1f0] sm:$0xff] }
 0x22a   : > { %v2216_v62 = vpop.xlane.xlu1 %2215 }
 0x22b   : > { %v2066_v20 = vpop.f32.mrf.mxu1  ;;  %v2400_v31 = vsub.f32 %v5619_v1, %v2216_v62  ;;  %v1238_v1 = vmul.f32 %v5897_v10, %v1237_v59 }
 0x22c   : > { %v5953_v17 = vadd.f32 %v5565_v36, %v2066_v20 }
 0x22d   : > { %v2467_v42 = vmul.f32 1.442695, %v2400_v31  ;;  %v5975_v53 = vpop.eup %4154  ;;  %v1242_v29 = vsel %vm5971_vm10, %v5897_v10, %v1238_v1  ;;  %v1643_v10 = vadd.f32 %v5571_v34, %v5786_v22 }
 0x22e   : > { %3968 = vmatmul.msk.f32.gmra.mxu2 %vm1802_vm9, %v1760_v44  ;;  %v2259_v6 = vsel %vm2204_vm2, %v5953_v17, -inf  ;;  %3931 = vmatmul.msk.f32.gmra.mxu3 %vm356_vm0, %v1314_v14  ;;  %v2595_v26 = vsel %vm2204_vm2, %v5975_v53, 0.0  ;;  %v1315_v41 = vmul.f32 %v4442_v24, %v1242_v29  ;;  %v4443_v44 = vld [vmem:[%s4503_s24 + $0x1f8] sm:$0xff]  ;;  %v6042_v14 = vld [vmem:[%s6991_s2] ss:$0 sm:$0xff] }
 0x22f   : > { %2593 = vadd.xlane.f32.xlu0 %v2592_v63  ;;  %2260 = vmax.xlane.f32.xlu1 %v2259_v6  ;;  %4156 = vpow2.f32 %v2467_v42  ;;  %v1762_v43 = vmax.f32 %v1643_v10, 0.0  ;;  %v6025_v63 = vld [vmem:[%s6993_s4] ss:$0 sm:$0xff]  ;;  %v1655_v16 = vadd.f32 %v6042_v14, %v5935_v15 }
 0x232   : > { %v2219_v30 = vpop.xlane.xlu2 %2218 }
 0x233   : > { %v2069_v35 = vpop.f32.mrf.mxu1  ;;  %v2401_v9 = vsub.f32 %v5630_v56, %v2219_v30  ;;  %v1248_v56 = vmul.f32 %v5926_v5, %v1247_v55 }
 0x234   : > { %v5978_v0 = vadd.f32 %v5565_v36, %v2069_v35 }
 0x235   : > { %v2469_v11 = vmul.f32 1.442695, %v2401_v9  ;;  %v6000_v32 = vpop.eup %4156  ;;  %v1252_v22 = vsel %vm5996_vm13, %v5926_v5, %v1248_v56  ;;  %v1652_v9 = vadd.f32 %v6042_v14, %v5895_v23 }
 0x236   : > { %3969 = vmatmul.msk.f32.gmra.mxu2 %vm1802_vm9, %v1761_v33  ;;  %v2262_v13 = vsel %vm2204_vm2, %v5978_v0, -inf  ;;  %3932 = vmatmul.msk.f32.gmra.mxu3 %vm356_vm0, %v1315_v41  ;;  %v2598_v20 = vsel %vm2204_vm2, %v6000_v32, 0.0  ;;  %v1316_v50 = vmul.f32 %v4443_v44, %v1252_v22  ;;  %v1658_v44 = vadd.f32 %v6042_v14, %v5969_v2 }
 0x237   : > { %2263 = vmax.xlane.f32.xlu2 %v2262_v13  ;;  %2596 = vadd.xlane.f32.xlu1 %v2595_v26  ;;  %4158 = vpow2.f32 %v2469_v11  ;;  %v1765_v24 = vmax.f32 %v1652_v9, 0.0 }
 0x23a   : > { %v2222_v27 = vpop.xlane.xlu0 %2221 }
 0x23b   : > { %v2072_v45 = vpop.f32.mrf.mxu1  ;;  %v2402_v39 = vsub.f32 %v5639_v58, %v2222_v27 }
 0x23c   : > { %v6005_v38 = vadd.f32 %v5565_v36, %v2072_v45  ;;  %v1646_v36 = vadd.f32 %v5571_v34, %v5820_v52  ;;  %v6032_v52 = vpop.f32.mrf.mxu3 }
 0x23d   : > { %v2471_v59 = vmul.f32 1.442695, %v2402_v39  ;;  %v6020_v49 = vpop.eup %4158  ;;  %v1766_v39 = vmax.f32 %v1655_v16, 0.0 }
 0x23e   : > { %3970 = vmatmul.msk.f32.gmra.mxu2 %vm1802_vm9, %v1762_v43  ;;  %v2265_v62 = vsel %vm2204_vm2, %v6005_v38, -inf  ;;  %v1763_v31 = vmax.f32 %v1646_v36, 0.0  ;;  %3933 = vmatmul.msk.f32.gmra.mxu3 %vm356_vm0, %v1316_v50  ;;  %v2601_v4 = vsel %vm2204_vm2, %v6020_v49, 0.0 }
 0x23f   : > { %2266 = vmax.xlane.f32.xlu0 %v2265_v62  ;;  %2599 = vadd.xlane.f32.xlu2 %v2598_v20  ;;  %4160 = vpow2.f32 %v2471_v59 }
 0x242   : > { %v2225_v5 = vpop.xlane.xlu1 %2224 }
 0x243   : > { %v2075_v58 = vpop.f32.mrf.mxu1  ;;  %v2403_v34 = vsub.f32 %v5647_v25, %v2225_v5  ;;  %v1649_v25 = vadd.f32 %v6042_v14, %v5854_v51 }
 0x244   : > { %v6028_v6 = vadd.f32 %v6025_v63, %v2075_v58  ;;  %v6057_v55 = vpop.f32.mrf.mxu3 }
 0x245   : > { %v2473_v1 = vmul.f32 1.442695, %v2403_v34  ;;  %v6046_v42 = vpop.eup %4160  ;;  %v1764_v30 = vmax.f32 %v1649_v25, 0.0  ;;  %v1661_v25 = vadd.f32 %v6042_v14, %v6002_v21 }
 0x246   : > { %3971 = vmatmul.msk.f32.gmra.mxu2 %vm1802_vm9, %v1763_v31  ;;  %v2268_v47 = vsel %vm2204_vm2, %v6028_v6, -inf  ;;  %v2604_v51 = vsel %vm2204_vm2, %v6046_v42, 0.0  ;;  %v1767_v31 = vmax.f32 %v1658_v44, 0.0 }
 0x247   : > { %2602 = vadd.xlane.f32.xlu0 %v2601_v4  ;;  %2269 = vmax.xlane.f32.xlu1 %v2268_v47  ;;  %4162 = vpow2.f32 %v2473_v1 }
 0x24a   : > { %v2228_v12 = vpop.xlane.xlu2 %2227 }
 0x24b   : > { %v2078_v28 = vpop.f32.mrf.mxu1  ;;  %v2404_v33 = vsub.f32 %v5660_v37, %v2228_v12 }
 0x24c   : > { %v6049_v35 = vadd.f32 %v6025_v63, %v2078_v28  ;;  %v6074_v45 = vpop.f32.mrf.mxu3 }
 0x24d   : > { %v2475_v13 = vmul.f32 1.442695, %v2404_v33  ;;  %v6061_v10 = vpop.eup %4162  ;;  %v1768_v33 = vmax.f32 %v1661_v25, 0.0 }
 0x24e   : > { %3972 = vmatmul.msk.f32.gmra.mxu2 %vm1802_vm9, %v1764_v30  ;;  %v2271_v29 = vsel %vm2204_vm2, %v6049_v35, -inf  ;;  %v2607_v23 = vsel %vm2204_vm2, %v6061_v10, 0.0 }
 0x24f   : > { %2272 = vmax.xlane.f32.xlu2 %v2271_v29  ;;  %2605 = vadd.xlane.f32.xlu1 %v2604_v51  ;;  %4164 = vpow2.f32 %v2475_v13  ;;  %v1664_v13 = vadd.f32 %v6042_v14, %v6032_v52 }
 0x252   : > { %v2231_v26 = vpop.xlane.xlu0 %2230 }
 0x253   : > { %v2081_v37 = vpop.f32.mrf.mxu1  ;;  %v2405_v56 = vsub.f32 %v5675_v3, %v2231_v26 }
 0x254   : > { %v6064_v41 = vadd.f32 %v6025_v63, %v2081_v37  ;;  %v6091_v58 = vpop.f32.mrf.mxu3 }
 0x255   : > { %v2477_v27 = vmul.f32 1.442695, %v2405_v56  ;;  %v6076_v22 = vpop.eup %4164 }
 0x256   : > { %3973 = vmatmul.msk.f32.gmra.mxu2 %vm1802_vm9, %v1765_v24  ;;  %v2274_v11 = vsel %vm2204_vm2, %v6064_v41, -inf  ;;  %v2610_v36 = vsel %vm2204_vm2, %v6076_v22, 0.0 }
 0x257   : > { %2275 = vmax.xlane.f32.xlu0 %v2274_v11  ;;  %2608 = vadd.xlane.f32.xlu2 %v2607_v23  ;;  %4166 = vpow2.f32 %v2477_v27  ;;  %v1769_v11 = vmax.f32 %v1664_v13, 0.0 }
 0x25a   : > { %v2234_v43 = vpop.xlane.xlu1 %2233 }
 0x25b   : > { %v2084_v3 = vpop.f32.mrf.mxu1  ;;  %v2406_v20 = vsub.f32 %v5695_v48, %v2234_v43  ;;  %v1667_v43 = vadd.f32 %v6042_v14, %v6057_v55 }
 0x25c   : > { %v6079_v62 = vadd.f32 %v6025_v63, %v2084_v3  ;;  %v6109_v29 = vpop.f32.mrf.mxu3 }
 0x25d   : > { %v2479_v50 = vmul.f32 1.442695, %v2406_v20  ;;  %v6089_v5 = vpop.eup %4166 }
 0x25e   : > { %3974 = vmatmul.msk.f32.gmra.mxu2 %vm1802_vm9, %v1766_v39  ;;  %v2277_v15 = vsel %vm2204_vm2, %v6079_v62, -inf  ;;  %v2613_v2 = vsel %vm2204_vm2, %v6089_v5, 0.0 }
 0x25f   : > { %2611 = vadd.xlane.f32.xlu0 %v2610_v36  ;;  %2278 = vmax.xlane.f32.xlu1 %v2277_v15  ;;  %4168 = vpow2.f32 %v2479_v50  ;;  %v1770_v36 = vmax.f32 %v1667_v43, 0.0 }
 0x262   : > { %v2237_v59 = vpop.xlane.xlu2 %2236 }
 0x263   : > { %v2087_v48 = vpop.f32.mrf.mxu1  ;;  %v2407_v4 = vsub.f32 %v5715_v19, %v2237_v59  ;;  %v1670_v59 = vadd.f32 %v6042_v14, %v6074_v45 }
 0x264   : > { %v6094_v34 = vadd.f32 %v6025_v63, %v2087_v48  ;;  %v6130_v27 = vpop.f32.mrf.mxu3 }
 0x265   : > { %v2481_v1 = vmul.f32 1.442695, %v2407_v4  ;;  %v6104_v28 = vpop.eup %4168 }
 0x266   : > { %3975 = vmatmul.msk.f32.gmra.mxu2 %vm1802_vm9, %v1767_v31  ;;  %v2280_v47 = vsel %vm2204_vm2, %v6094_v34, -inf  ;;  %v2616_v21 = vsel %vm2204_vm2, %v6104_v28, 0.0 }
 0x267   : > { %2281 = vmax.xlane.f32.xlu2 %v2280_v47  ;;  %2614 = vadd.xlane.f32.xlu1 %v2613_v2  ;;  %4170 = vpow2.f32 %v2481_v1 }
 0x26a   : > { %v2240_v12 = vpop.xlane.xlu0 %2239 }
 0x26b   : > { %v2090_v30 = vpop.f32.mrf.mxu1  ;;  %v2408_v51 = vsub.f32 %v5742_v18, %v2240_v12 }
 0x26c   : > { %v6107_v19 = vadd.f32 %v6025_v63, %v2090_v30  ;;  %v1681_v48 = vpop.f32.mrf.mxu3  ;;  %v1673_v30 = vadd.f32 %v6042_v14, %v6091_v58 }
 0x26d   : > { %v2483_v26 = vmul.f32 1.442695, %v2408_v51  ;;  %v6119_v24 = vpop.eup %4170 }
 0x26e   : > { %3976 = vmatmul.msk.f32.gmra.mxu2 %vm1802_vm9, %v1768_v33  ;;  %v2283_v9 = vsel %vm2204_vm2, %v6107_v19, -inf  ;;  %v2619_v16 = vsel %vm2204_vm2, %v6119_v24, 0.0  ;;  %v1772_v13 = vmax.f32 %v1673_v30, 0.0 }
 0x26f   : > { %2284 = vmax.xlane.f32.xlu0 %v2283_v9  ;;  %2617 = vadd.xlane.f32.xlu2 %v2616_v21  ;;  %4172 = vpow2.f32 %v2483_v26 }
 0x272   : > { %v2243_v37 = vpop.xlane.xlu1 %2242 }
 0x273   : > { %v2093_v56 = vpop.f32.mrf.mxu1  ;;  %v2409_v23 = vsub.f32 %v5770_v60, %v2243_v37 }
 0x274   : > { %v6122_v18 = vadd.f32 %v6025_v63, %v2093_v56  ;;  %v6162_v21 = vpop.f32.mrf.mxu3 }
 0x275   : > { %v2485_v3 = vmul.f32 1.442695, %v2409_v23  ;;  %v6134_v20 = vpop.eup %4172 }
 0x276   : > { %3977 = vmatmul.msk.f32.gmra.mxu2 %vm1802_vm9, %v1769_v11  ;;  %v2286_v52 = vsel %vm2204_vm2, %v6122_v18, -inf  ;;  %v2622_v55 = vsel %vm2204_vm2, %v6134_v20, 0.0  ;;  %v1676_v11 = vadd.f32 %v6042_v14, %v6109_v29 }
 0x277   : > { %2620 = vadd.xlane.f32.xlu0 %v2619_v16  ;;  %2287 = vmax.xlane.f32.xlu1 %v2286_v52  ;;  %4174 = vpow2.f32 %v2485_v3 }
 0x278   : > { %v1773_v3 = vmax.f32 %v1676_v11, 0.0 }
 0x27a   : > { %v2246_v39 = vpop.xlane.xlu2 %2245 }
 0x27b   : > { %v2096_v60 = vpop.f32.mrf.mxu1  ;;  %v2410_v44 = vsub.f32 %v5799_v61, %v2246_v39  ;;  %v1771_v61 = vmax.f32 %v1670_v59, 0.0 }
 0x27c   : > { %v6137_v15 = vadd.f32 %v6025_v63, %v2096_v60  ;;  %v6181_v60 = vpop.f32.mrf.mxu3 }
 0x27d   : > { %v2487_v31 = vmul.f32 1.442695, %v2410_v44  ;;  %v6147_v47 = vpop.eup %4174 }
 0x27e   : > { %3978 = vmatmul.msk.f32.gmra.mxu2 %vm1802_vm9, %v1770_v36  ;;  %v2289_v50 = vsel %vm2204_vm2, %v6137_v15, -inf  ;;  %v2625_v45 = vsel %vm2204_vm2, %v6147_v47, 0.0 }
 0x27f   : > { %2290 = vmax.xlane.f32.xlu2 %v2289_v50  ;;  %2623 = vadd.xlane.f32.xlu1 %v2622_v55  ;;  %4176 = vpow2.f32 %v2487_v31 }
 0x282   : > { %v2249_v4 = vpop.xlane.xlu0 %2248 }
 0x283   : > { %v2099_v2 = vpop.f32.mrf.mxu1  ;;  %v2411_v1 = vsub.f32 %v5830_v54, %v2249_v4 }
 0x284   : > { %v6150_v25 = vadd.f32 %v6025_v63, %v2099_v2 }
 0x285   : > { %v2489_v33 = vmul.f32 1.442695, %v2411_v1  ;;  %v6160_v9 = vpop.eup %4176 }
 0x286   : > { %3979 = vmatmul.msk.f32.gmra.mxu2 %vm1802_vm9, %v1771_v61  ;;  %v2292_v12 = vsel %vm2204_vm2, %v6150_v25, -inf  ;;  %v2628_v56 = vsel %vm2204_vm2, %v6160_v9, 0.0 }
 0x287   : > { %2293 = vmax.xlane.f32.xlu0 %v2292_v12  ;;  %2626 = vadd.xlane.f32.xlu2 %v2625_v45  ;;  %4178 = vpow2.f32 %v2489_v33  ;;  %v1682_v45 = vadd.f32 %v6042_v14, %v1681_v48 }
 0x28a   : > { %v2252_v51 = vpop.xlane.xlu1 %2251 }
 0x28b   : > { %v2102_v54 = vpop.f32.mrf.mxu1  ;;  %v2412_v37 = vsub.f32 %v5859_v8, %v2252_v51 }
 0x28c   : > { %v6165_v26 = vadd.f32 %v6025_v63, %v2102_v54 }
 0x28d   : > { %v2491_v23 = vmul.f32 1.442695, %v2412_v37  ;;  %v6175_v52 = vpop.eup %4178 }
 0x28e   : > { %3980 = vmatmul.msk.f32.gmra.mxu2 %vm1802_vm9, %v1772_v13  ;;  %v2295_v58 = vsel %vm2204_vm2, %v6165_v26, -inf  ;;  %v2631_v44 = vsel %vm2204_vm2, %v6175_v52, 0.0 }
 0x28f   : > { %2629 = vadd.xlane.f32.xlu0 %v2628_v56  ;;  %2296 = vmax.xlane.f32.xlu1 %v2295_v58  ;;  %4180 = vpow2.f32 %v2491_v23  ;;  %v1775_v56 = vmax.f32 %v1682_v45, 0.0 }
 0x292   : > { %v2255_v16 = vpop.xlane.xlu2 %2254 }
 0x293   : > { %v2413_v43 = vsub.f32 %v5888_v46, %v2255_v16  ;;  %v2105_v8 = vpop.f32.mrf.mxu1  ;;  %v1679_v46 = vadd.f32 %v6042_v14, %v6130_v27  ;;  %v6200_v27 = vpop.f32.mrf.mxu3 }
 0x294   : > { %v6179_v39 = vadd.f32 %v6025_v63, %v2105_v8 }
 0x295   : > { %v2493_v36 = vmul.f32 1.442695, %v2413_v43  ;;  %v6190_v59 = vpop.eup %4180  ;;  %v1774_v31 = vmax.f32 %v1679_v46, 0.0 }
 0x296   : > { %3981 = vmatmul.msk.f32.gmra.mxu2 %vm1802_vm9, %v1773_v3  ;;  %v2298_v29 = vsel %vm2204_vm2, %v6179_v39, -inf  ;;  %v2634_v12 = vsel %vm2204_vm2, %v6190_v59, 0.0  ;;  %v1685_v3 = vadd.f32 %v6042_v14, %v6162_v21 }
 0x297   : > { %4182 = vpow2.f32 %v2493_v36  ;;  %2299 = vmax.xlane.f32.xlu2 %v2298_v29  ;;  %2632 = vadd.xlane.f32.xlu1 %v2631_v44 }
 0x298   : > { %v1776_v45 = vmax.f32 %v1685_v3, 0.0 }
 0x29a   : > { %v2591_v50 = vpop.xlane.xlu2 %2590  ;;  %v2258_v55 = vpop.xlane.xlu0 %2257 }
 0x29b   : > { %4184 = vrcp.f32 %v2591_v50  ;;  %v2414_v4 = vsub.f32 %v5918_v7, %v2258_v55  ;;  %v2792_v11 = vand.u32 2147483648, %v2591_v50  ;;  %v2790_v48 = vand.u32 2147483647, %v2591_v50  ;;  %v6216_v44 = vpop.f32.mrf.mxu3 }
 0x29c   : > { %vm2786_vm14 = vweird.f32 %v2591_v50 }
 0x29d   : > { %v6193_v2 = vpop.eup %4182  ;;  %v2495_v61 = vmul.f32 1.442695, %v2414_v4  ;;  %v2793_v46 = vor.u32 1.1754944e-38, %v2792_v11  ;;  %vm2791_vm1 = vcmp.eq.f32.partialorder %v2790_v48, 8.507059e+37  ;;  %v1688_v11 = vadd.f32 %v6042_v14, %v6181_v60 }
 0x29e   : > { %3982 = vmatmul.msk.f32.gmra.mxu2 %vm1802_vm9, %v1774_v31  ;;  %v2637_v1 = vsel %vm2204_vm2, %v6193_v2, 0.0 }
 0x29f   : > { %2638 = vadd.xlane.f32.xlu0 %v2637_v1  ;;  %2635 = vadd.xlane.f32.xlu2 %v2634_v12  ;;  %4186 = vpow2.f32 %v2495_v61 }
 0x2a1   : > { %v4185_v30 = vpop.eup %4184  ;;  %v2108_v7 = vpop.f32.mrf.mxu2 }
 0x2a2   : > { %v2782_v33 = vmul.f32 %v4185_v30, %v2591_v50  ;;  %v6204_v51 = vadd.f32 %v6025_v63, %v2108_v7  ;;  %v2261_v54 = vpop.xlane.xlu1 %2260  ;;  %v2594_v13 = vpop.xlane.xlu0 %2593  ;;  %vm2787_vm0 = vweird.f32 %v4185_v30 }
 0x2a3   : > { %v2415_v37 = vsub.f32 %v5953_v17, %v2261_v54  ;;  %4188 = vrcp.f32 %v2594_v13  ;;  %vm2788_vm15 = vmor %vm2786_vm14, %vm2787_vm0  ;;  %v2807_v54 = vand.u32 2147483648, %v2594_v13  ;;  %vm2801_vm4 = vweird.f32 %v2594_v13 }
 0x2a4   : > { %v2783_v58 = vsub.f32 1.0, %v2782_v33  ;;  %v2301_v8 = vsel %vm2204_vm2, %v6204_v51, -inf }
 0x2a5   : > { %v2497_v23 = vmul.f32 1.442695, %v2415_v37  ;;  %v6207_v16 = vpop.eup %4186  ;;  %v2808_v48 = vor.u32 1.1754944e-38, %v2807_v54 }
 0x2a6   : > { %v2784_v43 = vmul.f32 %v4185_v30, %v2783_v58  ;;  %3983 = vmatmul.msk.f32.gmra.mxu2 %vm1802_vm9, %v1775_v56  ;;  %v2640_v17 = vsel %vm2204_vm2, %v6207_v16, 0.0  ;;  %v2805_v58 = vand.u32 2147483647, %v2594_v13 }
 0x2a7   : > { %4190 = vpow2.f32 %v2497_v23  ;;  %2302 = vmax.xlane.f32.xlu0 %v2301_v8  ;;  %2641 = vadd.xlane.f32.xlu1 %v2640_v17 }
 0x2a8   : > { %v2785_v36 = vadd.f32 %v4185_v30, %v2784_v43  ;;  %vm2806_vm6 = vcmp.eq.f32.partialorder %v2805_v58, 8.507059e+37 }
 0x2a9   : > { %v4189_v29 = vpop.eup %4188  ;;  %v2111_v55 = vpop.f32.mrf.mxu2 }
 0x2aa   : > { %v2789_v31 = vsel %vm2788_vm15, %v4185_v30, %v2785_v36  ;;  %v2797_v4 = vmul.f32 %v4189_v29, %v2594_v13  ;;  %v2264_v61 = vpop.xlane.xlu2 %2263  ;;  %v6218_v1 = vpop.xlane.xlu1 %2596  ;;  %v6228_v50 = vadd.f32 %v6025_v63, %v2111_v55  ;;  %vm2802_vm3 = vweird.f32 %v4189_v29 }
 0x2ab   : > { %v2794_v21 = vsel %vm2791_vm1, %v2793_v46, %v2789_v31  ;;  %v2416_v12 = vsub.f32 %v5978_v0, %v2264_v61  ;;  %4192 = vrcp.f32 %v6218_v1  ;;  %vm2803_vm5 = vmor %vm2801_vm4, %vm2802_vm3  ;;  %v6250_v31 = vpop.f32.mrf.mxu3  ;;  %v1777_v13 = vmax.f32 %v1688_v11, 0.0 }
 0x2ac   : > { %v2795_v30 = vmul.f32 %v5915_v57, %v2794_v21  ;;  %v2798_v7 = vsub.f32 1.0, %v2797_v4  ;;  %v2304_v57 = vsel %vm2204_vm2, %v6228_v50, -inf  ;;  %vm2816_vm8 = vweird.f32 %v6218_v1 }
 0x2ad   : > { %v6233_v33 = vpop.eup %4190  ;;  %v2499_v37 = vmul.f32 1.442695, %v2416_v12  ;;  %v2820_v12 = vand.u32 2147483647, %v6218_v1 }
 0x2ae   : > { %3741 = vst.msk [vmem:[%s6225_s14] sm:$0xff] %vm2204_vm2, %v2795_v30  ;;  %v2799_v56 = vmul.f32 %v4189_v29, %v2798_v7  ;;  %3984 = vmatmul.msk.f32.gmra.mxu2 %vm1802_vm9, %v1776_v45  ;;  %v2643_v0 = vsel %vm2204_vm2, %v6233_v33, 0.0  ;;  %v2822_v45 = vand.u32 2147483648, %v6218_v1 }
 0x2af   : > { %4194 = vpow2.f32 %v2499_v37  ;;  %2644 = vadd.xlane.f32.xlu2 %v2643_v0  ;;  %2305 = vmax.xlane.f32.xlu1 %v2304_v57  ;;  %vm2821_vm11 = vcmp.eq.f32.partialorder %v2820_v12, 8.507059e+37  ;;  %v1694_v12 = vadd.f32 %v6042_v14, %v6216_v44 }
 0x2b0   : > { %v2800_v23 = vadd.f32 %v4189_v29, %v2799_v56  ;;  %v2823_v58 = vor.u32 1.1754944e-38, %v2822_v45 }
 0x2b1   : > { %v4193_v43 = vpop.eup %4192  ;;  %v2114_v8 = vpop.f32.mrf.mxu2 }
 0x2b2   : > { %v2804_v17 = vsel %vm2803_vm5, %v4189_v29, %v2800_v23  ;;  %v2812_v3 = vmul.f32 %v4193_v43, %v6218_v1  ;;  %v6246_v36 = vadd.f32 %v6025_v63, %v2114_v8  ;;  %v6248_v46 = vpop.xlane.xlu2 %2599  ;;  %v2267_v55 = vpop.xlane.xlu0 %2266  ;;  %vm2817_vm7 = vweird.f32 %v4193_v43 }
 0x2b3   : > { %v2809_v60 = vsel %vm2806_vm6, %v2808_v48, %v2804_v17  ;;  %4196 = vrcp.f32 %v6248_v46  ;;  %v2417_v29 = vsub.f32 %v6005_v38, %v2267_v55  ;;  %v1691_v38 = vadd.f32 %v6042_v14, %v6200_v27  ;;  %vm2818_vm10 = vmor %vm2816_vm8, %vm2817_vm7 }
 0x2b4   : > { %v2810_v4 = vmul.f32 %v5947_v40, %v2809_v60  ;;  %v2813_v61 = vsub.f32 1.0, %v2812_v3  ;;  %v2307_v40 = vsel %vm2204_vm2, %v6246_v36, -inf  ;;  %v2837_v60 = vand.u32 2147483648, %v6248_v46 }
 0x2b5   : > { %v6255_v21 = vpop.eup %4194  ;;  %v2501_v7 = vmul.f32 1.442695, %v2417_v29  ;;  %v1778_v17 = vmax.f32 %v1691_v38, 0.0  ;;  %v2835_v29 = vand.u32 2147483647, %v6248_v46  ;;  %vm2831_vm13 = vweird.f32 %v6248_v46 }
 0x2b6   : > { %3742 = vst.msk [vmem:[%s6225_s14 + $0x8] sm:$0xff] %vm2204_vm2, %v2810_v4  ;;  %v2814_v30 = vmul.f32 %v4193_v43, %v2813_v61  ;;  %3985 = vmatmul.msk.f32.gmra.mxu2 %vm1802_vm9, %v1777_v13  ;;  %v2646_v54 = vsel %vm2204_vm2, %v6255_v21, 0.0 }
 0x2b7   : > { %2647 = vadd.xlane.f32.xlu0 %v2646_v54  ;;  %2308 = vmax.xlane.f32.xlu2 %v2307_v40  ;;  %4198 = vpow2.f32 %v2501_v7  ;;  %v2838_v7 = vor.u32 1.1754944e-38, %v2837_v60  ;;  %vm2836_vm14 = vcmp.eq.f32.partialorder %v2835_v29, 8.507059e+37  ;;  %v1697_v60 = vadd.f32 %v6042_v14, %v6250_v31 }
 0x2b8   : > { %v2815_v37 = vadd.f32 %v4193_v43, %v2814_v30 }
 0x2b9   : > { %v4197_v56 = vpop.eup %4196  ;;  %v2117_v0 = vpop.f32.mrf.mxu2 }
 0x2ba   : > { %v2819_v57 = vsel %vm2818_vm10, %v4193_v43, %v2815_v37  ;;  %v2827_v11 = vmul.f32 %v4197_v56, %v6248_v46  ;;  %v6272_v23 = vadd.f32 %v6025_v63, %v2117_v0  ;;  %v2270_v48 = vpop.xlane.xlu1 %2269  ;;  %v6274_v8 = vpop.xlane.xlu0 %2602  ;;  %vm2832_vm12 = vweird.f32 %v4197_v56 }
 0x2bb   : > { %v2824_v27 = vsel %vm2821_vm11, %v2823_v58, %v2819_v57  ;;  %v2418_v1 = vsub.f32 %v6028_v6, %v2270_v48  ;;  %4200 = vrcp.f32 %v6274_v8  ;;  %v6279_v43 = vpop.f32.mrf.mxu3  ;;  %vm2833_vm0 = vmor %vm2831_vm13, %vm2832_vm12  ;;  %v1779_v46 = vmax.f32 %v1694_v12, 0.0 }
 0x2bc   : > { %v2825_v3 = vmul.f32 %v5975_v53, %v2824_v27  ;;  %v2828_v55 = vsub.f32 1.0, %v2827_v11  ;;  %v2310_v6 = vsel %vm2204_vm2, %v6272_v23, -inf  ;;  %vm2846_vm1 = vweird.f32 %v6274_v8 }
 0x2bd   : > { %v2503_v13 = vmul.f32 1.442695, %v2418_v1  ;;  %v6282_v4 = vpop.eup %4198 }
 0x2be   : > { %3743 = vst.msk [vmem:[%s6225_s14 + $0x10] sm:$0xff] %vm2204_vm2, %v2825_v3  ;;  %v2829_v61 = vmul.f32 %v4197_v56, %v2828_v55  ;;  %3986 = vmatmul.msk.f32.gmra.mxu2 %vm1802_vm9, %v1778_v17  ;;  %v2649_v53 = vsel %vm2204_vm2, %v6282_v4, 0.0  ;;  %v2850_v3 = vand.u32 2147483647, %v6274_v8 }
 0x2bf   : > { %4202 = vpow2.f32 %v2503_v13  ;;  %2311 = vmax.xlane.f32.xlu0 %v2310_v6  ;;  %2650 = vadd.xlane.f32.xlu1 %v2649_v53 }
 0x2c0   : > { %v2830_v45 = vadd.f32 %v4197_v56, %v2829_v61  ;;  %vm2851_vm4 = vcmp.eq.f32.partialorder %v2850_v3, 8.507059e+37 }
 0x2c1   : > { %v4201_v30 = vpop.eup %4200  ;;  %v2120_v54 = vpop.f32.mrf.mxu2 }
 0x2c2   : > { %v2834_v40 = vsel %vm2833_vm0, %v4197_v56, %v2830_v45  ;;  %v2842_v38 = vmul.f32 %v4201_v30, %v6274_v8  ;;  %v2273_v37 = vpop.xlane.xlu2 %2272  ;;  %v6296_v58 = vpop.xlane.xlu1 %2605  ;;  %v6299_v57 = vadd.f32 %v6025_v63, %v2120_v54  ;;  %v2852_v56 = vand.u32 2147483648, %v6274_v8 }
 0x2c3   : > { %v2839_v0 = vsel %vm2836_vm14, %v2838_v7, %v2834_v40  ;;  %v2419_v44 = vsub.f32 %v6049_v35, %v2273_v37  ;;  %4204 = vrcp.f32 %v6296_v58  ;;  %vm2847_vm15 = vweird.f32 %v4201_v30  ;;  %v6313_v55 = vpop.f32.mrf.mxu3 }
 0x2c4   : > { %v2840_v11 = vmul.f32 %v6000_v32, %v2839_v0  ;;  %v2843_v48 = vsub.f32 1.0, %v2842_v38  ;;  %v2313_v32 = vsel %vm2204_vm2, %v6299_v57, -inf  ;;  %vm2848_vm3 = vmor %vm2846_vm1, %vm2847_vm15  ;;  %v2853_v29 = vor.u32 1.1754944e-38, %v2852_v56 }
 0x2c5   : > { %v6304_v27 = vpop.eup %4202  ;;  %v2505_v1 = vmul.f32 1.442695, %v2419_v44  ;;  %v1780_v8 = vmax.f32 %v1697_v60, 0.0  ;;  %v2865_v0 = vand.u32 2147483647, %v6296_v58  ;;  %v2867_v44 = vand.u32 2147483648, %v6296_v58 }
 0x2c6   : > { %3744 = vst.msk [vmem:[%s6225_s14 + $0x18] sm:$0xff] %vm2204_vm2, %v2840_v11  ;;  %v2844_v17 = vmul.f32 %v4201_v30, %v2843_v48  ;;  %3987 = vmatmul.msk.f32.gmra.mxu2 %vm1802_vm9, %v1779_v46  ;;  %v2652_v35 = vsel %vm2204_vm2, %v6304_v27, 0.0  ;;  %vm2861_vm6 = vweird.f32 %v6296_v58 }
 0x2c7   : > { %4206 = vpow2.f32 %v2505_v1  ;;  %2653 = vadd.xlane.f32.xlu2 %v2652_v35  ;;  %2314 = vmax.xlane.f32.xlu1 %v2313_v32  ;;  %v2868_v3 = vor.u32 1.1754944e-38, %v2867_v44  ;;  %vm2866_vm8 = vcmp.eq.f32.partialorder %v2865_v0, 8.507059e+37 }
 0x2c8   : > { %v2845_v13 = vadd.f32 %v4201_v30, %v2844_v17 }
 0x2c9   : > { %v4205_v61 = vpop.eup %4204  ;;  %v2123_v6 = vpop.f32.mrf.mxu2 }
 0x2ca   : > { %v2849_v53 = vsel %vm2848_vm3, %v4201_v30, %v2845_v13  ;;  %v2857_v12 = vmul.f32 %v4205_v61, %v6296_v58  ;;  %v6322_v45 = vadd.f32 %v6025_v63, %v2123_v6  ;;  %v6324_v7 = vpop.xlane.xlu2 %2608  ;;  %v2276_v54 = vpop.xlane.xlu0 %2275  ;;  %vm2862_vm5 = vweird.f32 %v4205_v61 }
 0x2cb   : > { %v2854_v31 = vsel %vm2851_vm4, %v2853_v29, %v2849_v53  ;;  %4208 = vrcp.f32 %v6324_v7  ;;  %v2420_v37 = vsub.f32 %v6064_v41, %v2276_v54  ;;  %v1700_v41 = vadd.f32 %v6042_v14, %v6279_v43  ;;  %v1705_v17 = vpop.f32.mrf.mxu3  ;;  %vm2863_vm7 = vmor %vm2861_vm6, %vm2862_vm5 }
 0x2cc   : > { %v2855_v40 = vmul.f32 %v6020_v49, %v2854_v31  ;;  %v2858_v38 = vsub.f32 1.0, %v2857_v12  ;;  %v2316_v49 = vsel %vm2204_vm2, %v6322_v45, -inf  ;;  %v2882_v31 = vand.u32 2147483648, %v6324_v7 }
 0x2cd   : > { %v6329_v30 = vpop.eup %4206  ;;  %v2507_v11 = vmul.f32 1.442695, %v2420_v37  ;;  %v1781_v53 = vmax.f32 %v1700_v41, 0.0  ;;  %v1703_v37 = vadd.f32 %v6042_v14, %v6313_v55  ;;  %vm2876_vm11 = vweird.f32 %v6324_v7 }
 0x2ce   : > { %3745 = vst.msk [vmem:[%s6225_s14 + $0x20] sm:$0xff] %vm2204_vm2, %v2855_v40  ;;  %v2859_v46 = vmul.f32 %v4205_v61, %v2858_v38  ;;  %3988 = vmatmul.msk.f32.gmra.mxu2 %vm1802_vm9, %v1780_v8  ;;  %v2655_v48 = vsel %vm2204_vm2, %v6329_v30, 0.0  ;;  %v2880_v38 = vand.u32 2147483647, %v6324_v7 }
 0x2cf   : > { %2656 = vadd.xlane.f32.xlu0 %v2655_v48  ;;  %2317 = vmax.xlane.f32.xlu2 %v2316_v49  ;;  %4210 = vpow2.f32 %v2507_v11 }
 0x2d0   : > { %v2860_v56 = vadd.f32 %v4205_v61, %v2859_v46  ;;  %v2883_v46 = vor.u32 1.1754944e-38, %v2882_v31  ;;  %vm2881_vm13 = vcmp.eq.f32.partialorder %v2880_v38, 8.507059e+37 }
 0x2d1   : > { %v4209_v1 = vpop.eup %4208  ;;  %v2126_v35 = vpop.f32.mrf.mxu2 }
 0x2d2   : > { %v2864_v32 = vsel %vm2863_vm7, %v4205_v61, %v2860_v56  ;;  %v2872_v60 = vmul.f32 %v4209_v1, %v6324_v7  ;;  %v6346_v13 = vadd.f32 %v6025_v63, %v2126_v35  ;;  %v2279_v29 = vpop.xlane.xlu1 %2278  ;;  %v2612_v43 = vpop.xlane.xlu0 %2611  ;;  %vm2877_vm10 = vweird.f32 %v4209_v1 }
 0x2d3   : > { %v2869_v6 = vsel %vm2866_vm8, %v2868_v3, %v2864_v32  ;;  %v2421_v58 = vsub.f32 %v6079_v62, %v2279_v29  ;;  %4212 = vrcp.f32 %v2612_v43  ;;  %vm2878_vm12 = vmor %vm2876_vm11, %vm2877_vm10  ;;  %v1708_v3 = vpop.f32.mrf.mxu3  ;;  %v1782_v7 = vmax.f32 %v1703_v37, 0.0 }
 0x2d4   : > { %v2870_v12 = vmul.f32 %v6046_v42, %v2869_v6  ;;  %v2873_v54 = vsub.f32 1.0, %v2872_v60  ;;  %v2319_v62 = vsel %vm2204_vm2, %v6346_v13, -inf  ;;  %v2897_v6 = vand.u32 2147483648, %v2612_v43 }
 0x2d5   : > { %v2509_v8 = vmul.f32 1.442695, %v2421_v58  ;;  %v6351_v61 = vpop.eup %4210  ;;  %vm2891_vm14 = vweird.f32 %v2612_v43 }
 0x2d6   : > { %3746 = vst.msk [vmem:[%s6225_s14 + $0x28] sm:$0xff] %vm2204_vm2, %v2870_v12  ;;  %v2874_v40 = vmul.f32 %v4209_v1, %v2873_v54  ;;  %3989 = vmatmul.msk.f32.gmra.mxu2 %vm1802_vm9, %v1781_v53  ;;  %v2658_v42 = vsel %vm2204_vm2, %v6351_v61, 0.0  ;;  %v2895_v12 = vand.u32 2147483647, %v2612_v43  ;;  %v1706_v54 = vadd.f32 %v6042_v14, %v1705_v17 }
 0x2d7   : > { %4214 = vpow2.f32 %v2509_v8  ;;  %2320 = vmax.xlane.f32.xlu0 %v2319_v62  ;;  %2659 = vadd.xlane.f32.xlu1 %v2658_v42 }
 0x2d8   : > { %v2875_v0 = vadd.f32 %v4209_v1, %v2874_v40  ;;  %v2898_v40 = vor.u32 1.1754944e-38, %v2897_v6  ;;  %vm2896_vm1 = vcmp.eq.f32.partialorder %v2895_v12, 8.507059e+37  ;;  %v1783_v17 = vmax.f32 %v1706_v54, 0.0 }
 0x2d9   : > { %v4213_v44 = vpop.eup %4212  ;;  %v2129_v11 = vpop.f32.mrf.mxu2 }
 0x2da   : > { %v2879_v48 = vsel %vm2878_vm12, %v4209_v1, %v2875_v0  ;;  %v2887_v49 = vmul.f32 %v4213_v44, %v2612_v43  ;;  %v2282_v41 = vpop.xlane.xlu2 %2281  ;;  %v6364_v56 = vpop.xlane.xlu1 %2614  ;;  %v6367_v32 = vadd.f32 %v6025_v63, %v2129_v11  ;;  %vm2892_vm0 = vweird.f32 %v4213_v44 }
 0x2db   : > { %v2884_v35 = vsel %vm2881_vm13, %v2883_v46, %v2879_v48  ;;  %v2422_v55 = vsub.f32 %v6094_v34, %v2282_v41  ;;  %4216 = vrcp.f32 %v6364_v56  ;;  %vm2893_vm15 = vmor %vm2891_vm14, %vm2892_vm0  ;;  %v1711_v41 = vpop.f32.mrf.mxu3  ;;  %vm2906_vm4 = vweird.f32 %v6364_v56 }
 0x2dc   : > { %v2885_v60 = vmul.f32 %v6061_v10, %v2884_v35  ;;  %v2888_v29 = vsub.f32 1.0, %v2887_v49  ;;  %v2322_v10 = vsel %vm2204_vm2, %v6367_v32, -inf  ;;  %v2910_v35 = vand.u32 2147483647, %v6364_v56 }
 0x2dd   : > { %v6372_v1 = vpop.eup %4214  ;;  %v2511_v58 = vmul.f32 1.442695, %v2422_v55  ;;  %v2912_v55 = vand.u32 2147483648, %v6364_v56 }
 0x2de   : > { %3747 = vst.msk [vmem:[%s6225_s14 + $0x30] sm:$0xff] %vm2204_vm2, %v2885_v60  ;;  %v2889_v53 = vmul.f32 %v4213_v44, %v2888_v29  ;;  %3990 = vmatmul.msk.f32.gmra.mxu2 %vm1802_vm9, %v1782_v7  ;;  %v2661_v34 = vsel %vm2204_vm2, %v6372_v1, 0.0  ;;  %v1709_v29 = vadd.f32 %v6042_v14, %v1708_v3  ;;  %vm2911_vm6 = vcmp.eq.f32.partialorder %v2910_v35, 8.507059e+37 }
 0x2df   : > { %4218 = vpow2.f32 %v2511_v58  ;;  %2662 = vadd.xlane.f32.xlu2 %v2661_v34  ;;  %2323 = vmax.xlane.f32.xlu1 %v2322_v10 }
 0x2e0   : > { %v2890_v31 = vadd.f32 %v4213_v44, %v2889_v53  ;;  %v2913_v53 = vor.u32 1.1754944e-38, %v2912_v55 }
 0x2e1   : > { %v4217_v8 = vpop.eup %4216  ;;  %v2132_v38 = vpop.f32.mrf.mxu2 }
 0x2e2   : > { %v2894_v62 = vsel %vm2893_vm15, %v4213_v44, %v2890_v31  ;;  %v2902_v42 = vmul.f32 %v4217_v8, %v6364_v56  ;;  %v6384_v37 = vadd.f32 %v6025_v63, %v2132_v38  ;;  %v6386_v0 = vpop.xlane.xlu2 %2617  ;;  %v2285_v46 = vpop.xlane.xlu0 %2284  ;;  %vm2907_vm3 = vweird.f32 %v4217_v8 }
 0x2e3   : > { %v2899_v11 = vsel %vm2896_vm1, %v2898_v40, %v2894_v62  ;;  %4220 = vrcp.f32 %v6386_v0  ;;  %v2423_v49 = vsub.f32 %v6107_v19, %v2285_v46  ;;  %vm2908_vm5 = vmor %vm2906_vm4, %vm2907_vm3  ;;  %v1784_v38 = vmax.f32 %v1709_v29, 0.0 }
 0x2e4   : > { %v2900_v43 = vmul.f32 %v6076_v22, %v2899_v11  ;;  %v2903_v48 = vsub.f32 1.0, %v2902_v42  ;;  %v2325_v19 = vsel %vm2204_vm2, %v6384_v37, -inf  ;;  %vm2921_vm8 = vweird.f32 %v6386_v0 }
 0x2e5   : > { %v6391_v44 = vpop.eup %4218  ;;  %v2513_v60 = vmul.f32 1.442695, %v2423_v49  ;;  %v1712_v49 = vadd.f32 %v6042_v14, %v1711_v41 }
 0x2e6   : > { %3748 = vst.msk [vmem:[%s6225_s14 + $0x38] sm:$0xff] %vm2204_vm2, %v2900_v43  ;;  %v2904_v7 = vmul.f32 %v4217_v8, %v2903_v48  ;;  %3991 = vmatmul.msk.f32.gmra.mxu2 %vm1802_vm9, %v1783_v17  ;;  %v2664_v22 = vsel %vm2204_vm2, %v6391_v44, 0.0  ;;  %v2925_v43 = vand.u32 2147483647, %v6386_v0  ;;  %v1714_v48 = vpop.f32.mrf.mxu3 }
 0x2e7   : > { %2665 = vadd.xlane.f32.xlu0 %v2664_v22  ;;  %2326 = vmax.xlane.f32.xlu2 %v2325_v19  ;;  %4222 = vpow2.f32 %v2513_v60 }
 0x2e8   : > { %v2905_v6 = vadd.f32 %v4217_v8, %v2904_v7  ;;  %vm2926_vm11 = vcmp.eq.f32.partialorder %v2925_v43, 8.507059e+37 }
 0x2e9   : > { %v4221_v58 = vpop.eup %4220  ;;  %v2135_v12 = vpop.f32.mrf.mxu2 }
 0x2ea   : > { %v2909_v34 = vsel %vm2908_vm5, %v4217_v8, %v2905_v6  ;;  %v2917_v10 = vmul.f32 %v4221_v58, %v6386_v0  ;;  %v6407_v54 = vadd.f32 %v6025_v63, %v2135_v12  ;;  %v2288_v31 = vpop.xlane.xlu1 %2287  ;;  %v6409_v40 = vpop.xlane.xlu0 %2620  ;;  %v2927_v8 = vand.u32 2147483648, %v6386_v0 }
 0x2eb   : > { %v2914_v3 = vsel %vm2911_vm6, %v2913_v53, %v2909_v34  ;;  %v2424_v56 = vsub.f32 %v6122_v18, %v2288_v31  ;;  %4224 = vrcp.f32 %v6409_v40  ;;  %vm2922_vm7 = vweird.f32 %v4221_v58 }
 0x2ec   : > { %v2915_v62 = vmul.f32 %v6089_v5, %v2914_v3  ;;  %v2918_v42 = vsub.f32 1.0, %v2917_v10  ;;  %v2328_v18 = vsel %vm2204_vm2, %v6407_v54, -inf  ;;  %vm2923_vm10 = vmor %vm2921_vm8, %vm2922_vm7  ;;  %v2928_v7 = vor.u32 1.1754944e-38, %v2927_v8 }
 0x2ed   : > { %v2515_v46 = vmul.f32 1.442695, %v2424_v56  ;;  %v6415_v11 = vpop.eup %4222  ;;  %v1785_v0 = vmax.f32 %v1712_v49, 0.0  ;;  %v6450_v56 = vld [vmem:[%s6991_s2] ss:$0 sm:$0xff]  ;;  %vm2936_vm13 = vweird.f32 %v6409_v40 }
 0x2ee   : > { %3749 = vst.msk [vmem:[%s6225_s14 + $0x40] sm:$0xff] %vm2204_vm2, %v2915_v62  ;;  %v2919_v17 = vmul.f32 %v4221_v58, %v2918_v42  ;;  %3992 = vmatmul.msk.f32.gmra.mxu2 %vm1802_vm9, %v1784_v38  ;;  %v2667_v5 = vsel %vm2204_vm2, %v6415_v11, 0.0  ;;  %v1715_v38 = vadd.f32 %v6450_v56, %v1714_v48  ;;  %v1717_v8 = vpop.f32.mrf.mxu3 }
 0x2ef   : > { %4226 = vpow2.f32 %v2515_v46  ;;  %2329 = vmax.xlane.f32.xlu0 %v2328_v18  ;;  %2668 = vadd.xlane.f32.xlu1 %v2667_v5  ;;  %v6458_v5 = vld [vmem:[%s6993_s4] ss:$0 sm:$0xff] }
 0x2f0   : > { %v2920_v35 = vadd.f32 %v4221_v58, %v2919_v17 }
 0x2f1   : > { %v4225_v55 = vpop.eup %4224  ;;  %v2138_v60 = vpop.f32.mrf.mxu2 }
 0x2f2   : > { %v2924_v22 = vsel %vm2923_vm10, %v4221_v58, %v2920_v35  ;;  %v2932_v19 = vmul.f32 %v4225_v55, %v6409_v40  ;;  %v2291_v29 = vpop.xlane.xlu2 %2290  ;;  %v6428_v6 = vpop.xlane.xlu1 %2623  ;;  %v6431_v12 = vadd.f32 %v6025_v63, %v2138_v60  ;;  %v2942_v58 = vand.u32 2147483648, %v6409_v40 }
 0x2f3   : > { %v2929_v53 = vsel %vm2926_vm11, %v2928_v7, %v2924_v22  ;;  %v2425_v14 = vsub.f32 %v6137_v15, %v2291_v29  ;;  %4228 = vrcp.f32 %v6428_v6  ;;  %vm2937_vm12 = vweird.f32 %v4225_v55 }
 0x2f4   : > { %v2930_v41 = vmul.f32 %v6104_v28, %v2929_v53  ;;  %v2933_v34 = vsub.f32 1.0, %v2932_v19  ;;  %v2940_v63 = vand.u32 2147483647, %v6409_v40  ;;  %v2331_v28 = vsel %vm2204_vm2, %v6431_v12, -inf  ;;  %vm2938_vm0 = vmor %vm2936_vm13, %vm2937_vm12 }
 0x2f5   : > { %v6436_v10 = vpop.eup %4226  ;;  %v2517_v31 = vmul.f32 1.442695, %v2425_v14  ;;  %v2943_v46 = vor.u32 1.1754944e-38, %v2942_v58  ;;  %v1786_v7 = vmax.f32 %v1715_v38, 0.0  ;;  %v2955_v29 = vand.u32 2147483647, %v6428_v6 }
 0x2f6   : > { %3750 = vst.msk [vmem:[%s6225_s14 + $0x48] sm:$0xff] %vm2204_vm2, %v2930_v41  ;;  %v2934_v3 = vmul.f32 %v4225_v55, %v2933_v34  ;;  %3993 = vmatmul.msk.f32.gmra.mxu2 %vm1802_vm9, %v1785_v0  ;;  %v2670_v15 = vsel %vm2204_vm2, %v6436_v10, 0.0  ;;  %vm2941_vm14 = vcmp.eq.f32.partialorder %v2940_v63, 8.507059e+37  ;;  %v2957_v53 = vand.u32 2147483648, %v6428_v6 }
 0x2f7   : > { %4230 = vpow2.f32 %v2517_v31  ;;  %2671 = vadd.xlane.f32.xlu2 %v2670_v15  ;;  %2332 = vmax.xlane.f32.xlu1 %v2331_v28  ;;  %vm2951_vm1 = vweird.f32 %v6428_v6  ;;  %vm2956_vm4 = vcmp.eq.f32.partialorder %v2955_v29, 8.507059e+37 }
 0x2f8   : > { %v2935_v62 = vadd.f32 %v4225_v55, %v2934_v3  ;;  %v2958_v31 = vor.u32 1.1754944e-38, %v2957_v53 }
 0x2f9   : > { %v4229_v42 = vpop.eup %4228  ;;  %v2141_v17 = vpop.f32.mrf.mxu2 }
 0x2fa   : > { %v2939_v43 = vsel %vm2938_vm0, %v4225_v55, %v2935_v62  ;;  %v2947_v18 = vmul.f32 %v4229_v42, %v6428_v6  ;;  %v6461_v48 = vadd.f32 %v6458_v5, %v2141_v17  ;;  %v6463_v40 = vpop.xlane.xlu2 %2626  ;;  %v2294_v49 = vpop.xlane.xlu0 %2293  ;;  %vm2952_vm15 = vweird.f32 %v4229_v42 }
 0x2fb   : > { %v2944_v35 = vsel %vm2941_vm14, %v2943_v46, %v2939_v43  ;;  %4232 = vrcp.f32 %v6463_v40  ;;  %v2426_v22 = vsub.f32 %v6150_v25, %v2294_v49  ;;  %v1718_v25 = vadd.f32 %v6450_v56, %v1717_v8  ;;  %vm2953_vm3 = vmor %vm2951_vm1, %vm2952_vm15  ;;  %v1720_v8 = vpop.f32.mrf.mxu3 }
 0x2fc   : > { %v2945_v55 = vmul.f32 %v6119_v24, %v2944_v35  ;;  %v2948_v60 = vsub.f32 1.0, %v2947_v18  ;;  %v2334_v24 = vsel %vm2204_vm2, %v6461_v48, -inf  ;;  %v2972_v18 = vand.u32 2147483648, %v6463_v40 }
 0x2fd   : > { %v6468_v19 = vpop.eup %4230  ;;  %v2519_v0 = vmul.f32 1.442695, %v2426_v22  ;;  %v1787_v17 = vmax.f32 %v1718_v25, 0.0  ;;  %vm2966_vm6 = vweird.f32 %v6463_v40 }
 0x2fe   : > { %3751 = vst.msk [vmem:[%s6225_s14 + $0x50] sm:$0xff] %vm2204_vm2, %v2945_v55  ;;  %v2949_v14 = vmul.f32 %v4229_v42, %v2948_v60  ;;  %3994 = vmatmul.msk.f32.gmra.mxu2 %vm1802_vm9, %v1786_v7  ;;  %v2673_v41 = vsel %vm2204_vm2, %v6468_v19, 0.0  ;;  %v2970_v55 = vand.u32 2147483647, %v6463_v40  ;;  %v1721_v60 = vadd.f32 %v6450_v56, %v1720_v8 }
 0x2ff   : > { %2674 = vadd.xlane.f32.xlu0 %v2673_v41  ;;  %2335 = vmax.xlane.f32.xlu2 %v2334_v24  ;;  %4234 = vpow2.f32 %v2519_v0  ;;  %v2973_v53 = vor.u32 1.1754944e-38, %v2972_v18 }
 0x300   : > { %v2950_v34 = vadd.f32 %v4229_v42, %v2949_v14  ;;  %vm2971_vm8 = vcmp.eq.f32.partialorder %v2970_v55, 8.507059e+37 }
 0x301   : > { %v4233_v58 = vpop.eup %4232  ;;  %v2144_v3 = vpop.f32.mrf.mxu2 }
 0x302   : > { %v2954_v63 = vsel %vm2953_vm3, %v4229_v42, %v2950_v34  ;;  %v2962_v15 = vmul.f32 %v4233_v58, %v6463_v40  ;;  %v6484_v28 = vadd.f32 %v6458_v5, %v2144_v3  ;;  %v2297_v38 = vpop.xlane.xlu1 %2296  ;;  %v6486_v62 = vpop.xlane.xlu0 %2629  ;;  %vm2967_vm5 = vweird.f32 %v4233_v58 }
 0x303   : > { %v2959_v46 = vsel %vm2956_vm4, %v2958_v31, %v2954_v63  ;;  %v2427_v6 = vsub.f32 %v6165_v26, %v2297_v38  ;;  %4236 = vrcp.f32 %v6486_v62  ;;  %vm2968_vm7 = vmor %vm2966_vm6, %vm2967_vm5  ;;  %v1788_v40 = vmax.f32 %v1721_v60, 0.0 }
 0x304   : > { %v2960_v43 = vmul.f32 %v6134_v20, %v2959_v46  ;;  %v2963_v42 = vsub.f32 1.0, %v2962_v15  ;;  %v2337_v26 = vsel %vm2204_vm2, %v6484_v28, -inf  ;;  %v2987_v8 = vand.u32 2147483648, %v6486_v62 }
 0x305   : > { %v2521_v49 = vmul.f32 1.442695, %v2427_v6  ;;  %v6492_v35 = vpop.eup %4234  ;;  %vm2981_vm11 = vweird.f32 %v6486_v62 }
 0x306   : > { %3752 = vst.msk [vmem:[%s6225_s14 + $0x58] sm:$0xff] %vm2204_vm2, %v2960_v43  ;;  %v2964_v7 = vmul.f32 %v4233_v58, %v2963_v42  ;;  %3995 = vmatmul.msk.f32.gmra.mxu2 %vm1802_vm9, %v1787_v17  ;;  %v2676_v20 = vsel %vm2204_vm2, %v6492_v35, 0.0  ;;  %v2985_v17 = vand.u32 2147483647, %v6486_v62 }
 0x307   : > { %4238 = vpow2.f32 %v2521_v49  ;;  %2338 = vmax.xlane.f32.xlu0 %v2337_v26  ;;  %2677 = vadd.xlane.f32.xlu1 %v2676_v20  ;;  %v2988_v49 = vor.u32 1.1754944e-38, %v2987_v8 }
 0x308   : > { %v2965_v22 = vadd.f32 %v4233_v58, %v2964_v7  ;;  %vm2986_vm13 = vcmp.eq.f32.partialorder %v2985_v17, 8.507059e+37 }
 0x309   : > { %v4237_v29 = vpop.eup %4236  ;;  %v2147_v14 = vpop.f32.mrf.mxu2 }
 0x30a   : > { %v2969_v0 = vsel %vm2968_vm7, %v4233_v58, %v2965_v22  ;;  %v2977_v41 = vmul.f32 %v4237_v29, %v6486_v62  ;;  %v2300_v24 = vpop.xlane.xlu2 %2299  ;;  %v2633_v25 = vpop.xlane.xlu1 %2632  ;;  %v6506_v31 = vadd.f32 %v6458_v5, %v2147_v14  ;;  %vm2982_vm10 = vweird.f32 %v4237_v29 }
 0x30b   : > { %v2974_v34 = vsel %vm2971_vm8, %v2973_v53, %v2969_v0  ;;  %v2428_v3 = vsub.f32 %v6179_v39, %v2300_v24  ;;  %4240 = vrcp.f32 %v2633_v25  ;;  %v1723_v58 = vpop.f32.mrf.mxu3  ;;  %vm2983_vm12 = vmor %vm2981_vm11, %vm2982_vm10  ;;  %vm2996_vm14 = vweird.f32 %v2633_v25 }
 0x30c   : > { %v2975_v63 = vmul.f32 %v6147_v47, %v2974_v34  ;;  %v2978_v15 = vsub.f32 1.0, %v2977_v41  ;;  %v2340_v47 = vsel %vm2204_vm2, %v6506_v31, -inf  ;;  %v1724_v43 = vadd.f32 %v6450_v56, %v1723_v58 }
 0x30d   : > { %v6510_v38 = vpop.eup %4238  ;;  %v2523_v46 = vmul.f32 1.442695, %v2428_v3  ;;  %v3000_v41 = vand.u32 2147483647, %v2633_v25 }
 0x30e   : > { %3753 = vst.msk [vmem:[%s6225_s14 + $0x60] sm:$0xff] %vm2204_vm2, %v2975_v63  ;;  %v2979_v6 = vmul.f32 %v4237_v29, %v2978_v15  ;;  %3996 = vmatmul.msk.f32.gmra.mxu2 %vm1802_vm9, %v1788_v40  ;;  %v2679_v39 = vsel %vm2204_vm2, %v6510_v38, 0.0  ;;  %v1789_v56 = vmax.f32 %v1724_v43, 0.0 }
 0x30f   : > { %4242 = vpow2.f32 %v2523_v46  ;;  %2680 = vadd.xlane.f32.xlu2 %v2679_v39  ;;  %2341 = vmax.xlane.f32.xlu1 %v2340_v47  ;;  %vm3001_vm1 = vcmp.eq.f32.partialorder %v3000_v41, 8.507059e+37 }
 0x310   : > { %v2980_v42 = vadd.f32 %v4237_v29, %v2979_v6 }
 0x311   : > { %v4241_v18 = vpop.eup %4240  ;;  %v2150_v7 = vpop.f32.mrf.mxu2 }
 0x312   : > { %v2984_v55 = vsel %vm2983_vm12, %v4237_v29, %v2980_v42  ;;  %v2992_v26 = vmul.f32 %v4241_v18, %v2633_v25  ;;  %v6524_v20 = vadd.f32 %v6458_v5, %v2150_v7  ;;  %v2636_v60 = vpop.xlane.xlu2 %2635  ;;  %v6526_v22 = vpop.xlane.xlu0 %2638  ;;  %v3002_v29 = vand.u32 2147483648, %v2633_v25 }
 0x313   : > { %v2989_v53 = vsel %vm2986_vm13, %v2988_v49, %v2984_v55  ;;  %4244 = vrcp.f32 %v2636_v60  ;;  %vm2997_vm0 = vweird.f32 %v4241_v18  ;;  %v3015_v49 = vand.u32 2147483647, %v2636_v60 }
 0x314   : > { %v2990_v62 = vmul.f32 %v6160_v9, %v2989_v53  ;;  %v2993_v14 = vsub.f32 1.0, %v2992_v26  ;;  %4246 = vrcp.f32 %v6526_v22  ;;  %v2343_v3 = vsel %vm2204_vm2, %v6524_v20, -inf  ;;  %vm2998_vm15 = vmor %vm2996_vm14, %vm2997_vm0 }
 0x315   : > { %v6530_v0 = vpop.eup %4242  ;;  %v3003_v63 = vor.u32 1.1754944e-38, %v3002_v29  ;;  %v3017_v7 = vand.u32 2147483648, %v2636_v60  ;;  %v3032_v53 = vand.u32 2147483648, %v6526_v22  ;;  %vm3011_vm4 = vweird.f32 %v2636_v60 }
 0x316   : > { %3754 = vst.msk [vmem:[%s6225_s14 + $0x68] sm:$0xff] %vm2204_vm2, %v2990_v62  ;;  %v2994_v24 = vmul.f32 %v4241_v18, %v2993_v14  ;;  %3997 = vmatmul.msk.f32.gmra.mxu2 %vm1802_vm9, %v1789_v56  ;;  %v2682_v34 = vsel %vm2204_vm2, %v6530_v0, 0.0  ;;  %vm3026_vm6 = vweird.f32 %v6526_v22  ;;  %vm3016_vm7 = vcmp.eq.f32.partialorder %v3015_v49, 8.507059e+37 }
 0x317   : > { %2683 = vadd.xlane.f32.xlu0 %v2682_v34  ;;  %2344 = vmax.xlane.f32.xlu2 %v2343_v3  ;;  %v3018_v41 = vor.u32 1.1754944e-38, %v3017_v7 }
 0x318   : > { %v2995_v9 = vadd.f32 %v4241_v18, %v2994_v24 }
 0x319   : > { %v4245_v40 = vpop.eup %4244  ;;  %v2153_v15 = vpop.f32.mrf.mxu2 }
 0x31a   : > { %v4247_v58 = vpop.eup %4246  ;;  %v2999_v8 = vsel %vm2998_vm15, %v4241_v18, %v2995_v9  ;;  %v3007_v46 = vmul.f32 %v4245_v40, %v2636_v60  ;;  %v6540_v6 = vadd.f32 %v6458_v5, %v2153_v15  ;;  %v2303_v17 = vpop.xlane.xlu0 %2302  ;;  %vm3012_vm9 = vweird.f32 %v4245_v40 }
 0x31b   : > { %v3004_v39 = vsel %vm3001_vm1, %v3003_v63, %v2999_v8  ;;  %v3022_v47 = vmul.f32 %v4247_v58, %v6526_v22  ;;  %v6543_v43 = vpop.xlane.xlu1 %2641  ;;  %v2429_v18 = vsub.f32 %v6204_v51, %v2303_v17  ;;  %vm3027_vm3 = vweird.f32 %v4247_v58  ;;  %vm3013_vm5 = vmor %vm3011_vm4, %vm3012_vm9 }
 0x31c   : > { %v3005_v25 = vmul.f32 %v6175_v52, %v3004_v39  ;;  %v3008_v42 = vsub.f32 1.0, %v3007_v46  ;;  %4248 = vrcp.f32 %v6543_v43  ;;  %v2346_v56 = vsel %vm2204_vm2, %v6540_v6, -inf  ;;  %vm3028_vm8 = vmor %vm3026_vm6, %vm3027_vm3 }
 0x31d   : > { %v3023_v55 = vsub.f32 1.0, %v3022_v47  ;;  %v3030_v52 = vand.u32 2147483647, %v6526_v22  ;;  %v2525_v51 = vmul.f32 1.442695, %v2429_v18  ;;  %v3033_v9 = vor.u32 1.1754944e-38, %v3032_v53 }
 0x31e   : > { %3755 = vst.msk [vmem:[%s6225_s14 + $0x70] sm:$0xff] %vm2204_vm2, %v3005_v25  ;;  %v3009_v26 = vmul.f32 %v4245_v40, %v3008_v42  ;;  %v3047_v25 = vand.u32 2147483648, %v6543_v43  ;;  %vm3041_vm12 = vweird.f32 %v6543_v43 }
 0x31f   : > { %v3024_v62 = vmul.f32 %v4247_v58, %v3023_v55  ;;  %2347 = vmax.xlane.f32.xlu0 %v2346_v56  ;;  %vm3031_vm10 = vcmp.eq.f32.partialorder %v3030_v52, 8.507059e+37 }
 0x320   : > { %v3010_v14 = vadd.f32 %v4245_v40, %v3009_v26  ;;  %v3048_v26 = vor.u32 1.1754944e-38, %v3047_v25 }
 0x321   : > { %v3025_v29 = vadd.f32 %v4247_v58, %v3024_v62  ;;  %v2156_v24 = vpop.f32.mrf.mxu2 }
 0x322   : > { %v4249_v34 = vpop.eup %4248  ;;  %v3014_v3 = vsel %vm3013_vm5, %v4245_v40, %v3010_v14  ;;  %v6556_v63 = vadd.f32 %v6458_v5, %v2156_v24  ;;  %v2645_v15 = vpop.xlane.xlu2 %2644 }
 0x323   : > { %v3019_v8 = vsel %vm3016_vm7, %v3018_v41, %v3014_v3  ;;  %v3029_v60 = vsel %vm3028_vm8, %v4247_v58, %v3025_v29  ;;  %v3037_v46 = vmul.f32 %v4249_v34, %v6543_v43  ;;  %v2306_v17 = vpop.xlane.xlu1 %2305  ;;  %4250 = vrcp.f32 %v2645_v15 }
 0x324   : > { %v3020_v22 = vmul.f32 %v6190_v59, %v3019_v8  ;;  %v3034_v39 = vsel %vm3031_vm10, %v3033_v9, %v3029_v60  ;;  %4252 = vpow2.f32 %v2525_v51  ;;  %v2430_v42 = vsub.f32 %v6228_v50, %v2306_v17 }
 0x325   : > { %v3035_v40 = vmul.f32 %v6193_v2, %v3034_v39  ;;  %v3038_v47 = vsub.f32 1.0, %v3037_v46  ;;  %v2349_v58 = vsel %vm2204_vm2, %v6556_v63, -inf  ;;  %vm3042_vm11 = vweird.f32 %v4249_v34 }
 0x326   : > { %3756 = vst.msk [vmem:[%s6225_s14 + $0x78] sm:$0xff] %vm2204_vm2, %v3020_v22  ;;  %v3045_v59 = vand.u32 2147483647, %v6543_v43  ;;  %2350 = vmax.xlane.f32.xlu1 %v2349_v58  ;;  %v2527_v2 = vmul.f32 1.442695, %v2430_v42  ;;  %vm3043_vm13 = vmor %vm3041_vm12, %vm3042_vm11  ;;  %v3062_v24 = vand.u32 2147483648, %v2645_v15  ;;  %vm3056_vm15 = vweird.f32 %v2645_v15 }
 0x327   : > { %3757 = vst.msk [vmem:[%s6225_s14 + $0x80] sm:$0xff] %vm2204_vm2, %v3035_v40  ;;  %v3039_v49 = vmul.f32 %v4249_v34, %v3038_v47  ;;  %v3060_v8 = vand.u32 2147483647, %v2645_v15 }
 0x328   : > { %vm3046_vm0 = vcmp.eq.f32.partialorder %v3045_v59, 8.507059e+37 }
 0x329   : > { %v3040_v7 = vadd.f32 %v4249_v34, %v3039_v49  ;;  %v2159_v55 = vpop.f32.mrf.mxu2  ;;  %v4251_v18 = vpop.eup %4250  ;;  %vm3061_vm9 = vcmp.eq.f32.partialorder %v3060_v8, 8.507059e+37 }
 0x32a   : > { %v6572_v50 = vadd.f32 %v6458_v5, %v2159_v55  ;;  %v2309_v53 = vpop.xlane.xlu2 %2308  ;;  %v2648_v56 = vpop.xlane.xlu0 %2647  ;;  %v3052_v14 = vmul.f32 %v4251_v18, %v2645_v15  ;;  %vm3057_vm14 = vweird.f32 %v4251_v18 }
 0x32b   : > { %v6574_v62 = vpop.eup %4252  ;;  %v3044_v52 = vsel %vm3043_vm13, %v4249_v34, %v3040_v7  ;;  %4254 = vrcp.f32 %v2648_v56  ;;  %v2431_v51 = vsub.f32 %v6246_v36, %v2309_v53  ;;  %vm3058_vm1 = vmor %vm3056_vm15, %vm3057_vm14  ;;  %v3063_v36 = vor.u32 1.1754944e-38, %v3062_v24 }
 0x32c   : > { %v3049_v41 = vsel %vm3046_vm0, %v3048_v26, %v3044_v52  ;;  %v3053_v29 = vsub.f32 1.0, %v3052_v14  ;;  %4256 = vpow2.f32 %v2527_v2  ;;  %v2352_v3 = vsel %vm2204_vm2, %v6572_v50, -inf }
 0x32d   : > { %v3050_v43 = vmul.f32 %v6207_v16, %v3049_v41  ;;  %v2685_v9 = vsel %vm2204_vm2, %v6574_v62, 0.0  ;;  %2353 = vmax.xlane.f32.xlu2 %v2352_v3  ;;  %v2529_v16 = vmul.f32 1.442695, %v2431_v51  ;;  %v3077_v7 = vand.u32 2147483648, %v2648_v56 }
 0x32e   : > { %v3054_v34 = vmul.f32 %v4251_v18, %v3053_v29  ;;  %2686 = vadd.xlane.f32.xlu1 %v2685_v9  ;;  %v3075_v26 = vand.u32 2147483647, %v2648_v56  ;;  %vm3071_vm4 = vweird.f32 %v2648_v56 }
 0x32f   : > { %3758 = vst.msk [vmem:[%s6225_s14 + $0x88] sm:$0xff] %vm2204_vm2, %v3050_v43  ;;  %v3078_v14 = vor.u32 1.1754944e-38, %v3077_v7 }
 0x330   : > { %v3055_v60 = vadd.f32 %v4251_v18, %v3054_v34  ;;  %vm3076_vm6 = vcmp.eq.f32.partialorder %v3075_v26, 8.507059e+37 }
 0x331   : > { %v2162_v46 = vpop.f32.mrf.mxu2  ;;  %v4255_v17 = vpop.eup %4254 }
 0x332   : > { %v6585_v22 = vadd.f32 %v6458_v5, %v2162_v46  ;;  %v2312_v39 = vpop.xlane.xlu0 %2311  ;;  %v6587_v40 = vpop.eup %4256  ;;  %v3059_v47 = vsel %vm3058_vm1, %v4251_v18, %v3055_v60  ;;  %v3067_v25 = vmul.f32 %v4255_v17, %v2648_v56  ;;  %vm3072_vm3 = vweird.f32 %v4255_v17 }
 0x333   : > { %v2651_v42 = vpop.xlane.xlu1 %2650  ;;  %v3064_v58 = vsel %vm3061_vm9, %v3063_v36, %v3059_v47  ;;  %v2432_v15 = vsub.f32 %v6272_v23, %v2312_v39  ;;  %v2688_v55 = vsel %vm2204_vm2, %v6587_v40, 0.0  ;;  %vm3073_vm5 = vmor %vm3071_vm4, %vm3072_vm3 }
 0x334   : > { %4258 = vrcp.f32 %v2651_v42  ;;  %v3065_v49 = vmul.f32 %v6233_v33, %v3064_v58  ;;  %v3068_v59 = vsub.f32 1.0, %v3067_v25  ;;  %v2355_v2 = vsel %vm2204_vm2, %v6585_v22, -inf }
 0x335   : > { %4260 = vpow2.f32 %v2529_v16  ;;  %2356 = vmax.xlane.f32.xlu0 %v2355_v2  ;;  %2689 = vadd.xlane.f32.xlu2 %v2688_v55  ;;  %v2531_v53 = vmul.f32 1.442695, %v2432_v15  ;;  %v3092_v16 = vand.u32 2147483648, %v2651_v42  ;;  %v3090_v36 = vand.u32 2147483647, %v2651_v42 }
 0x336   : > { %3759 = vst.msk [vmem:[%s6225_s14 + $0x90] sm:$0xff] %vm2204_vm2, %v3065_v49  ;;  %v3069_v18 = vmul.f32 %v4255_v17, %v3068_v59  ;;  %vm3086_vm8 = vweird.f32 %v2651_v42 }
 0x337   : > { %v3093_v58 = vor.u32 1.1754944e-38, %v3092_v16  ;;  %vm3091_vm11 = vcmp.eq.f32.partialorder %v3090_v36, 8.507059e+37 }
 0x338   : > { %v3070_v23 = vadd.f32 %v4255_v17, %v3069_v18 }
 0x339   : > { %v2165_v33 = vpop.f32.mrf.mxu2 }
 0x33a   : > { %v4259_v52 = vpop.eup %4258  ;;  %v6598_v41 = vadd.f32 %v6458_v5, %v2165_v33  ;;  %v2654_v43 = vpop.xlane.xlu2 %2653  ;;  %v3074_v51 = vsel %vm3073_vm5, %v4255_v17, %v3070_v23 }
 0x33b   : > { %v6600_v29 = vpop.eup %4260  ;;  %v3082_v24 = vmul.f32 %v4259_v52, %v2651_v42  ;;  %4262 = vrcp.f32 %v2654_v43  ;;  %v2315_v3 = vpop.xlane.xlu1 %2314  ;;  %v3079_v9 = vsel %vm3076_vm6, %v3078_v14, %v3074_v51  ;;  %vm3087_vm7 = vweird.f32 %v4259_v52 }
 0x33c   : > { %4264 = vpow2.f32 %v2531_v53  ;;  %v3080_v56 = vmul.f32 %v6255_v21, %v3079_v9  ;;  %v2433_v8 = vsub.f32 %v6299_v57, %v2315_v3  ;;  %v2358_v60 = vsel %vm2204_vm2, %v6598_v41, -inf  ;;  %vm3088_vm10 = vmor %vm3086_vm8, %vm3087_vm7 }
 0x33d   : > { %v3083_v34 = vsub.f32 1.0, %v3082_v24  ;;  %v2691_v46 = vsel %vm2204_vm2, %v6600_v29, 0.0  ;;  %2359 = vmax.xlane.f32.xlu1 %v2358_v60  ;;  %v3107_v53 = vand.u32 2147483648, %v2654_v43  ;;  %vm3101_vm13 = vweird.f32 %v2654_v43 }
 0x33e   : > { %3760 = vst.msk [vmem:[%s6225_s14 + $0x98] sm:$0xff] %vm2204_vm2, %v3080_v56  ;;  %2692 = vadd.xlane.f32.xlu0 %v2691_v46  ;;  %v2533_v39 = vmul.f32 1.442695, %v2433_v8 }
 0x33f   : > { %v3084_v17 = vmul.f32 %v4259_v52, %v3083_v34 }
 0x341   : > { %v4263_v47 = vpop.eup %4262  ;;  %v3085_v21 = vadd.f32 %v4259_v52, %v3084_v17  ;;  %v2168_v25 = vpop.f32.mrf.mxu2 }
 0x342   : > { %v6610_v57 = vpop.eup %4264  ;;  %v3097_v15 = vmul.f32 %v4263_v47, %v2654_v43  ;;  %v6613_v49 = vadd.f32 %v6458_v5, %v2168_v25  ;;  %v2318_v59 = vpop.xlane.xlu2 %2317  ;;  %vm3102_vm12 = vweird.f32 %v4263_v47 }
 0x343   : > { %v2657_v7 = vpop.xlane.xlu0 %2656  ;;  %v3089_v2 = vsel %vm3088_vm10, %v4259_v52, %v3085_v21  ;;  %v2434_v55 = vsub.f32 %v6322_v45, %v2318_v59  ;;  %v2694_v33 = vsel %vm2204_vm2, %v6610_v57, 0.0  ;;  %v3105_v52 = vand.u32 2147483647, %v2654_v43  ;;  %vm3103_vm0 = vmor %vm3101_vm13, %vm3102_vm12 }
 0x344   : > { %4266 = vrcp.f32 %v2657_v7  ;;  %v3094_v18 = vsel %vm3091_vm11, %v3093_v58, %v3089_v2  ;;  %v3098_v26 = vsub.f32 1.0, %v3097_v15  ;;  %v2361_v23 = vsel %vm2204_vm2, %v6613_v49, -inf }
 0x345   : > { %4268 = vpow2.f32 %v2533_v39  ;;  %v3095_v42 = vmul.f32 %v6282_v4, %v3094_v18  ;;  %2362 = vmax.xlane.f32.xlu2 %v2361_v23  ;;  %2695 = vadd.xlane.f32.xlu1 %v2694_v33  ;;  %v2535_v45 = vmul.f32 1.442695, %v2434_v55  ;;  %v3108_v4 = vor.u32 1.1754944e-38, %v3107_v53 }
 0x346   : > { %v3099_v14 = vmul.f32 %v4263_v47, %v3098_v26  ;;  %vm3106_vm14 = vcmp.eq.f32.partialorder %v3105_v52, 8.507059e+37  ;;  %v3122_v39 = vand.u32 2147483648, %v2657_v7  ;;  %v3120_v58 = vand.u32 2147483647, %v2657_v7 }
 0x347   : > { %3761 = vst.msk [vmem:[%s6225_s14 + $0xa0] sm:$0xff] %vm2204_vm2, %v3095_v42  ;;  %4270 = vpow2.f32 %v2535_v45  ;;  %vm3116_vm1 = vweird.f32 %v2657_v7 }
 0x348   : > { %v3100_v51 = vadd.f32 %v4263_v47, %v3099_v14  ;;  %vm3121_vm3 = vcmp.eq.f32.partialorder %v3120_v58, 8.507059e+37 }
 0x349   : > { %v2171_v3 = vpop.f32.mrf.mxu2 }
 0x34a   : > { %v4267_v24 = vpop.eup %4266  ;;  %v3104_v56 = vsel %vm3103_vm0, %v4263_v47, %v3100_v51  ;;  %v6626_v8 = vadd.f32 %v6458_v5, %v2171_v3  ;;  %v2660_v46 = vpop.xlane.xlu1 %2659 }
 0x34b   : > { %v6623_v9 = vpop.eup %4268  ;;  %v3112_v34 = vmul.f32 %v4267_v24, %v2657_v7  ;;  %v2321_v60 = vpop.xlane.xlu0 %2320  ;;  %v3109_v16 = vsel %vm3106_vm14, %v3108_v4, %v3104_v56  ;;  %4272 = vrcp.f32 %v2660_v46  ;;  %vm3117_vm15 = vweird.f32 %v4267_v24 }
 0x34c   : > { %v3110_v17 = vmul.f32 %v6304_v27, %v3109_v16  ;;  %v2435_v36 = vsub.f32 %v6346_v13, %v2321_v60  ;;  %v2364_v21 = vsel %vm2204_vm2, %v6626_v8, -inf  ;;  %v2697_v47 = vsel %vm2204_vm2, %v6623_v9, 0.0  ;;  %vm3118_vm9 = vmor %vm3116_vm1, %vm3117_vm15 }
 0x34d   : > { %v3113_v43 = vsub.f32 1.0, %v3112_v34  ;;  %2365 = vmax.xlane.f32.xlu0 %v2364_v21  ;;  %2698 = vadd.xlane.f32.xlu2 %v2697_v47  ;;  %v6636_v59 = vpop.eup %4270  ;;  %v3123_v13 = vor.u32 1.1754944e-38, %v3122_v39  ;;  %v3135_v3 = vand.u32 2147483647, %v2660_v46  ;;  %vm3131_vm5 = vweird.f32 %v2660_v46 }
 0x34e   : > { %3762 = vst.msk [vmem:[%s6225_s14 + $0xa8] sm:$0xff] %vm2204_vm2, %v3110_v17  ;;  %v2537_v27 = vmul.f32 1.442695, %v2435_v36  ;;  %v2700_v45 = vsel %vm2204_vm2, %v6636_v59, 0.0 }
 0x34f   : > { %v3114_v25 = vmul.f32 %v4267_v24, %v3113_v43  ;;  %vm3136_vm7 = vcmp.eq.f32.partialorder %v3135_v3, 8.507059e+37 }
 0x351   : > { %v3115_v15 = vadd.f32 %v4267_v24, %v3114_v25  ;;  %v2174_v2 = vpop.f32.mrf.mxu2  ;;  %v4273_v55 = vpop.eup %4272 }
 0x352   : > { %v6639_v26 = vadd.f32 %v6458_v5, %v2174_v2  ;;  %v2663_v42 = vpop.xlane.xlu2 %2662  ;;  %v3127_v23 = vmul.f32 %v4273_v55, %v2660_v46  ;;  %v2324_v33 = vpop.xlane.xlu1 %2323  ;;  %vm3132_vm4 = vweird.f32 %v4273_v55 }
 0x353   : > { %v3119_v18 = vsel %vm3118_vm9, %v4267_v24, %v3115_v15  ;;  %4274 = vrcp.f32 %v2663_v42  ;;  %v2436_v52 = vsub.f32 %v6367_v32, %v2324_v33  ;;  %v3137_v24 = vand.u32 2147483648, %v2660_v46  ;;  %vm3133_vm6 = vmor %vm3131_vm5, %vm3132_vm4 }
 0x354   : > { %v3124_v53 = vsel %vm3121_vm3, %v3123_v13, %v3119_v18  ;;  %4276 = vpow2.f32 %v2537_v27  ;;  %v3128_v14 = vsub.f32 1.0, %v3127_v23  ;;  %v2367_v51 = vsel %vm2204_vm2, %v6639_v26, -inf }
 0x355   : > { %v3125_v7 = vmul.f32 %v6329_v30, %v3124_v53  ;;  %2701 = vadd.xlane.f32.xlu0 %v2700_v45  ;;  %2368 = vmax.xlane.f32.xlu1 %v2367_v51  ;;  %v2539_v56 = vmul.f32 1.442695, %v2436_v52  ;;  %v3138_v16 = vor.u32 1.1754944e-38, %v3137_v24  ;;  %v3152_v15 = vand.u32 2147483648, %v2663_v42 }
 0x356   : > { %v3129_v4 = vmul.f32 %v4273_v55, %v3128_v14  ;;  %vm3146_vm10 = vweird.f32 %v2663_v42 }
 0x357   : > { %3763 = vst.msk [vmem:[%s6225_s14 + $0xb0] sm:$0xff] %vm2204_vm2, %v3125_v7 }
 0x358   : > { %v3130_v34 = vadd.f32 %v4273_v55, %v3129_v4 }
 0x359   : > { %v4275_v30 = vpop.eup %4274  ;;  %v2177_v60 = vpop.f32.mrf.mxu2 }
 0x35a   : > { %v6649_v32 = vpop.eup %4276  ;;  %v3142_v17 = vmul.f32 %v4275_v30, %v2663_v42  ;;  %v6652_v43 = vadd.f32 %v6458_v5, %v2177_v60  ;;  %v2327_v36 = vpop.xlane.xlu2 %2326  ;;  %v3134_v21 = vsel %vm3133_vm6, %v4273_v55, %v3130_v34  ;;  %vm3147_vm8 = vweird.f32 %v4275_v30 }
 0x35b   : > { %v2666_v39 = vpop.xlane.xlu0 %2665  ;;  %v2437_v47 = vsub.f32 %v6384_v37, %v2327_v36  ;;  %v3139_v25 = vsel %vm3136_vm7, %v3138_v16, %v3134_v21  ;;  %v2703_v13 = vsel %vm2204_vm2, %v6649_v32, 0.0  ;;  %v3150_v55 = vand.u32 2147483647, %v2663_v42  ;;  %vm3148_vm11 = vmor %vm3146_vm10, %vm3147_vm8 }
 0x35c   : > { %4278 = vrcp.f32 %v2666_v39  ;;  %v3143_v58 = vsub.f32 1.0, %v3142_v17  ;;  %v3140_v46 = vmul.f32 %v6351_v61, %v3139_v25  ;;  %v2370_v27 = vsel %vm2204_vm2, %v6652_v43, -inf }
 0x35d   : > { %4280 = vpow2.f32 %v2539_v56  ;;  %2371 = vmax.xlane.f32.xlu2 %v2370_v27  ;;  %2704 = vadd.xlane.f32.xlu1 %v2703_v13  ;;  %v2541_v37 = vmul.f32 1.442695, %v2437_v47  ;;  %v3153_v61 = vor.u32 1.1754944e-38, %v3152_v15  ;;  %vm3151_vm12 = vcmp.eq.f32.partialorder %v3150_v55, 8.507059e+37 }
 0x35e   : > { %v3144_v2 = vmul.f32 %v4275_v30, %v3143_v58  ;;  %3764 = vst.msk [vmem:[%s6225_s14 + $0xb8] sm:$0xff] %vm2204_vm2, %v3140_v46  ;;  %v3167_v56 = vand.u32 2147483648, %v2666_v39  ;;  %v3165_v16 = vand.u32 2147483647, %v2666_v39  ;;  %vm3161_vm0 = vweird.f32 %v2666_v39 }
 0x35f   : > { %4282 = vpow2.f32 %v2541_v37 }
 0x360   : > { %v3145_v18 = vadd.f32 %v4275_v30, %v3144_v2  ;;  %vm3166_vm15 = vcmp.eq.f32.partialorder %v3165_v16, 8.507059e+37 }
 0x361   : > { %v2180_v23 = vpop.f32.mrf.mxu2 }
 0x362   : > { %v4279_v53 = vpop.eup %4278  ;;  %v3149_v7 = vsel %vm3148_vm11, %v4275_v30, %v3145_v18  ;;  %v6665_v52 = vadd.f32 %v6458_v5, %v2180_v23  ;;  %v2669_v24 = vpop.xlane.xlu1 %2668 }
 0x363   : > { %v6662_v33 = vpop.eup %4280  ;;  %v3157_v14 = vmul.f32 %v4279_v53, %v2666_v39  ;;  %v2330_v45 = vpop.xlane.xlu0 %2329  ;;  %v3154_v51 = vsel %vm3151_vm12, %v3153_v61, %v3149_v7  ;;  %4284 = vrcp.f32 %v2669_v24  ;;  %vm3162_vm13 = vweird.f32 %v4279_v53 }
 0x364   : > { %v3155_v4 = vmul.f32 %v6372_v1, %v3154_v51  ;;  %v2438_v3 = vsub.f32 %v6407_v54, %v2330_v45  ;;  %v2373_v34 = vsel %vm2204_vm2, %v6665_v52, -inf  ;;  %v2706_v30 = vsel %vm2204_vm2, %v6662_v33, 0.0  ;;  %vm3163_vm14 = vmor %vm3161_vm0, %vm3162_vm13 }
 0x365   : > { %v3158_v42 = vsub.f32 1.0, %v3157_v14  ;;  %2374 = vmax.xlane.f32.xlu0 %v2373_v34  ;;  %2707 = vadd.xlane.f32.xlu2 %v2706_v30  ;;  %v6675_v36 = vpop.eup %4282  ;;  %v3168_v54 = vor.u32 1.1754944e-38, %v3167_v56  ;;  %v3180_v23 = vand.u32 2147483647, %v2669_v24  ;;  %vm3176_vm9 = vweird.f32 %v2669_v24 }
 0x366   : > { %3765 = vst.msk [vmem:[%s6225_s14 + $0xc0] sm:$0xff] %vm2204_vm2, %v3155_v4  ;;  %v2543_v1 = vmul.f32 1.442695, %v2438_v3  ;;  %v2709_v37 = vsel %vm2204_vm2, %v6675_v36, 0.0 }
 0x367   : > { %v3159_v60 = vmul.f32 %v4279_v53, %v3158_v42  ;;  %vm3181_vm4 = vcmp.eq.f32.partialorder %v3180_v23, 8.507059e+37 }
 0x369   : > { %v3160_v17 = vadd.f32 %v4279_v53, %v3159_v60  ;;  %v2183_v21 = vpop.f32.mrf.mxu2  ;;  %v4285_v47 = vpop.eup %4284 }
 0x36a   : > { %v6678_v58 = vadd.f32 %v6458_v5, %v2183_v21  ;;  %v2672_v46 = vpop.xlane.xlu2 %2671  ;;  %v3172_v27 = vmul.f32 %v4285_v47, %v2669_v24  ;;  %v2333_v13 = vpop.xlane.xlu1 %2332  ;;  %vm3177_vm1 = vweird.f32 %v4285_v47 }
 0x36b   : > { %v3164_v25 = vsel %vm3163_vm14, %v4279_v53, %v3160_v17  ;;  %4286 = vrcp.f32 %v2672_v46  ;;  %v2439_v55 = vsub.f32 %v6431_v12, %v2333_v13  ;;  %v3182_v53 = vand.u32 2147483648, %v2669_v24  ;;  %vm3178_vm3 = vmor %vm3176_vm9, %vm3177_vm1 }
 0x36c   : > { %v3169_v15 = vsel %vm3166_vm15, %v3168_v54, %v3164_v25  ;;  %4288 = vpow2.f32 %v2543_v1  ;;  %v3173_v2 = vsub.f32 1.0, %v3172_v27  ;;  %v2376_v18 = vsel %vm2204_vm2, %v6678_v58, -inf }
 0x36d   : > { %v3170_v39 = vmul.f32 %v6391_v44, %v3169_v15  ;;  %2710 = vadd.xlane.f32.xlu0 %v2709_v37  ;;  %2377 = vmax.xlane.f32.xlu1 %v2376_v18  ;;  %v2545_v7 = vmul.f32 1.442695, %v2439_v55  ;;  %v3183_v51 = vor.u32 1.1754944e-38, %v3182_v53  ;;  %v3197_v24 = vand.u32 2147483648, %v2672_v46 }
 0x36e   : > { %v3174_v61 = vmul.f32 %v4285_v47, %v3173_v2  ;;  %v3195_v54 = vand.u32 2147483647, %v2672_v46  ;;  %vm3191_vm6 = vweird.f32 %v2672_v46 }
 0x36f   : > { %3766 = vst.msk [vmem:[%s6225_s14 + $0xc8] sm:$0xff] %vm2204_vm2, %v3170_v39  ;;  %v3198_v25 = vor.u32 1.1754944e-38, %v3197_v24 }
 0x370   : > { %v3175_v14 = vadd.f32 %v4285_v47, %v3174_v61  ;;  %vm3196_vm8 = vcmp.eq.f32.partialorder %v3195_v54, 8.507059e+37 }
 0x371   : > { %v4287_v44 = vpop.eup %4286  ;;  %v2186_v45 = vpop.f32.mrf.mxu2 }
 0x372   : > { %v6688_v12 = vpop.eup %4288  ;;  %v3187_v4 = vmul.f32 %v4287_v44, %v2672_v46  ;;  %v6691_v42 = vadd.f32 %v6458_v5, %v2186_v45  ;;  %v2675_v3 = vpop.xlane.xlu0 %2674  ;;  %v3179_v56 = vsel %vm3178_vm3, %v4285_v47, %v3175_v14  ;;  %vm3192_vm5 = vweird.f32 %v4287_v44 }
 0x373   : > { %4290 = vrcp.f32 %v2675_v3  ;;  %v3184_v34 = vsel %vm3181_vm4, %v3183_v51, %v3179_v56  ;;  %v2712_v17 = vsel %vm2204_vm2, %v6688_v12, 0.0  ;;  %vm3193_vm7 = vmor %vm3191_vm6, %vm3192_vm5  ;;  %v6702_v13 = vpop.xlane.xlu2 %2335  ;;  %v3212_v53 = vand.u32 2147483648, %v2675_v3 }
 0x374   : > { %v3188_v30 = vsub.f32 1.0, %v3187_v4  ;;  %4292 = vpow2.f32 %v2545_v7  ;;  %v3185_v60 = vmul.f32 %v6415_v11, %v3184_v34  ;;  %v2379_v16 = vsel %vm2204_vm2, %v6691_v42, -inf }
 0x375   : > { %2380 = vmax.xlane.f32.xlu2 %v2379_v16  ;;  %2713 = vadd.xlane.f32.xlu1 %v2712_v17  ;;  %vm3206_vm11 = vweird.f32 %v2675_v3 }
 0x376   : > { %v3189_v1 = vmul.f32 %v4287_v44, %v3188_v30  ;;  %3767 = vst.msk [vmem:[%s6225_s14 + $0xd0] sm:$0xff] %vm2204_vm2, %v3185_v60 }
 0x378   : > { %v3190_v21 = vadd.f32 %v4287_v44, %v3189_v1 }
 0x379   : > { %v4291_v47 = vpop.eup %4290  ;;  %v2189_v11 = vpop.f32.mrf.mxu2 }
 0x37a   : > { %v6700_v15 = vpop.eup %4292  ;;  %v3194_v27 = vsel %vm3193_vm7, %v4287_v44, %v3190_v21  ;;  %v3202_v39 = vmul.f32 %v4291_v47, %v2675_v3  ;;  %v6705_v2 = vadd.f32 %v6458_v5, %v2189_v11  ;;  %v2678_v37 = vpop.xlane.xlu1 %2677  ;;  %vm3207_vm10 = vweird.f32 %v4291_v47 }
 0x37b   : > { %v3199_v55 = vsel %vm3196_vm8, %v3198_v25, %v3194_v27  ;;  %4294 = vrcp.f32 %v2678_v37  ;;  %v2715_v23 = vsel %vm2204_vm2, %v6700_v15, 0.0  ;;  %v3210_v44 = vand.u32 2147483647, %v2675_v3  ;;  %vm3208_vm12 = vmor %vm3206_vm11, %vm3207_vm10  ;;  %v6714_v56 = vpop.xlane.xlu0 %2338 }
 0x37c   : > { %v3200_v18 = vmul.f32 %v6436_v10, %v3199_v55  ;;  %v3203_v46 = vsub.f32 1.0, %v3202_v39  ;;  %v2382_v61 = vsel %vm2204_vm2, %v6705_v2, -inf  ;;  %v3213_v10 = vor.u32 1.1754944e-38, %v3212_v53 }
 0x37d   : > { %2383 = vmax.xlane.f32.xlu0 %v2382_v61  ;;  %2716 = vadd.xlane.f32.xlu2 %v2715_v23  ;;  %vm3211_vm13 = vcmp.eq.f32.partialorder %v3210_v44, 8.507059e+37  ;;  %v3227_v21 = vand.u32 2147483648, %v2678_v37  ;;  %vm3221_vm14 = vweird.f32 %v2678_v37  ;;  %v2440_v53 = vsub.f32 %v6461_v48, %v6702_v13 }
 0x37e   : > { %3768 = vst.msk [vmem:[%s6225_s14 + $0xd8] sm:$0xff] %vm2204_vm2, %v3200_v18  ;;  %v3204_v7 = vmul.f32 %v4291_v47, %v3203_v46 }
 0x380   : > { %v3205_v14 = vadd.f32 %v4291_v47, %v3204_v7 }
 0x381   : > { %v2192_v45 = vpop.f32.mrf.mxu2  ;;  %v4295_v51 = vpop.eup %4294 }
 0x382   : > { %v3209_v4 = vsel %vm3208_vm12, %v4291_v47, %v3205_v14  ;;  %v6717_v34 = vadd.f32 %v6458_v5, %v2192_v45  ;;  %v2681_v30 = vpop.xlane.xlu2 %2680  ;;  %v3217_v24 = vmul.f32 %v4295_v51, %v2678_v37  ;;  %v2342_v16 = vpop.xlane.xlu1 %2341  ;;  %vm3222_vm0 = vweird.f32 %v4295_v51 }
 0x383   : > { %v3214_v60 = vsel %vm3211_vm13, %v3213_v10, %v3209_v4  ;;  %4296 = vrcp.f32 %v2681_v30  ;;  %v2442_v1 = vsub.f32 %v6506_v31, %v2342_v16  ;;  %v3225_v5 = vand.u32 2147483647, %v2678_v37  ;;  %vm3223_vm15 = vmor %vm3221_vm14, %vm3222_vm0  ;;  %v4448_v31 = vld [vmem:[%s6993_s4] ss:$0 sm:$0xff] }
 0x384   : > { %v3215_v17 = vmul.f32 %v6468_v19, %v3214_v60  ;;  %v3218_v3 = vsub.f32 1.0, %v3217_v24  ;;  %v2385_v54 = vsel %vm2204_vm2, %v6717_v34, -inf  ;;  %v3228_v19 = vor.u32 1.1754944e-38, %v3227_v21 }
 0x385   : > { %2386 = vmax.xlane.f32.xlu1 %v2385_v54  ;;  %v2551_v25 = vmul.f32 1.442695, %v2442_v1  ;;  %vm3226_vm1 = vcmp.eq.f32.partialorder %v3225_v5, 8.507059e+37  ;;  %v3242_v44 = vand.u32 2147483648, %v2681_v30  ;;  %v3240_v45 = vand.u32 2147483647, %v2681_v30 }
 0x386   : > { %3769 = vst.msk [vmem:[%s6225_s14 + $0xe0] sm:$0xff] %vm2204_vm2, %v3215_v17  ;;  %v3219_v47 = vmul.f32 %v4295_v51, %v3218_v3  ;;  %v2547_v4 = vmul.f32 1.442695, %v2440_v53  ;;  %vm3236_vm3 = vweird.f32 %v2681_v30  ;;  %v2441_v60 = vsub.f32 %v6484_v28, %v6714_v56 }
 0x387   : > { %vm3241_vm5 = vcmp.eq.f32.partialorder %v3240_v45, 8.507059e+37 }
 0x388   : > { %v3220_v27 = vadd.f32 %v4295_v51, %v3219_v47  ;;  %v2549_v56 = vmul.f32 1.442695, %v2441_v60 }
 0x389   : > { %v4297_v11 = vpop.eup %4296  ;;  %v2195_v39 = vpop.f32.mrf.mxu2 }
 0x38a   : > { %v3232_v55 = vmul.f32 %v4297_v11, %v2681_v30  ;;  %v6728_v18 = vadd.f32 %v4448_v31, %v2195_v39  ;;  %v2684_v46 = vpop.xlane.xlu0 %2683  ;;  %v3224_v61 = vsel %vm3223_vm15, %v4295_v51, %v3220_v27  ;;  %vm3237_vm9 = vweird.f32 %v4297_v11  ;;  %v2345_v13 = vpop.xlane.xlu2 %2344 }
 0x38b   : > { %4298 = vrcp.f32 %v2684_v46  ;;  %v3229_v23 = vsel %vm3226_vm1, %v3228_v19, %v3224_v61  ;;  %vm3238_vm4 = vmor %vm3236_vm3, %vm3237_vm9  ;;  %v2443_v30 = vsub.f32 %v6524_v20, %v2345_v13  ;;  %v3257_v5 = vand.u32 2147483648, %v2684_v46 }
 0x38c   : > { %v3233_v37 = vsub.f32 1.0, %v3232_v55  ;;  %4300 = vpow2.f32 %v2551_v25  ;;  %v3230_v7 = vmul.f32 %v6492_v35, %v3229_v23  ;;  %v2388_v14 = vsel %vm2204_vm2, %v6728_v18, -inf }
 0x38d   : > { %2389 = vmax.xlane.f32.xlu2 %v2388_v14  ;;  %v3243_v35 = vor.u32 1.1754944e-38, %v3242_v44  ;;  %4302 = vpow2.f32 %v2547_v4  ;;  %v3255_v27 = vand.u32 2147483647, %v2684_v46  ;;  %v2553_v39 = vmul.f32 1.442695, %v2443_v30 }
 0x38e   : > { %v3234_v10 = vmul.f32 %v4297_v11, %v3233_v37  ;;  %3770 = vst.msk [vmem:[%s6225_s14 + $0xe8] sm:$0xff] %vm2204_vm2, %v3230_v7  ;;  %vm3251_vm7 = vweird.f32 %v2684_v46  ;;  %4304 = vpow2.f32 %v2549_v56  ;;  %v3258_v55 = vor.u32 1.1754944e-38, %v3257_v5 }
 0x38f   : > { %vm3256_vm10 = vcmp.eq.f32.partialorder %v3255_v27, 8.507059e+37  ;;  %4306 = vpow2.f32 %v2553_v39 }
 0x390   : > { %v3235_v48 = vadd.f32 %v4297_v11, %v3234_v10 }
 0x391   : > { %v4299_v51 = vpop.eup %4298  ;;  %v2198_v24 = vpop.f32.mrf.mxu2 }
 0x392   : > { %v6739_v16 = vpop.eup %4300  ;;  %v3239_v17 = vsel %vm3238_vm4, %v4297_v11, %v3235_v48  ;;  %v3247_v3 = vmul.f32 %v4299_v51, %v2684_v46  ;;  %v6741_v1 = vadd.f32 %v4448_v31, %v2198_v24  ;;  %vm3252_vm6 = vweird.f32 %v4299_v51  ;;  %v2348_v20 = vpop.xlane.xlu0 %2347 }
 0x393   : > { %v3244_v54 = vsel %vm3241_vm5, %v3243_v35, %v3239_v17  ;;  %v2724_v25 = vsel %vm2204_vm2, %v6739_v16, 0.0  ;;  %vm3253_vm8 = vmor %vm3251_vm7, %vm3252_vm6  ;;  %v2444_v23 = vsub.f32 %v6540_v6, %v2348_v20 }
 0x394   : > { %v3245_v21 = vmul.f32 %v6510_v38, %v3244_v54  ;;  %v3248_v47 = vsub.f32 1.0, %v3247_v3  ;;  %v2391_v28 = vsel %vm2204_vm2, %v6741_v1, -inf  ;;  %v6751_v38 = vpop.eup %4302 }
 0x395   : > { %2392 = vmax.xlane.f32.xlu0 %v2391_v28  ;;  %2725 = vadd.xlane.f32.xlu2 %v2724_v25  ;;  %v2718_v10 = vsel %vm2204_vm2, %v6751_v38, 0.0  ;;  %v2555_v6 = vmul.f32 1.442695, %v2444_v23 }
 0x396   : > { %3771 = vst.msk [vmem:[%s6225_s14 + $0xf0] sm:$0xff] %vm2204_vm2, %v3245_v21  ;;  %v3249_v11 = vmul.f32 %v4299_v51, %v3248_v47 }
 0x398   : > { %v3250_v19 = vadd.f32 %v4299_v51, %v3249_v11 }
 0x399   : > { %v2201_v53 = vpop.f32.mrf.mxu2  ;;  %v2351_v37 = vpop.xlane.xlu1 %2350 }
 0x39a   : > { %v3254_v61 = vsel %vm3253_vm8, %v4299_v51, %v3250_v19  ;;  %v6754_v7 = vadd.f32 %v4448_v31, %v2201_v53  ;;  %v2445_v14 = vsub.f32 %v6556_v63, %v2351_v37  ;;  %v6764_v31 = vpop.eup %4304 }
 0x39b   : > { %v3259_v44 = vsel %vm3256_vm10, %v3258_v55, %v3254_v61  ;;  %v6766_v48 = vpop.eup %4306  ;;  %v2721_v60 = vsel %vm2204_vm2, %v6764_v31, 0.0 }
 0x39c   : > { %v3260_v46 = vmul.f32 %v6530_v0, %v3259_v44  ;;  %v2394_v45 = vsel %vm2204_vm2, %v6754_v7, -inf  ;;  %v2557_v4 = vmul.f32 1.442695, %v2445_v14  ;;  %v2727_v51 = vsel %vm2204_vm2, %v6766_v48, 0.0 }
 0x39d   : > { %2719 = vadd.xlane.f32.xlu0 %v2718_v10  ;;  %2395 = vmax.xlane.f32.xlu1 %v2394_v45 }
 0x39e   : > { %3772 = vst.msk [vmem:[%s6225_s14 + $0xf8] sm:$0xff] %vm2204_vm2, %v3260_v46  ;;  %4308 = vpow2.f32 %v2557_v4 }
 0x39f   : > { %4310 = vpow2.f32 %v2555_v6 }
 0x3a0   : > { %v2354_v63 = vpop.xlane.xlu2 %2353 }
 0x3a1   : > { %v2687_v0 = vpop.xlane.xlu1 %2686  ;;  %v2446_v13 = vsub.f32 %v6572_v50, %v2354_v63 }
 0x3a2   : > { %4312 = vrcp.f32 %v2687_v0  ;;  %v3270_v25 = vand.u32 2147483647, %v2687_v0  ;;  %v3272_v11 = vand.u32 2147483648, %v2687_v0  ;;  %vm3266_vm12 = vweird.f32 %v2687_v0 }
 0x3a3   : > { %v2559_v24 = vmul.f32 1.442695, %v2446_v13 }
 0x3a4   : > { %v6773_v35 = vpop.eup %4308  ;;  %vm3271_vm0 = vcmp.eq.f32.partialorder %v3270_v25, 8.507059e+37 }
 0x3a5   : > { %2728 = vadd.xlane.f32.xlu0 %v2727_v51  ;;  %2722 = vadd.xlane.f32.xlu1 %v2721_v60  ;;  %v2733_v17 = vsel %vm2204_vm2, %v6773_v35, 0.0  ;;  %4314 = vpow2.f32 %v2559_v24  ;;  %v6777_v3 = vpop.eup %4310 }
 0x3a6   : > { %2734 = vadd.xlane.f32.xlu2 %v2733_v17  ;;  %v2730_v56 = vsel %vm2204_vm2, %v6777_v3, 0.0 }
 0x3a8   : > { %v4313_v50 = vpop.eup %4312  ;;  %v2690_v30 = vpop.xlane.xlu2 %2689 }
 0x3a9   : > { %v3262_v54 = vmul.f32 %v4313_v50, %v2687_v0  ;;  %v2357_v21 = vpop.xlane.xlu0 %2356  ;;  %4316 = vrcp.f32 %v2690_v30  ;;  %vm3267_vm11 = vweird.f32 %v4313_v50  ;;  %v3287_v4 = vand.u32 2147483648, %v2690_v30 }
 0x3aa   : > { %v2447_v28 = vsub.f32 %v6585_v22, %v2357_v21  ;;  %vm3268_vm13 = vmor %vm3266_vm12, %vm3267_vm11  ;;  %v3273_v22 = vor.u32 1.1754944e-38, %v3272_v11  ;;  %v3285_v0 = vand.u32 2147483647, %v2690_v30  ;;  %vm3281_vm15 = vweird.f32 %v2690_v30 }
 0x3ab   : > { %v3263_v47 = vsub.f32 1.0, %v3262_v54  ;;  %v6782_v5 = vpop.eup %4314 }
 0x3ac   : > { %v2561_v39 = vmul.f32 1.442695, %v2447_v28  ;;  %v2736_v20 = vsel %vm2204_vm2, %v6782_v5, 0.0  ;;  %vm3286_vm9 = vcmp.eq.f32.partialorder %v3285_v0, 8.507059e+37 }
 0x3ad   : > { %2731 = vadd.xlane.f32.xlu1 %v2730_v56  ;;  %v3264_v27 = vmul.f32 %v4313_v50, %v3263_v47  ;;  %2737 = vadd.xlane.f32.xlu0 %v2736_v20 }
 0x3ae   : > { %4318 = vpow2.f32 %v2561_v39 }
 0x3af   : > { %v3265_v19 = vadd.f32 %v4313_v50, %v3264_v27  ;;  %v4317_v55 = vpop.eup %4316 }
 0x3b0   : > { %v2360_v53 = vpop.xlane.xlu1 %2359  ;;  %v3277_v23 = vmul.f32 %v4317_v55, %v2690_v30  ;;  %vm3282_vm14 = vweird.f32 %v4317_v55 }
 0x3b1   : > { %v3269_v61 = vsel %vm3268_vm13, %v4313_v50, %v3265_v19  ;;  %v2448_v37 = vsub.f32 %v6598_v41, %v2360_v53  ;;  %v2693_v44 = vpop.xlane.xlu0 %2692  ;;  %vm3283_vm1 = vmor %vm3281_vm15, %vm3282_vm14 }
 0x3b2   : > { %v3274_v14 = vsel %vm3271_vm0, %v3273_v22, %v3269_v61  ;;  %4320 = vrcp.f32 %v2693_v44  ;;  %v3278_v10 = vsub.f32 1.0, %v3277_v23  ;;  %v3302_v25 = vand.u32 2147483648, %v2693_v44 }
 0x3b3   : > { %v3275_v46 = vmul.f32 %v6574_v62, %v3274_v14  ;;  %v2563_v45 = vmul.f32 1.442695, %v2448_v37  ;;  %v3288_v62 = vor.u32 1.1754944e-38, %v3287_v4  ;;  %v3300_v39 = vand.u32 2147483647, %v2693_v44 }
 0x3b4   : > { %v6788_v6 = vpop.eup %4318  ;;  %v3279_v63 = vmul.f32 %v4317_v55, %v3278_v10  ;;  %vm3296_vm4 = vweird.f32 %v2693_v44  ;;  %v3303_v19 = vor.u32 1.1754944e-38, %v3302_v25 }
 0x3b5   : > { %3773 = vst.msk [vmem:[%s6225_s14 + $0x100] sm:$0xff] %vm2204_vm2, %v3275_v46  ;;  %4322 = vpow2.f32 %v2563_v45  ;;  %v2739_v13 = vsel %vm2204_vm2, %v6788_v6, 0.0  ;;  %vm3301_vm6 = vcmp.eq.f32.partialorder %v3300_v39, 8.507059e+37 }
 0x3b6   : > { %v3280_v41 = vadd.f32 %v4317_v55, %v3279_v63  ;;  %2740 = vadd.xlane.f32.xlu1 %v2739_v13 }
 0x3b8   : > { %v4321_v51 = vpop.eup %4320  ;;  %v2363_v60 = vpop.xlane.xlu2 %2362  ;;  %v3284_v17 = vsel %vm3283_vm1, %v4317_v55, %v3280_v41 }
 0x3b9   : > { %v2696_v24 = vpop.xlane.xlu1 %2695  ;;  %v3292_v50 = vmul.f32 %v4321_v51, %v2693_v44  ;;  %v2449_v54 = vsub.f32 %v6613_v49, %v2363_v60  ;;  %v3289_v21 = vsel %vm3286_vm9, %v3288_v62, %v3284_v17  ;;  %vm3297_vm3 = vweird.f32 %v4321_v51 }
 0x3ba   : > { %4324 = vrcp.f32 %v2696_v24  ;;  %v3290_v28 = vmul.f32 %v6587_v40, %v3289_v21  ;;  %vm3298_vm5 = vmor %vm3296_vm4, %vm3297_vm3  ;;  %v3317_v10 = vand.u32 2147483648, %v2696_v24  ;;  %v3315_v4 = vand.u32 2147483647, %v2696_v24 }
 0x3bb   : > { %v6795_v47 = vpop.eup %4322  ;;  %v3293_v56 = vsub.f32 1.0, %v3292_v50  ;;  %v2565_v30 = vmul.f32 1.442695, %v2449_v54  ;;  %vm3311_vm8 = vweird.f32 %v2696_v24 }
 0x3bc   : > { %v2742_v11 = vsel %vm2204_vm2, %v6795_v47, 0.0  ;;  %3774 = vst.msk [vmem:[%s6225_s14 + $0x108] sm:$0xff] %vm2204_vm2, %v3290_v28  ;;  %vm3316_vm11 = vcmp.eq.f32.partialorder %v3315_v4, 8.507059e+37 }
 0x3bd   : > { %v3294_v27 = vmul.f32 %v4321_v51, %v3293_v56  ;;  %4326 = vpow2.f32 %v2565_v30  ;;  %2743 = vadd.xlane.f32.xlu2 %v2742_v11 }
 0x3bf   : > { %v3295_v49 = vadd.f32 %v4321_v51, %v3294_v27 }
 0x3c0   : > { %v4325_v20 = vpop.eup %4324  ;;  %v2699_v40 = vpop.xlane.xlu2 %2698 }
 0x3c1   : > { %v2366_v55 = vpop.xlane.xlu0 %2365  ;;  %v3299_v22 = vsel %vm3298_vm5, %v4321_v51, %v3295_v49  ;;  %v3307_v53 = vmul.f32 %v4325_v20, %v2696_v24  ;;  %4328 = vrcp.f32 %v2699_v40  ;;  %vm3312_vm7 = vweird.f32 %v4325_v20 }
 0x3c2   : > { %v3304_v61 = vsel %vm3301_vm6, %v3303_v19, %v3299_v22  ;;  %v2450_v46 = vsub.f32 %v6626_v8, %v2366_v55  ;;  %vm3313_vm10 = vmor %vm3311_vm8, %vm3312_vm7  ;;  %v3332_v21 = vand.u32 2147483648, %v2699_v40  ;;  %v3330_v24 = vand.u32 2147483647, %v2699_v40 }
 0x3c3   : > { %v6802_v23 = vpop.eup %4326  ;;  %v3305_v37 = vmul.f32 %v6600_v29, %v3304_v61  ;;  %v3308_v14 = vsub.f32 1.0, %v3307_v53  ;;  %v3318_v29 = vor.u32 1.1754944e-38, %v3317_v10  ;;  %vm3326_vm13 = vweird.f32 %v2699_v40 }
 0x3c4   : > { %v2745_v44 = vsel %vm2204_vm2, %v6802_v23, 0.0  ;;  %v2567_v63 = vmul.f32 1.442695, %v2450_v46  ;;  %v3333_v27 = vor.u32 1.1754944e-38, %v3332_v21  ;;  %vm3331_vm14 = vcmp.eq.f32.partialorder %v3330_v24, 8.507059e+37 }
 0x3c5   : > { %3775 = vst.msk [vmem:[%s6225_s14 + $0x110] sm:$0xff] %vm2204_vm2, %v3305_v37  ;;  %v3309_v45 = vmul.f32 %v4325_v20, %v3308_v14  ;;  %2746 = vadd.xlane.f32.xlu0 %v2745_v44 }
 0x3c6   : > { %4330 = vpow2.f32 %v2567_v63 }
 0x3c7   : > { %v4329_v0 = vpop.eup %4328  ;;  %v3310_v13 = vadd.f32 %v4325_v20, %v3309_v45 }
 0x3c8   : > { %v3322_v41 = vmul.f32 %v4329_v0, %v2699_v40  ;;  %v2369_v8 = vpop.xlane.xlu1 %2368  ;;  %vm3327_vm12 = vweird.f32 %v4329_v0 }
 0x3c9   : > { %v2702_v51 = vpop.xlane.xlu0 %2701  ;;  %v3314_v62 = vsel %vm3313_vm10, %v4325_v20, %v3310_v13  ;;  %v2451_v60 = vsub.f32 %v6639_v26, %v2369_v8  ;;  %vm3328_vm0 = vmor %vm3326_vm13, %vm3327_vm12 }
 0x3ca   : > { %4332 = vrcp.f32 %v2702_v51  ;;  %v3319_v17 = vsel %vm3316_vm11, %v3318_v29, %v3314_v62  ;;  %v3323_v50 = vsub.f32 1.0, %v3322_v41  ;;  %v3347_v61 = vand.u32 2147483648, %v2702_v51 }
 0x3cb   : > { %v3320_v54 = vmul.f32 %v6610_v57, %v3319_v17  ;;  %v2569_v28 = vmul.f32 1.442695, %v2451_v60  ;;  %v3345_v46 = vand.u32 2147483647, %v2702_v51  ;;  %vm3341_vm1 = vweird.f32 %v2702_v51 }
 0x3cc   : > { %v3324_v56 = vmul.f32 %v4329_v0, %v3323_v50  ;;  %v6812_v30 = vpop.eup %4330 }
 0x3cd   : > { %3776 = vst.msk [vmem:[%s6225_s14 + $0x118] sm:$0xff] %vm2204_vm2, %v3320_v54  ;;  %4334 = vpow2.f32 %v2569_v28  ;;  %v2748_v26 = vsel %vm2204_vm2, %v6812_v30, 0.0  ;;  %vm3346_vm3 = vcmp.eq.f32.partialorder %v3345_v46, 8.507059e+37 }
 0x3ce   : > { %v3325_v25 = vadd.f32 %v4329_v0, %v3324_v56  ;;  %2749 = vadd.xlane.f32.xlu1 %v2748_v26 }
 0x3d0   : > { %v4333_v11 = vpop.eup %4332  ;;  %v3329_v57 = vsel %vm3328_vm0, %v4329_v0, %v3325_v25  ;;  %v2372_v49 = vpop.xlane.xlu2 %2371 }
 0x3d1   : > { %v3337_v39 = vmul.f32 %v4333_v11, %v2702_v51  ;;  %v2705_v20 = vpop.xlane.xlu1 %2704  ;;  %v3334_v19 = vsel %vm3331_vm14, %v3333_v27, %v3329_v57  ;;  %v2452_v55 = vsub.f32 %v6652_v43, %v2372_v49  ;;  %vm3342_vm15 = vweird.f32 %v4333_v11 }
 0x3d2   : > { %4336 = vrcp.f32 %v2705_v20  ;;  %v3335_v22 = vmul.f32 %v6623_v9, %v3334_v19  ;;  %vm3343_vm9 = vmor %vm3341_vm1, %vm3342_vm15  ;;  %v3348_v9 = vor.u32 1.1754944e-38, %v3347_v61  ;;  %v3360_v60 = vand.u32 2147483647, %v2705_v20 }
 0x3d3   : > { %v3338_v40 = vsub.f32 1.0, %v3337_v39  ;;  %v6820_v53 = vpop.eup %4334  ;;  %v2571_v37 = vmul.f32 1.442695, %v2452_v55  ;;  %v3362_v51 = vand.u32 2147483648, %v2705_v20  ;;  %vm3356_vm5 = vweird.f32 %v2705_v20 }
 0x3d4   : > { %3777 = vst.msk [vmem:[%s6225_s14 + $0x120] sm:$0xff] %vm2204_vm2, %v3335_v22  ;;  %v2751_v10 = vsel %vm2204_vm2, %v6820_v53, 0.0  ;;  %vm3361_vm7 = vcmp.eq.f32.partialorder %v3360_v60, 8.507059e+37 }
 0x3d5   : > { %v3339_v14 = vmul.f32 %v4333_v11, %v3338_v40  ;;  %4338 = vpow2.f32 %v2571_v37  ;;  %2752 = vadd.xlane.f32.xlu2 %v2751_v10 }
 0x3d7   : > { %v3340_v44 = vadd.f32 %v4333_v11, %v3339_v14 }
 0x3d8   : > { %v4337_v43 = vpop.eup %4336  ;;  %v2708_v63 = vpop.xlane.xlu2 %2707 }
 0x3d9   : > { %v3344_v45 = vsel %vm3343_vm9, %v4333_v11, %v3340_v44  ;;  %v3352_v4 = vmul.f32 %v4337_v43, %v2705_v20  ;;  %v2375_v0 = vpop.xlane.xlu0 %2374  ;;  %4340 = vrcp.f32 %v2708_v63  ;;  %vm3357_vm4 = vweird.f32 %v4337_v43 }
 0x3da   : > { %v3349_v13 = vsel %vm3346_vm3, %v3348_v9, %v3344_v45  ;;  %v2453_v8 = vsub.f32 %v6665_v52, %v2375_v0  ;;  %vm3358_vm6 = vmor %vm3356_vm5, %vm3357_vm4  ;;  %v3363_v52 = vor.u32 1.1754944e-38, %v3362_v51  ;;  %v3377_v39 = vand.u32 2147483648, %v2708_v63 }
 0x3db   : > { %v3350_v29 = vmul.f32 %v6636_v59, %v3349_v13  ;;  %v3353_v41 = vsub.f32 1.0, %v3352_v4  ;;  %v6828_v62 = vpop.eup %4338  ;;  %v3375_v55 = vand.u32 2147483647, %v2708_v63  ;;  %vm3371_vm10 = vweird.f32 %v2708_v63 }
 0x3dc   : > { %v2573_v50 = vmul.f32 1.442695, %v2453_v8  ;;  %v2754_v54 = vsel %vm2204_vm2, %v6828_v62, 0.0 }
 0x3dd   : > { %3778 = vst.msk [vmem:[%s6225_s14 + $0x128] sm:$0xff] %vm2204_vm2, %v3350_v29  ;;  %v3354_v17 = vmul.f32 %v4337_v43, %v3353_v41  ;;  %2755 = vadd.xlane.f32.xlu0 %v2754_v54  ;;  %vm3376_vm12 = vcmp.eq.f32.partialorder %v3375_v55, 8.507059e+37 }
 0x3de   : > { %4342 = vpow2.f32 %v2573_v50 }
 0x3df   : > { %v3355_v21 = vadd.f32 %v4337_v43, %v3354_v17  ;;  %v4341_v59 = vpop.eup %4340 }
 0x3e0   : > { %v3367_v56 = vmul.f32 %v4341_v59, %v2708_v63  ;;  %v2378_v24 = vpop.xlane.xlu1 %2377  ;;  %vm3372_vm8 = vweird.f32 %v4341_v59 }
 0x3e1   : > { %v3359_v28 = vsel %vm3358_vm6, %v4337_v43, %v3355_v21  ;;  %v2711_v25 = vpop.xlane.xlu0 %2710  ;;  %v2454_v11 = vsub.f32 %v6678_v58, %v2378_v24  ;;  %vm3373_vm11 = vmor %vm3371_vm10, %vm3372_vm8 }
 0x3e2   : > { %v3364_v26 = vsel %vm3361_vm7, %v3363_v52, %v3359_v28  ;;  %4344 = vrcp.f32 %v2711_v25  ;;  %v3368_v57 = vsub.f32 1.0, %v3367_v56  ;;  %v3392_v4 = vand.u32 2147483648, %v2711_v25 }
 0x3e3   : > { %v3365_v27 = vmul.f32 %v6649_v32, %v3364_v26  ;;  %v2575_v49 = vmul.f32 1.442695, %v2454_v11  ;;  %v3378_v32 = vor.u32 1.1754944e-38, %v3377_v39  ;;  %v3390_v13 = vand.u32 2147483647, %v2711_v25 }
 0x3e4   : > { %v6836_v20 = vpop.eup %4342  ;;  %v3369_v19 = vmul.f32 %v4341_v59, %v3368_v57  ;;  %vm3386_vm0 = vweird.f32 %v2711_v25 }
 0x3e5   : > { %3779 = vst.msk [vmem:[%s6225_s14 + $0x130] sm:$0xff] %vm2204_vm2, %v3365_v27  ;;  %4346 = vpow2.f32 %v2575_v49  ;;  %v2757_v22 = vsel %vm2204_vm2, %v6836_v20, 0.0  ;;  %vm3391_vm15 = vcmp.eq.f32.partialorder %v3390_v13, 8.507059e+37 }
 0x3e6   : > { %v3370_v40 = vadd.f32 %v4341_v59, %v3369_v19  ;;  %2758 = vadd.xlane.f32.xlu1 %v2757_v22 }
 0x3e8   : > { %v4345_v58 = vpop.eup %4344  ;;  %v3374_v61 = vsel %vm3373_vm11, %v4341_v59, %v3370_v40  ;;  %v2381_v14 = vpop.xlane.xlu2 %2380 }
 0x3e9   : > { %v3382_v37 = vmul.f32 %v4345_v58, %v2711_v25  ;;  %v2714_v46 = vpop.xlane.xlu1 %2713  ;;  %v3379_v10 = vsel %vm3376_vm12, %v3378_v32, %v3374_v61  ;;  %v2455_v44 = vsub.f32 %v6691_v42, %v2381_v14  ;;  %vm3387_vm13 = vweird.f32 %v4345_v58 }
 0x3ea   : > { %4348 = vrcp.f32 %v2714_v46  ;;  %v3380_v43 = vmul.f32 %v6662_v33, %v3379_v10  ;;  %vm3388_vm14 = vmor %vm3386_vm0, %vm3387_vm13  ;;  %v3393_v33 = vor.u32 1.1754944e-38, %v3392_v4  ;;  %v3405_v28 = vand.u32 2147483647, %v2714_v46 }
 0x3eb   : > { %v3383_v9 = vsub.f32 1.0, %v3382_v37  ;;  %v6844_v45 = vpop.eup %4346  ;;  %v2577_v63 = vmul.f32 1.442695, %v2455_v44  ;;  %v3407_v56 = vand.u32 2147483648, %v2714_v46  ;;  %vm3401_vm9 = vweird.f32 %v2714_v46 }
 0x3ec   : > { %3780 = vst.msk [vmem:[%s6225_s14 + $0x138] sm:$0xff] %vm2204_vm2, %v3380_v43  ;;  %v2760_v29 = vsel %vm2204_vm2, %v6844_v45, 0.0  ;;  %vm3406_vm4 = vcmp.eq.f32.partialorder %v3405_v28, 8.507059e+37 }
 0x3ed   : > { %v3384_v0 = vmul.f32 %v4345_v58, %v3383_v9  ;;  %4350 = vpow2.f32 %v2577_v63  ;;  %2761 = vadd.xlane.f32.xlu2 %v2760_v29 }
 0x3ef   : > { %v3385_v41 = vadd.f32 %v4345_v58, %v3384_v0 }
 0x3f0   : > { %v4349_v42 = vpop.eup %4348  ;;  %v2717_v51 = vpop.xlane.xlu2 %2716 }
 0x3f1   : > { %v3389_v8 = vsel %vm3388_vm14, %v4345_v58, %v3385_v41  ;;  %v3397_v60 = vmul.f32 %v4349_v42, %v2714_v46  ;;  %v2384_v17 = vpop.xlane.xlu0 %2383  ;;  %4352 = vrcp.f32 %v2717_v51  ;;  %vm3402_vm1 = vweird.f32 %v4349_v42 }
 0x3f2   : > { %v3394_v50 = vsel %vm3391_vm15, %v3393_v33, %v3389_v8  ;;  %v2456_v59 = vsub.f32 %v6705_v2, %v2384_v17  ;;  %vm3403_vm3 = vmor %vm3401_vm9, %vm3402_vm1  ;;  %v3408_v2 = vor.u32 1.1754944e-38, %v3407_v56  ;;  %v3422_v40 = vand.u32 2147483648, %v2717_v51 }
 0x3f3   : > { %v3395_v54 = vmul.f32 %v6675_v36, %v3394_v50  ;;  %v3398_v21 = vsub.f32 1.0, %v3397_v60  ;;  %v6852_v52 = vpop.eup %4350  ;;  %v3420_v37 = vand.u32 2147483647, %v2717_v51  ;;  %vm3416_vm6 = vweird.f32 %v2717_v51 }
 0x3f4   : > { %v2579_v25 = vmul.f32 1.442695, %v2456_v59  ;;  %v2763_v26 = vsel %vm2204_vm2, %v6852_v52, 0.0 }
 0x3f5   : > { %3781 = vst.msk [vmem:[%s6225_s14 + $0x140] sm:$0xff] %vm2204_vm2, %v3395_v54  ;;  %v3399_v24 = vmul.f32 %v4349_v42, %v3398_v21  ;;  %2764 = vadd.xlane.f32.xlu0 %v2763_v26  ;;  %vm3421_vm8 = vcmp.eq.f32.partialorder %v3420_v37, 8.507059e+37 }
 0x3f6   : > { %4354 = vpow2.f32 %v2579_v25 }
 0x3f7   : > { %v3400_v11 = vadd.f32 %v4349_v42, %v3399_v24  ;;  %v4353_v36 = vpop.eup %4352 }
 0x3f8   : > { %v3412_v57 = vmul.f32 %v4353_v36, %v2717_v51  ;;  %v2387_v39 = vpop.xlane.xlu1 %2386  ;;  %vm3417_vm5 = vweird.f32 %v4353_v36 }
 0x3f9   : > { %v3404_v27 = vsel %vm3403_vm3, %v4349_v42, %v3400_v11  ;;  %v2457_v19 = vsub.f32 %v6717_v34, %v2387_v39  ;;  %vm3418_vm7 = vmor %vm3416_vm6, %vm3417_vm5 }
 0x3fa   : > { %v3409_v49 = vsel %vm3406_vm4, %v3408_v2, %v3404_v27  ;;  %v3413_v22 = vsub.f32 1.0, %v3412_v57 }
 0x3fb   : > { %v3410_v55 = vmul.f32 %v6688_v12, %v3409_v49  ;;  %v2581_v58 = vmul.f32 1.442695, %v2457_v19  ;;  %v3423_v12 = vor.u32 1.1754944e-38, %v3422_v40 }
 0x3fc   : > { %v6860_v32 = vpop.eup %4354  ;;  %v3414_v61 = vmul.f32 %v4353_v36, %v3413_v22 }
 0x3fd   : > { %3782 = vst.msk [vmem:[%s6225_s14 + $0x148] sm:$0xff] %vm2204_vm2, %v3410_v55  ;;  %4356 = vpow2.f32 %v2581_v58  ;;  %v2766_v14 = vsel %vm2204_vm2, %v6860_v32, 0.0 }
 0x3fe   : > { %v3415_v46 = vadd.f32 %v4353_v36, %v3414_v61  ;;  %2767 = vadd.xlane.f32.xlu1 %v2766_v14 }
 0x400   : > { %v3419_v34 = vsel %vm3418_vm7, %v4353_v36, %v3415_v46  ;;  %v2390_v10 = vpop.xlane.xlu2 %2389 }
 0x401   : > { %v3424_v44 = vsel %vm3421_vm8, %v3423_v12, %v3419_v34  ;;  %v2458_v43 = vsub.f32 %v6728_v18, %v2390_v10 }
 0x402   : > { %v3425_v9 = vmul.f32 %v6700_v15, %v3424_v44 }
 0x403   : > { %v6868_v4 = vpop.eup %4356  ;;  %v2583_v63 = vmul.f32 1.442695, %v2458_v43 }
 0x404   : > { %3783 = vst.msk [vmem:[%s6225_s14 + $0x150] sm:$0xff] %vm2204_vm2, %v3425_v9  ;;  %v2769_v0 = vsel %vm2204_vm2, %v6868_v4, 0.0 }
 0x405   : > { %4358 = vpow2.f32 %v2583_v63  ;;  %2770 = vadd.xlane.f32.xlu2 %v2769_v0 }
 0x408   : > { %v2393_v13 = vpop.xlane.xlu0 %2392  ;;  %v2726_v29 = vpop.xlane.xlu2 %2725 }
 0x409   : > { %v2459_v41 = vsub.f32 %v6741_v1, %v2393_v13  ;;  %4360 = vrcp.f32 %v2726_v29  ;;  %v3467_v21 = vand.u32 2147483648, %v2726_v29  ;;  %v3465_v56 = vand.u32 2147483647, %v2726_v29 }
 0x40a   : > { %vm3461_vm11 = vweird.f32 %v2726_v29 }
 0x40b   : > { %v2585_v42 = vmul.f32 1.442695, %v2459_v41  ;;  %v6875_v33 = vpop.eup %4358  ;;  %v3468_v26 = vor.u32 1.1754944e-38, %v3467_v21  ;;  %vm3466_vm13 = vcmp.eq.f32.partialorder %v3465_v56, 8.507059e+37 }
 0x40c   : > { %v2772_v15 = vsel %vm2204_vm2, %v6875_v33, 0.0 }
 0x40d   : > { %4362 = vpow2.f32 %v2585_v42  ;;  %2773 = vadd.xlane.f32.xlu0 %v2772_v15 }
 0x40f   : > { %v4361_v18 = vpop.eup %4360 }
 0x410   : > { %v2396_v8 = vpop.xlane.xlu1 %2395  ;;  %v2720_v60 = vpop.xlane.xlu0 %2719  ;;  %v3457_v51 = vmul.f32 %v4361_v18, %v2726_v29  ;;  %vm3462_vm10 = vweird.f32 %v4361_v18 }
 0x411   : > { %v2460_v17 = vsub.f32 %v6754_v7, %v2396_v8  ;;  %4364 = vrcp.f32 %v2720_v60  ;;  %vm3463_vm12 = vmor %vm3461_vm11, %vm3462_vm10  ;;  %v3435_v55 = vand.u32 2147483647, %v2720_v60  ;;  %v3437_v22 = vand.u32 2147483648, %v2720_v60 }
 0x412   : > { %v3458_v54 = vsub.f32 1.0, %v3457_v51  ;;  %vm3431_vm14 = vweird.f32 %v2720_v60 }
 0x413   : > { %v6880_v50 = vpop.eup %4362  ;;  %v2587_v1 = vmul.f32 1.442695, %v2460_v17  ;;  %vm3436_vm1 = vcmp.eq.f32.partialorder %v3435_v55, 8.507059e+37  ;;  %v3438_v14 = vor.u32 1.1754944e-38, %v3437_v22 }
 0x414   : > { %v2775_v59 = vsel %vm2204_vm2, %v6880_v50, 0.0  ;;  %v3459_v28 = vmul.f32 %v4361_v18, %v3458_v54 }
 0x415   : > { %4366 = vpow2.f32 %v2587_v1  ;;  %2776 = vadd.xlane.f32.xlu1 %v2775_v59 }
 0x416   : > { %v3460_v25 = vadd.f32 %v4361_v18, %v3459_v28 }
 0x417   : > { %v4365_v24 = vpop.eup %4364 }
 0x418   : > { %v3427_v7 = vmul.f32 %v4365_v24, %v2720_v60  ;;  %v2723_v11 = vpop.xlane.xlu1 %2722  ;;  %v6884_v36 = vpop.xlane.xlu0 %2728  ;;  %v3464_v2 = vsel %vm3463_vm12, %v4361_v18, %v3460_v25  ;;  %vm3432_vm0 = vweird.f32 %v4365_v24 }
 0x419   : > { %4368 = vrcp.f32 %v2723_v11  ;;  %v3469_v27 = vsel %vm3466_vm13, %v3468_v26, %v3464_v2  ;;  %v2735_v39 = vpop.xlane.xlu2 %2734  ;;  %vm3433_vm15 = vmor %vm3431_vm14, %vm3432_vm0  ;;  %vm3446_vm9 = vweird.f32 %v2723_v11  ;;  %v3450_v34 = vand.u32 2147483647, %v2723_v11 }
 0x41a   : > { %v3428_v57 = vsub.f32 1.0, %v3427_v7  ;;  %4370 = vrcp.f32 %v6884_v36  ;;  %v3470_v19 = vmul.f32 %v6739_v16, %v3469_v27  ;;  %v3452_v9 = vand.u32 2147483648, %v2723_v11 }
 0x41b   : > { %v6887_v49 = vpop.eup %4366  ;;  %4372 = vrcp.f32 %v2735_v39  ;;  %vm3506_vm3 = vweird.f32 %v2735_v39  ;;  %v3510_v42 = vand.u32 2147483647, %v2735_v39  ;;  %v3512_v15 = vand.u32 2147483648, %v2735_v39 }
 0x41c   : > { %v3429_v40 = vmul.f32 %v4365_v24, %v3428_v57  ;;  %3786 = vst.msk [vmem:[%s6225_s14 + $0x168] sm:$0xff] %vm2204_vm2, %v3470_v19  ;;  %v2778_v61 = vsel %vm2204_vm2, %v6887_v49, 0.0  ;;  %v3482_v8 = vand.u32 2147483648, %v6884_v36  ;;  %vm6905_vm5 = vcmp.eq.f32.partialorder %v3450_v34, 8.507059e+37 }
 0x41d   : > { %2779 = vadd.xlane.f32.xlu2 %v2778_v61  ;;  %v3480_v54 = vand.u32 2147483647, %v6884_v36  ;;  %v3453_v59 = vor.u32 1.1754944e-38, %v3452_v9  ;;  %vm6910_vm8 = vcmp.eq.f32.partialorder %v3510_v42, 8.507059e+37  ;;  %vm3476_vm11 = vweird.f32 %v6884_v36 }
 0x41e   : > { %v3430_v58 = vadd.f32 %v4365_v24, %v3429_v40  ;;  %v3483_v2 = vor.u32 1.1754944e-38, %v3482_v8 }
 0x41f   : > { %v4369_v37 = vpop.eup %4368  ;;  %vm3481_vm0 = vcmp.eq.f32.partialorder %v3480_v54, 8.507059e+37 }
 0x420   : > { %v4371_v46 = vpop.eup %4370  ;;  %v3434_v12 = vsel %vm3433_vm15, %v4365_v24, %v3430_v58  ;;  %v3442_v16 = vmul.f32 %v4369_v37, %v2723_v11  ;;  %v6894_v10 = vpop.xlane.xlu1 %2731  ;;  %vm3447_vm4 = vweird.f32 %v4369_v37  ;;  %v3513_v24 = vor.u32 1.1754944e-38, %v3512_v15 }
 0x421   : > { %v4373_v44 = vpop.eup %4372  ;;  %v3439_v43 = vsel %vm3436_vm1, %v3438_v14, %v3434_v12  ;;  %v3472_v63 = vmul.f32 %v4371_v46, %v6884_v36  ;;  %4374 = vrcp.f32 %v6894_v10  ;;  %v6899_v41 = vpop.xlane.xlu0 %2737  ;;  %vm3477_vm6 = vweird.f32 %v4371_v46  ;;  %vm3448_vm10 = vmor %vm3446_vm9, %vm3447_vm4 }
 0x422   : > { %v3440_v0 = vmul.f32 %v6751_v38, %v3439_v43  ;;  %v3502_v13 = vmul.f32 %v4373_v44, %v2735_v39  ;;  %v3443_v29 = vsub.f32 1.0, %v3442_v16  ;;  %4376 = vrcp.f32 %v6899_v41  ;;  %vm3478_vm12 = vmor %vm3476_vm11, %vm3477_vm6 }
 0x423   : > { %v3473_v18 = vsub.f32 1.0, %v3472_v63  ;;  %vm3507_vm7 = vweird.f32 %v4373_v44  ;;  %v3495_v11 = vand.u32 2147483647, %v6894_v10  ;;  %vm3491_vm15 = vweird.f32 %v6894_v10 }
 0x424   : > { %3784 = vst.msk [vmem:[%s6225_s14 + $0x158] sm:$0xff] %vm2204_vm2, %v3440_v0  ;;  %v3503_v60 = vsub.f32 1.0, %v3502_v13  ;;  %v3444_v51 = vmul.f32 %v4369_v37, %v3443_v29  ;;  %vm3508_vm13 = vmor %vm3506_vm3, %vm3507_vm7  ;;  %vm3521_vm4 = vweird.f32 %v6899_v41 }
 0x425   : > { %v3474_v38 = vmul.f32 %v4371_v46, %v3473_v18  ;;  %vm3496_vm3 = vcmp.eq.f32.partialorder %v3495_v11, 8.507059e+37 }
 0x426   : > { %v3504_v1 = vmul.f32 %v4373_v44, %v3503_v60  ;;  %v3445_v21 = vadd.f32 %v4369_v37, %v3444_v51 }
 0x427   : > { %v4375_v28 = vpop.eup %4374  ;;  %v3475_v25 = vadd.f32 %v4371_v46, %v3474_v38 }
 0x428   : > { %v3505_v26 = vadd.f32 %v4373_v44, %v3504_v1  ;;  %v3449_v7 = vsel %vm3448_vm10, %v4369_v37, %v3445_v21  ;;  %v3487_v27 = vmul.f32 %v4375_v28, %v6894_v10  ;;  %v4377_v55 = vpop.eup %4376  ;;  %v3497_v37 = vand.u32 2147483648, %v6894_v10 }
 0x429   : > { %v3454_v57 = vsel %vm6905_vm5, %v3453_v59, %v3449_v7  ;;  %v3479_v19 = vsel %vm3478_vm12, %v4371_v46, %v3475_v25  ;;  %v3517_v14 = vmul.f32 %v4377_v55, %v6899_v41  ;;  %v2741_v46 = vpop.xlane.xlu1 %2740  ;;  %vm3492_vm14 = vweird.f32 %v4375_v28 }
 0x42a   : > { %v3509_v22 = vsel %vm3508_vm13, %v4373_v44, %v3505_v26  ;;  %v3455_v36 = vmul.f32 %v6764_v31, %v3454_v57  ;;  %v3484_v40 = vsel %vm3481_vm0, %v3483_v2, %v3479_v19  ;;  %v3488_v58 = vsub.f32 1.0, %v3487_v27  ;;  %vm3493_vm1 = vmor %vm3491_vm15, %vm3492_vm14 }
 0x42b   : > { %v3514_v39 = vsel %vm6910_vm8, %v3513_v24, %v3509_v22  ;;  %v3485_v61 = vmul.f32 %v6766_v48, %v3484_v40  ;;  %4378 = vrcp.f32 %v2741_v46  ;;  %v3518_v31 = vsub.f32 1.0, %v3517_v14 }
 0x42c   : > { %v3515_v12 = vmul.f32 %v6773_v35, %v3514_v39  ;;  %3785 = vst.msk [vmem:[%s6225_s14 + $0x160] sm:$0xff] %vm2204_vm2, %v3455_v36  ;;  %v3489_v16 = vmul.f32 %v4375_v28, %v3488_v58  ;;  %v3527_v48 = vand.u32 2147483648, %v6899_v41  ;;  %v3498_v44 = vor.u32 1.1754944e-38, %v3497_v37 }
 0x42d   : > { %3787 = vst.msk [vmem:[%s6225_s14 + $0x170] sm:$0xff] %vm2204_vm2, %v3485_v61  ;;  %v3519_v43 = vmul.f32 %v4377_v55, %v3518_v31  ;;  %vm3522_vm9 = vweird.f32 %v4377_v55  ;;  %v3525_v35 = vand.u32 2147483647, %v6899_v41  ;;  %v3542_v17 = vand.u32 2147483648, %v2741_v46 }
 0x42e   : > { %3789 = vst.msk [vmem:[%s6225_s14 + $0x180] sm:$0xff] %vm2204_vm2, %v3515_v12  ;;  %v3490_v34 = vadd.f32 %v4375_v28, %v3489_v16  ;;  %vm3523_vm5 = vmor %vm3521_vm4, %vm3522_vm9  ;;  %v3528_v42 = vor.u32 1.1754944e-38, %v3527_v48  ;;  %v3540_v38 = vand.u32 2147483647, %v2741_v46  ;;  %vm3536_vm8 = vweird.f32 %v2741_v46 }
 0x42f   : > { %v3520_v0 = vadd.f32 %v4377_v55, %v3519_v43  ;;  %vm3526_vm6 = vcmp.eq.f32.partialorder %v3525_v35, 8.507059e+37  ;;  %v3543_v59 = vor.u32 1.1754944e-38, %v3542_v17 }
 0x430   : > { %v3494_v9 = vsel %vm3493_vm1, %v4375_v28, %v3490_v34  ;;  %v2744_v13 = vpop.xlane.xlu2 %2743  ;;  %vm3541_vm11 = vcmp.eq.f32.partialorder %v3540_v38, 8.507059e+37 }
 0x431   : > { %v3499_v63 = vsel %vm3496_vm3, %v3498_v44, %v3494_v9  ;;  %v4379_v29 = vpop.eup %4378  ;;  %4380 = vrcp.f32 %v2744_v13  ;;  %v3524_v15 = vsel %vm3523_vm5, %v4377_v55, %v3520_v0  ;;  %v3557_v24 = vand.u32 2147483648, %v2744_v13 }
 0x432   : > { %v3500_v10 = vmul.f32 %v6777_v3, %v3499_v63  ;;  %v3532_v18 = vmul.f32 %v4379_v29, %v2741_v46  ;;  %v3529_v8 = vsel %vm3526_vm6, %v3528_v42, %v3524_v15  ;;  %vm3537_vm7 = vweird.f32 %v4379_v29 }
 0x433   : > { %v3530_v60 = vmul.f32 %v6782_v5, %v3529_v8  ;;  %vm3538_vm10 = vmor %vm3536_vm8, %vm3537_vm7  ;;  %v3555_v7 = vand.u32 2147483647, %v2744_v13  ;;  %vm3551_vm13 = vweird.f32 %v2744_v13  ;;  %v3558_v57 = vor.u32 1.1754944e-38, %v3557_v24 }
 0x434   : > { %3788 = vst.msk [vmem:[%s6225_s14 + $0x178] sm:$0xff] %vm2204_vm2, %v3500_v10  ;;  %v3533_v51 = vsub.f32 1.0, %v3532_v18 }
 0x435   : > { %3790 = vst.msk [vmem:[%s6225_s14 + $0x188] sm:$0xff] %vm2204_vm2, %v3530_v60  ;;  %vm3556_vm14 = vcmp.eq.f32.partialorder %v3555_v7, 8.507059e+37 }
 0x436   : > { %v3534_v41 = vmul.f32 %v4379_v29, %v3533_v51 }
 0x437   : > { %v4381_v54 = vpop.eup %4380 }
 0x438   : > { %v3535_v3 = vadd.f32 %v4379_v29, %v3534_v41  ;;  %v3547_v1 = vmul.f32 %v4381_v54, %v2744_v13  ;;  %v2747_v21 = vpop.xlane.xlu0 %2746  ;;  %vm3552_vm12 = vweird.f32 %v4381_v54 }
 0x439   : > { %4382 = vrcp.f32 %v2747_v21  ;;  %vm3553_vm0 = vmor %vm3551_vm13, %vm3552_vm12  ;;  %v3570_v39 = vand.u32 2147483647, %v2747_v21  ;;  %vm3566_vm1 = vweird.f32 %v2747_v21 }
 0x43a   : > { %v3539_v28 = vsel %vm3538_vm10, %v4379_v29, %v3535_v3  ;;  %v3548_v56 = vsub.f32 1.0, %v3547_v1 }
 0x43b   : > { %v3544_v5 = vsel %vm3541_vm11, %v3543_v59, %v3539_v28  ;;  %vm3571_vm3 = vcmp.eq.f32.partialorder %v3570_v39, 8.507059e+37 }
 0x43c   : > { %v3545_v25 = vmul.f32 %v6788_v6, %v3544_v5  ;;  %v3549_v26 = vmul.f32 %v4381_v54, %v3548_v56  ;;  %v3572_v6 = vand.u32 2147483648, %v2747_v21 }
 0x43e   : > { %3791 = vst.msk [vmem:[%s6225_s14 + $0x190] sm:$0xff] %vm2204_vm2, %v3545_v25  ;;  %v3550_v2 = vadd.f32 %v4381_v54, %v3549_v26  ;;  %v3573_v37 = vor.u32 1.1754944e-38, %v3572_v6 }
 0x43f   : > { %v4383_v27 = vpop.eup %4382 }
 0x440   : > { %v3554_v19 = vsel %vm3553_vm0, %v4381_v54, %v3550_v2  ;;  %v3562_v11 = vmul.f32 %v4383_v27, %v2747_v21  ;;  %vm3567_vm15 = vweird.f32 %v4383_v27 }
 0x441   : > { %v3559_v55 = vsel %vm3556_vm14, %v3558_v57, %v3554_v19  ;;  %v2750_v40 = vpop.xlane.xlu1 %2749  ;;  %vm3568_vm9 = vmor %vm3566_vm1, %vm3567_vm15 }
 0x442   : > { %v3560_v22 = vmul.f32 %v6795_v47, %v3559_v55  ;;  %v3563_v36 = vsub.f32 1.0, %v3562_v11  ;;  %4384 = vrcp.f32 %v2750_v40  ;;  %v3587_v48 = vand.u32 2147483648, %v2750_v40 }
 0x443   : > { %v3585_v43 = vand.u32 2147483647, %v2750_v40  ;;  %vm3581_vm5 = vweird.f32 %v2750_v40 }
 0x444   : > { %3792 = vst.msk [vmem:[%s6225_s14 + $0x198] sm:$0xff] %vm2204_vm2, %v3560_v22  ;;  %v3564_v58 = vmul.f32 %v4383_v27, %v3563_v36  ;;  %v3588_v13 = vor.u32 1.1754944e-38, %v3587_v48 }
 0x445   : > { %vm3586_vm7 = vcmp.eq.f32.partialorder %v3585_v43, 8.507059e+37 }
 0x446   : > { %v3565_v61 = vadd.f32 %v4383_v27, %v3564_v58 }
 0x448   : > { %v3569_v14 = vsel %vm3568_vm9, %v4383_v27, %v3565_v61  ;;  %v2753_v46 = vpop.xlane.xlu2 %2752  ;;  %v4385_v12 = vpop.eup %4384 }
 0x449   : > { %v3574_v16 = vsel %vm3571_vm3, %v3573_v37, %v3569_v14  ;;  %4386 = vrcp.f32 %v2753_v46  ;;  %v3577_v31 = vmul.f32 %v4385_v12, %v2750_v40  ;;  %vm3582_vm4 = vweird.f32 %v4385_v12 }
 0x44a   : > { %v3575_v47 = vmul.f32 %v6802_v23, %v3574_v16  ;;  %vm3583_vm6 = vmor %vm3581_vm5, %vm3582_vm4  ;;  %v3602_v42 = vand.u32 2147483648, %v2753_v46  ;;  %v3600_v8 = vand.u32 2147483647, %v2753_v46  ;;  %vm3596_vm10 = vweird.f32 %v2753_v46 }
 0x44b   : > { %v3578_v34 = vsub.f32 1.0, %v3577_v31 }
 0x44c   : > { %3793 = vst.msk [vmem:[%s6225_s14 + $0x1a0] sm:$0xff] %vm2204_vm2, %v3575_v47  ;;  %v3603_v17 = vor.u32 1.1754944e-38, %v3602_v42  ;;  %vm3601_vm12 = vcmp.eq.f32.partialorder %v3600_v8, 8.507059e+37 }
 0x44d   : > { %v3579_v44 = vmul.f32 %v4385_v12, %v3578_v34 }
 0x44f   : > { %v4387_v35 = vpop.eup %4386  ;;  %v3580_v9 = vadd.f32 %v4385_v12, %v3579_v44 }
 0x450   : > { %v3592_v63 = vmul.f32 %v4387_v35, %v2753_v46  ;;  %v2756_v0 = vpop.xlane.xlu0 %2755  ;;  %vm3597_vm8 = vweird.f32 %v4387_v35 }
 0x451   : > { %4388 = vrcp.f32 %v2756_v0  ;;  %v3584_v29 = vsel %vm3583_vm6, %v4385_v12, %v3580_v9  ;;  %vm3598_vm11 = vmor %vm3596_vm10, %vm3597_vm8  ;;  %v3615_v28 = vand.u32 2147483647, %v2756_v0  ;;  %vm3611_vm0 = vweird.f32 %v2756_v0 }
 0x452   : > { %v3593_v23 = vsub.f32 1.0, %v3592_v63  ;;  %v3589_v10 = vsel %vm3586_vm7, %v3588_v13, %v3584_v29 }
 0x453   : > { %v3590_v15 = vmul.f32 %v6812_v30, %v3589_v10  ;;  %v3617_v30 = vand.u32 2147483648, %v2756_v0  ;;  %vm3616_vm15 = vcmp.eq.f32.partialorder %v3615_v28, 8.507059e+37 }
 0x454   : > { %v3594_v18 = vmul.f32 %v4387_v35, %v3593_v23 }
 0x455   : > { %3794 = vst.msk [vmem:[%s6225_s14 + $0x1a8] sm:$0xff] %vm2204_vm2, %v3590_v15  ;;  %v3618_v5 = vor.u32 1.1754944e-38, %v3617_v30 }
 0x456   : > { %v3595_v60 = vadd.f32 %v4387_v35, %v3594_v18 }
 0x457   : > { %v4389_v51 = vpop.eup %4388 }
 0x458   : > { %v3599_v41 = vsel %vm3598_vm11, %v4387_v35, %v3595_v60  ;;  %v3607_v38 = vmul.f32 %v4389_v51, %v2756_v0  ;;  %vm3612_vm13 = vweird.f32 %v4389_v51 }
 0x459   : > { %v3604_v54 = vsel %vm3601_vm12, %v3603_v17, %v3599_v41  ;;  %v2759_v3 = vpop.xlane.xlu1 %2758  ;;  %vm3613_vm14 = vmor %vm3611_vm0, %vm3612_vm13 }
 0x45a   : > { %v3605_v1 = vmul.f32 %v6820_v53, %v3604_v54  ;;  %v3608_v21 = vsub.f32 1.0, %v3607_v38  ;;  %4390 = vrcp.f32 %v2759_v3  ;;  %v3632_v57 = vand.u32 2147483648, %v2759_v3 }
 0x45b   : > { %v3630_v11 = vand.u32 2147483647, %v2759_v3  ;;  %vm3626_vm9 = vweird.f32 %v2759_v3 }
 0x45c   : > { %3795 = vst.msk [vmem:[%s6225_s14 + $0x1b0] sm:$0xff] %vm2204_vm2, %v3605_v1  ;;  %v3609_v59 = vmul.f32 %v4389_v51, %v3608_v21  ;;  %v3633_v36 = vor.u32 1.1754944e-38, %v3632_v57 }
 0x45d   : > { %vm3631_vm4 = vcmp.eq.f32.partialorder %v3630_v11, 8.507059e+37 }
 0x45e   : > { %v3610_v56 = vadd.f32 %v4389_v51, %v3609_v59 }
 0x460   : > { %v4391_v24 = vpop.eup %4390  ;;  %v3614_v25 = vsel %vm3613_vm14, %v4389_v51, %v3610_v56  ;;  %v2762_v26 = vpop.xlane.xlu2 %2761 }
 0x461   : > { %v3619_v7 = vsel %vm3616_vm15, %v3618_v5, %v3614_v25  ;;  %v3622_v2 = vmul.f32 %v4391_v24, %v2759_v3  ;;  %4392 = vrcp.f32 %v2762_v26  ;;  %vm3627_vm1 = vweird.f32 %v4391_v24 }
 0x462   : > { %v3620_v53 = vmul.f32 %v6828_v62, %v3619_v7  ;;  %vm3628_vm3 = vmor %vm3626_vm9, %vm3627_vm1  ;;  %v3647_v37 = vand.u32 2147483648, %v2762_v26  ;;  %v3645_v46 = vand.u32 2147483647, %v2762_v26  ;;  %vm3641_vm6 = vweird.f32 %v2762_v26 }
 0x463   : > { %v3623_v27 = vsub.f32 1.0, %v3622_v2 }
 0x464   : > { %3796 = vst.msk [vmem:[%s6225_s14 + $0x1b8] sm:$0xff] %vm2204_vm2, %v3620_v53  ;;  %v3648_v47 = vor.u32 1.1754944e-38, %v3647_v37  ;;  %vm3646_vm8 = vcmp.eq.f32.partialorder %v3645_v46, 8.507059e+37 }
 0x465   : > { %v3624_v19 = vmul.f32 %v4391_v24, %v3623_v27 }
 0x467   : > { %v4393_v55 = vpop.eup %4392  ;;  %v3625_v22 = vadd.f32 %v4391_v24, %v3624_v19 }
 0x468   : > { %v3637_v40 = vmul.f32 %v4393_v55, %v2762_v26  ;;  %v2765_v6 = vpop.xlane.xlu0 %2764  ;;  %vm3642_vm5 = vweird.f32 %v4393_v55 }
 0x469   : > { %v3629_v58 = vsel %vm3628_vm3, %v4391_v24, %v3625_v22  ;;  %4394 = vrcp.f32 %v2765_v6  ;;  %vm3643_vm7 = vmor %vm3641_vm6, %vm3642_vm5  ;;  %v3662_v35 = vand.u32 2147483648, %v2765_v6  ;;  %v3660_v63 = vand.u32 2147483647, %v2765_v6 }
 0x46a   : > { %v3634_v39 = vsel %vm3631_vm4, %v3633_v36, %v3629_v58  ;;  %v3638_v62 = vsub.f32 1.0, %v3637_v40  ;;  %vm3656_vm11 = vweird.f32 %v2765_v6 }
 0x46b   : > { %v3635_v61 = vmul.f32 %v6836_v20, %v3634_v39  ;;  %v3663_v13 = vor.u32 1.1754944e-38, %v3662_v35  ;;  %vm3661_vm13 = vcmp.eq.f32.partialorder %v3660_v63, 8.507059e+37 }
 0x46c   : > { %v3639_v14 = vmul.f32 %v4393_v55, %v3638_v62 }
 0x46d   : > { %3797 = vst.msk [vmem:[%s6225_s14 + $0x1c0] sm:$0xff] %vm2204_vm2, %v3635_v61 }
 0x46e   : > { %v3640_v12 = vadd.f32 %v4393_v55, %v3639_v14 }
 0x46f   : > { %v4395_v16 = vpop.eup %4394 }
 0x470   : > { %v3644_v31 = vsel %vm3643_vm7, %v4393_v55, %v3640_v12  ;;  %v3652_v34 = vmul.f32 %v4395_v16, %v2765_v6  ;;  %vm3657_vm10 = vweird.f32 %v4395_v16 }
 0x471   : > { %v3649_v48 = vsel %vm3646_vm8, %v3648_v47, %v3644_v31  ;;  %v2768_v44 = vpop.xlane.xlu1 %2767  ;;  %vm3658_vm12 = vmor %vm3656_vm11, %vm3657_vm10 }
 0x472   : > { %v3650_v43 = vmul.f32 %v6844_v45, %v3649_v48  ;;  %v3653_v20 = vsub.f32 1.0, %v3652_v34  ;;  %4396 = vrcp.f32 %v2768_v44  ;;  %v3677_v8 = vand.u32 2147483648, %v2768_v44 }
 0x473   : > { %v3675_v51 = vand.u32 2147483647, %v2768_v44  ;;  %vm3671_vm14 = vweird.f32 %v2768_v44 }
 0x474   : > { %3798 = vst.msk [vmem:[%s6225_s14 + $0x1c8] sm:$0xff] %vm2204_vm2, %v3650_v43  ;;  %v3654_v9 = vmul.f32 %v4395_v16, %v3653_v20  ;;  %v3678_v38 = vor.u32 1.1754944e-38, %v3677_v8 }
 0x475   : > { %vm3676_vm1 = vcmp.eq.f32.partialorder %v3675_v51, 8.507059e+37 }
 0x476   : > { %v3655_v0 = vadd.f32 %v4395_v16, %v3654_v9 }
 0x478   : > { %v4397_v29 = vpop.eup %4396  ;;  %v3659_v23 = vsel %vm3658_vm12, %v4395_v16, %v3655_v0  ;;  %v2771_v10 = vpop.xlane.xlu2 %2770 }
 0x479   : > { %v3664_v42 = vsel %vm3661_vm13, %v3663_v13, %v3659_v23  ;;  %v3667_v15 = vmul.f32 %v4397_v29, %v2768_v44  ;;  %4398 = vrcp.f32 %v2771_v10  ;;  %vm3672_vm0 = vweird.f32 %v4397_v29 }
 0x47a   : > { %v3665_v45 = vmul.f32 %v6852_v52, %v3664_v42  ;;  %vm3673_vm15 = vmor %vm3671_vm14, %vm3672_vm0  ;;  %v3692_v59 = vand.u32 2147483648, %v2771_v10  ;;  %v3690_v56 = vand.u32 2147483647, %v2771_v10  ;;  %vm3686_vm3 = vweird.f32 %v2771_v10 }
 0x47b   : > { %v3668_v18 = vsub.f32 1.0, %v3667_v15 }
 0x47c   : > { %3799 = vst.msk [vmem:[%s6225_s14 + $0x1d0] sm:$0xff] %vm2204_vm2, %v3665_v45  ;;  %v3693_v25 = vor.u32 1.1754944e-38, %v3692_v59  ;;  %vm3691_vm5 = vcmp.eq.f32.partialorder %v3690_v56, 8.507059e+37 }
 0x47d   : > { %v3669_v60 = vmul.f32 %v4397_v29, %v3668_v18 }
 0x47f   : > { %v4399_v17 = vpop.eup %4398  ;;  %v3670_v41 = vadd.f32 %v4397_v29, %v3669_v60 }
 0x480   : > { %v3682_v54 = vmul.f32 %v4399_v17, %v2771_v10  ;;  %v2774_v3 = vpop.xlane.xlu0 %2773  ;;  %vm3687_vm9 = vweird.f32 %v4399_v17 }
 0x481   : > { %v3674_v1 = vsel %vm3673_vm15, %v4397_v29, %v3670_v41  ;;  %4400 = vrcp.f32 %v2774_v3  ;;  %vm3688_vm4 = vmor %vm3686_vm3, %vm3687_vm9  ;;  %v3707_v57 = vand.u32 2147483648, %v2774_v3  ;;  %v3705_v11 = vand.u32 2147483647, %v2774_v3 }
 0x482   : > { %v3679_v21 = vsel %vm3676_vm1, %v3678_v38, %v3674_v1  ;;  %v3683_v52 = vsub.f32 1.0, %v3682_v54  ;;  %vm3701_vm7 = vweird.f32 %v2774_v3 }
 0x483   : > { %v3680_v30 = vmul.f32 %v6860_v32, %v3679_v21  ;;  %v3708_v36 = vor.u32 1.1754944e-38, %v3707_v57  ;;  %vm3706_vm10 = vcmp.eq.f32.partialorder %v3705_v11, 8.507059e+37 }
 0x484   : > { %v3684_v28 = vmul.f32 %v4399_v17, %v3683_v52 }
 0x485   : > { %3800 = vst.msk [vmem:[%s6225_s14 + $0x1d8] sm:$0xff] %vm2204_vm2, %v3680_v30 }
 0x486   : > { %v3685_v5 = vadd.f32 %v4399_v17, %v3684_v28 }
 0x487   : > { %v4401_v24 = vpop.eup %4400 }
 0x488   : > { %v2777_v26 = vpop.xlane.xlu1 %2776  ;;  %v3689_v7 = vsel %vm3688_vm4, %v4399_v17, %v3685_v5  ;;  %v3697_v2 = vmul.f32 %v4401_v24, %v2774_v3  ;;  %vm3702_vm6 = vweird.f32 %v4401_v24 }
 0x489   : > { %4402 = vrcp.f32 %v2777_v26  ;;  %v3694_v53 = vsel %vm3691_vm5, %v3693_v25, %v3689_v7  ;;  %vm3703_vm8 = vmor %vm3701_vm7, %vm3702_vm6  ;;  %v3722_v61 = vand.u32 2147483648, %v2777_v26  ;;  %v3720_v14 = vand.u32 2147483647, %v2777_v26 }
 0x48a   : > { %v3695_v32 = vmul.f32 %v6868_v4, %v3694_v53  ;;  %v3698_v27 = vsub.f32 1.0, %v3697_v2  ;;  %vm3716_vm12 = vweird.f32 %v2777_v26 }
 0x48b   : > { %v3723_v12 = vor.u32 1.1754944e-38, %v3722_v61  ;;  %vm3721_vm0 = vcmp.eq.f32.partialorder %v3720_v14, 8.507059e+37 }
 0x48c   : > { %3801 = vst.msk [vmem:[%s6225_s14 + $0x1e0] sm:$0xff] %vm2204_vm2, %v3695_v32  ;;  %v3699_v19 = vmul.f32 %v4401_v24, %v3698_v27 }
 0x48e   : > { %v3700_v22 = vadd.f32 %v4401_v24, %v3699_v19 }
 0x48f   : > { %v4403_v55 = vpop.eup %4402 }
 0x490   : > { %v3712_v40 = vmul.f32 %v4403_v55, %v2777_v26  ;;  %v3704_v6 = vsel %vm3703_vm8, %v4401_v24, %v3700_v22  ;;  %v2780_v62 = vpop.xlane.xlu2 %2779  ;;  %vm3717_vm11 = vweird.f32 %v4403_v55 }
 0x491   : > { %v3709_v58 = vsel %vm3706_vm10, %v3708_v36, %v3704_v6  ;;  %4404 = vrcp.f32 %v2780_v62  ;;  %vm3718_vm13 = vmor %vm3716_vm12, %vm3717_vm11  ;;  %v3737_v44 = vand.u32 2147483648, %v2780_v62  ;;  %v3735_v20 = vand.u32 2147483647, %v2780_v62 }
 0x492   : > { %v3713_v39 = vsub.f32 1.0, %v3712_v40  ;;  %v3710_v4 = vmul.f32 %v6875_v33, %v3709_v58  ;;  %vm3731_vm15 = vweird.f32 %v2780_v62 }
 0x493   : > { %v3738_v9 = vor.u32 1.1754944e-38, %v3737_v44  ;;  %vm3736_vm9 = vcmp.eq.f32.partialorder %v3735_v20, 8.507059e+37 }
 0x494   : > { %v3714_v37 = vmul.f32 %v4403_v55, %v3713_v39  ;;  %3802 = vst.msk [vmem:[%s6225_s14 + $0x1e8] sm:$0xff] %vm2204_vm2, %v3710_v4 }
 0x496   : > { %v3715_v46 = vadd.f32 %v4403_v55, %v3714_v37 }
 0x497   : > { %v4405_v47 = vpop.eup %4404 }
 0x498   : > { %v3719_v16 = vsel %vm3718_vm13, %v4403_v55, %v3715_v46  ;;  %v3727_v33 = vmul.f32 %v4405_v47, %v2780_v62  ;;  %vm3732_vm14 = vweird.f32 %v4405_v47 }
 0x499   : > { %v3724_v31 = vsel %vm3721_vm0, %v3723_v12, %v3719_v16  ;;  %vm3733_vm1 = vmor %vm3731_vm15, %vm3732_vm14 }
 0x49a   : > { %v3725_v34 = vmul.f32 %v6880_v50, %v3724_v31  ;;  %v3728_v48 = vsub.f32 1.0, %v3727_v33 }
 0x49c   : > { %3803 = vst.msk [vmem:[%s6225_s14 + $0x1f0] sm:$0xff] %vm2204_vm2, %v3725_v34  ;;  %v3729_v43 = vmul.f32 %v4405_v47, %v3728_v48 }
 0x49e   : > { %v3730_v35 = vadd.f32 %v4405_v47, %v3729_v43 }
 0x4a0   : > { %v3734_v63 = vsel %vm3733_vm1, %v4405_v47, %v3730_v35 }
 0x4a1   : > { %v3739_v0 = vsel %vm3736_vm9, %v3738_v9, %v3734_v63 }
 0x4a2   : > { %v3740_v13 = vmul.f32 %v6887_v49, %v3739_v0 }
 0x4a4   : > { %3804 = vst.msk [vmem:[%s6225_s14 + $0x1f8] sm:$0xff] %vm2204_vm2, %v3740_v13 }
 0x4a5 PF: > { %s15_s18 = sadd.s32 1, %s4455_s18  }
 0x4a6   : > { %p12_p4 = scmp.ge.s32.totalorder %s15_s18, 4  }
 0x4a8   :  { %14 = sbr.rel (!%p12_p4) target bundleno = 1 (0x1), region = 70 }

</bundles_post_ra>
